<compile_context>
chip_gen: v6e
topology: v6e:2x2x1
jax: 0.10.0
libtpu: 0.0.40
codegen_flags: <defaults>
</compile_context>

<pallas_src>
import jax
import jax.numpy as jnp
from jax import lax
from jax.experimental import pallas as pl
from jax.experimental.pallas import tpu as pltpu  # noqa: F401  (TPU backend / params)

# ----------------------------- configuration -----------------------------
BATCH = 2
IN_CH = 3
IMG = 32
PATCH = 8
EMBED = 32
HEADS = 4
HEAD_DIM = EMBED // HEADS
DEPTH = 2
MLP_HIDDEN = 4 * EMBED
LN_EPS = 1e-6
NUM_PATCHES = (IMG // PATCH) ** 2          # 16
NUM_TOKENS = NUM_PATCHES + 1               # 17 (+ cls token)
N_PAD = ((NUM_TOKENS + 7) // 8) * 8        # 24 (sublane-aligned token count)
PATCH_DIM = IN_CH * PATCH * PATCH          # 192
ATTN_SCALE = 1.0 / (HEAD_DIM ** 0.5)


# ----------------------------- in-kernel helpers -----------------------------
def _layernorm(x, g, b, eps=LN_EPS):
    mu = jnp.mean(x, axis=-1, keepdims=True)
    var = jnp.mean(jnp.square(x - mu), axis=-1, keepdims=True)
    inv = lax.rsqrt(var + eps)
    return (x - mu) * inv * g + b


def _gelu_tanh(x):
    # TODO(synk): timm nn.GELU() is exact erf-GELU; tanh approximation used for
    # Mosaic-portable in-kernel lowering (deviation ~1e-3).
    c = jnp.float32(0.7978845608028654)  # sqrt(2/pi)
    return 0.5 * x * (1.0 + jnp.tanh(c * (x + 0.044715 * x * x * x)))


# ----------------------------- single fused ViT kernel -----------------------------
def _vit_kernel(patches_ref, patch_w_ref, patch_b_ref, cls_pos0_ref, pos_body_ref,
                ln1_g_ref, ln1_b_ref, qkv_w_ref, qkv_b_ref,
                proj_w_ref, proj_b_ref, ln2_g_ref, ln2_b_ref,
                fc1_w_ref, fc1_b_ref, fc2_w_ref, fc2_b_ref,
                norm_g_ref, norm_b_ref, out_ref):
    B = BATCH

    # ---- patch embedding: [B*NP, PATCH_DIM] @ [PATCH_DIM, EMBED] (one MXU burst) ----
    emb = (jnp.dot(patches_ref[...].astype(jnp.bfloat16), patch_w_ref[...],
                   preferred_element_type=jnp.float32) + patch_b_ref[...])   # [B*NP, E]

    # ---- token assembly directly in the output VMEM buffer (cls | patches | zero pad) ----
    out_ref[...] = jnp.zeros_like(out_ref)                       # zero pad rows 17..23
    out_ref[:, 0:1, :] = jnp.broadcast_to(cls_pos0_ref[...], (B, 1, EMBED))
    out_ref[:, 1:NUM_TOKENS, :] = (emb.reshape(B, NUM_PATCHES, EMBED)
                                   + pos_body_ref[...])

    x = out_ref[...].reshape(B * N_PAD, EMBED)                   # [48, 32] f32 working value

    # padded key tokens must be masked (their LN'd rows are non-zero-weight otherwise)
    key_mask = lax.broadcasted_iota(jnp.int32, (1, 1, N_PAD), 2) < NUM_TOKENS

    for d in range(DEPTH):                                       # static unroll over blocks
        # ---- attention: LN1 -> QKV -> per-head softmax(QK^T)V (batched over B) ----
        xn = _layernorm(x, ln1_g_ref[d], ln1_b_ref[d])
        qkv = (jnp.dot(xn.astype(jnp.bfloat16), qkv_w_ref[d],
                       preferred_element_type=jnp.float32) + qkv_b_ref[d])   # [48, 96]
        qkv = qkv.reshape(B, N_PAD, 3 * EMBED)

        heads = []
        for h in range(HEADS):                                   # static unroll over heads
            lo, hi = h * HEAD_DIM, (h + 1) * HEAD_DIM
            q_h = qkv[:, :, lo:hi].astype(jnp.bfloat16)          # 1/sqrt(d) baked into W_q
            k_h = qkv[:, :, EMBED + lo:EMBED + hi].astype(jnp.bfloat16)
            v_h = qkv[:, :, 2 * EMBED + lo:2 * EMBED + hi].astype(jnp.bfloat16)

            s = jnp.einsum('bqd,bkd->bqk', q_h, k_h,
                           preferred_element_type=jnp.float32)   # [B, 24, 24]
            s = jnp.where(key_mask, s, jnp.float32(-1e30))
            m = jnp.max(s, axis=-1, keepdims=True)
            p = jnp.exp(s - m)
            p = p * pl.reciprocal(jnp.sum(p, axis=-1, keepdims=True), approx=True)
            heads.append(jnp.einsum('bqk,bkd->bqd', p.astype(jnp.bfloat16), v_h,
                                    preferred_element_type=jnp.float32))     # [B, 24, 8]

        # single K=32 output projection instead of 4 K=8 folds
        attn = jnp.concatenate(heads, axis=-1).reshape(B * N_PAD, EMBED)
        attn = (jnp.dot(attn.astype(jnp.bfloat16), proj_w_ref[d],
                        preferred_element_type=jnp.float32) + proj_b_ref[d])
        x = x + attn                                             # residual

        # ---- MLP: LN2 -> FC1 -> GELU -> FC2 -> residual ----
        xn2 = _layernorm(x, ln2_g_ref[d], ln2_b_ref[d])
        h1 = (jnp.dot(xn2.astype(jnp.bfloat16), fc1_w_ref[d],
                      preferred_element_type=jnp.float32) + fc1_b_ref[d])
        h1 = _gelu_tanh(h1)
        y = (jnp.dot(h1.astype(jnp.bfloat16), fc2_w_ref[d],
                     preferred_element_type=jnp.float32) + fc2_b_ref[d])
        x = x + y

    # ---- final LayerNorm, written once ----
    out_ref[...] = _layernorm(x, norm_g_ref[...], norm_b_ref[...]).reshape(B, N_PAD, EMBED)


# ----------------------------- parameters -----------------------------
def init_params(key):
    def nrm(k, shape, std=0.02):
        return (std * jax.random.normal(k, shape)).astype(jnp.float32)

    keys = list(jax.random.split(key, 3 + 4 * DEPTH))
    it = iter(keys)

    patch_w = nrm(next(it), (PATCH_DIM, EMBED))
    cls = nrm(next(it), (1, EMBED))
    pos = nrm(next(it), (NUM_TOKENS, EMBED))

    qkv_w, proj_w, fc1_w, fc2_w = [], [], [], []
    for _ in range(DEPTH):
        w = nrm(next(it), (EMBED, 3 * EMBED))
        # One-time parameter transform: bake the attention scale into the Q columns
        # (qkv bias is zero here; it would be scaled identically otherwise).
        w = w.at[:, :EMBED].multiply(ATTN_SCALE)
        qkv_w.append(w.astype(jnp.bfloat16))
        proj_w.append(nrm(next(it), (EMBED, EMBED)).astype(jnp.bfloat16))
        fc1_w.append(nrm(next(it), (EMBED, MLP_HIDDEN)).astype(jnp.bfloat16))
        fc2_w.append(nrm(next(it), (MLP_HIDDEN, EMBED)).astype(jnp.bfloat16))

    return {
        # conv PxP/sP == linear over flattened (C,P,P) patches; MXU operands in bf16
        "patch_w": patch_w.astype(jnp.bfloat16),
        "patch_b": jnp.zeros((1, EMBED), jnp.float32),
        # one-time transform: cls token pre-combined with its positional embedding
        "cls_pos0": (cls + pos[0:1]).reshape(1, 1, EMBED),
        "pos_body": pos[1:],                                     # [NUM_PATCHES, EMBED]
        # per-block params stacked on a leading depth axis (static slice inside kernel)
        "ln1_g": jnp.ones((DEPTH, 1, EMBED), jnp.float32),
        "ln1_b": jnp.zeros((DEPTH, 1, EMBED), jnp.float32),
        "qkv_w": jnp.stack(qkv_w),
        "qkv_b": jnp.zeros((DEPTH, 1, 3 * EMBED), jnp.float32),
        "proj_w": jnp.stack(proj_w),
        "proj_b": jnp.zeros((DEPTH, 1, EMBED), jnp.float32),
        "ln2_g": jnp.ones((DEPTH, 1, EMBED), jnp.float32),
        "ln2_b": jnp.zeros((DEPTH, 1, EMBED), jnp.float32),
        "fc1_w": jnp.stack(fc1_w),
        "fc1_b": jnp.zeros((DEPTH, 1, MLP_HIDDEN), jnp.float32),
        "fc2_w": jnp.stack(fc2_w),
        "fc2_b": jnp.zeros((DEPTH, 1, EMBED), jnp.float32),
        "norm_g": jnp.ones((1, EMBED), jnp.float32),
        "norm_b": jnp.zeros((1, EMBED), jnp.float32),
    }


# ----------------------------- forward_features -----------------------------
def vit_forward_features(params, x):
    """x: [B, C, H, W] (NCHW) float32 -> [B, NUM_TOKENS, EMBED]."""
    B, C, H, W = x.shape
    P = PATCH
    nh, nw = H // P, W // P

    # Patch extraction: non-overlapping PxP conv == linear over flattened (C,P,P) patches.
    # TODO(synk): at real ViT-Base scale fuse this transpose into the kernel via an
    # index_map / strided DMA instead of materializing it in XLA.
    patches = (x.reshape(B, C, nh, P, nw, P)
                 .transpose(0, 2, 4, 1, 3, 5)
                 .reshape(B * nh * nw, C * P * P))

    out_padded = pl.pallas_call(
        _vit_kernel,
        out_shape=jax.ShapeDtypeStruct((B, N_PAD, EMBED), jnp.float32),
    )(patches,
      params["patch_w"], params["patch_b"], params["cls_pos0"], params["pos_body"],
      params["ln1_g"], params["ln1_b"], params["qkv_w"], params["qkv_b"],
      params["proj_w"], params["proj_b"], params["ln2_g"], params["ln2_b"],
      params["fc1_w"], params["fc1_b"], params["fc2_w"], params["fc2_b"],
      params["norm_g"], params["norm_b"])

    # timm forward_features returns all tokens [B, N, D]; drop the padded rows.
    return out_padded[:, :NUM_TOKENS, :]


# ----------------------------- main -----------------------------
if __name__ == "__main__":
    key = jax.random.PRNGKey(0)
    pkey, xkey = jax.random.split(key)
    params = init_params(pkey)
    x = jax.random.normal(xkey, (BATCH, IN_CH, IMG, IMG), dtype=jnp.float32)

    fwd = jax.jit(vit_forward_features)
    out = jax.block_until_ready(fwd(params, x))
    assert out.shape == (BATCH, NUM_TOKENS, EMBED), out.shape
    assert jnp.all(jnp.isfinite(out))
    print("KERNEL_OK")
</pallas_src>

<mosaic_0001>
module attributes {stable_mosaic.version = 11 : i64} {
  func.func @_vit_kernel(%arg0: memref<32x192xf32, #tpu.memory_space<vmem>>, %arg1: memref<192x32xbf16, #tpu.memory_space<vmem>>, %arg2: memref<1x32xf32, #tpu.memory_space<vmem>>, %arg3: memref<1x1x32xf32, #tpu.memory_space<vmem>>, %arg4: memref<16x32xf32, #tpu.memory_space<vmem>>, %arg5: memref<2x1x32xf32, #tpu.memory_space<vmem>>, %arg6: memref<2x1x32xf32, #tpu.memory_space<vmem>>, %arg7: memref<2x32x96xbf16, #tpu.memory_space<vmem>>, %arg8: memref<2x1x96xf32, #tpu.memory_space<vmem>>, %arg9: memref<2x32x32xbf16, #tpu.memory_space<vmem>>, %arg10: memref<2x1x32xf32, #tpu.memory_space<vmem>>, %arg11: memref<2x1x32xf32, #tpu.memory_space<vmem>>, %arg12: memref<2x1x32xf32, #tpu.memory_space<vmem>>, %arg13: memref<2x32x128xbf16, #tpu.memory_space<vmem>>, %arg14: memref<2x1x128xf32, #tpu.memory_space<vmem>>, %arg15: memref<2x128x32xbf16, #tpu.memory_space<vmem>>, %arg16: memref<2x1x32xf32, #tpu.memory_space<vmem>>, %arg17: memref<1x32xf32, #tpu.memory_space<vmem>>, %arg18: memref<1x32xf32, #tpu.memory_space<vmem>>, %arg19: memref<2x24x32xf32, #tpu.memory_space<vmem>>) attributes {dimension_semantics = [], scalar_prefetch = 0 : i64, scratch_operands = 0 : i64, tpu.core_type = #tpu.core_type<tc>} {
    %c0 = arith.constant 0 : index
    %c0_0 = arith.constant 0 : index
    %0 = vector.load %arg0[%c0, %c0_0] : memref<32x192xf32, #tpu.memory_space<vmem>>, vector<32x192xf32>
    %1 = arith.truncf %0 : vector<32x192xf32> to vector<32x192xbf16>
    %c0_1 = arith.constant 0 : index
    %c0_2 = arith.constant 0 : index
    %2 = vector.load %arg1[%c0_1, %c0_2] : memref<192x32xbf16, #tpu.memory_space<vmem>>, vector<192x32xbf16>
    %cst = arith.constant dense<0.000000e+00> : vector<32x32xf32>
    %3 = tpu.matmul %1, %2, %cst {dimension_numbers = #tpu.dot_dimension_numbers<[1], [0], [0], [1], [0, 0, 1, 1], [], []>} : vector<32x192xbf16>, vector<192x32xbf16>, vector<32x32xf32> -> vector<32x32xf32>
    %c0_3 = arith.constant 0 : index
    %c0_4 = arith.constant 0 : index
    %4 = vector.load %arg2[%c0_3, %c0_4] : memref<1x32xf32, #tpu.memory_space<vmem>>, vector<1x32xf32>
    %5 = vector.broadcast %4 : vector<1x32xf32> to vector<32x32xf32>
    %6 = arith.addf %3, %5 : vector<32x32xf32>
    %cst_5 = arith.constant 0.000000e+00 : f32
    %7 = vector.broadcast %cst_5 : f32 to vector<2x24x32xf32>
    %c0_6 = arith.constant 0 : index
    %c0_7 = arith.constant 0 : index
    %c0_8 = arith.constant 0 : index
    %8 = vector.load %arg19[%c0_6, %c0_7, %c0_8] : memref<2x24x32xf32, #tpu.memory_space<vmem>>, vector<2x24x32xf32>
    tpu.vector_store %arg19[%c0_6, %c0_7, %c0_8], %7 {strides = array<i32>} : memref<2x24x32xf32, #tpu.memory_space<vmem>>, vector<2x24x32xf32>,
    %c0_9 = arith.constant 0 : index
    %c0_10 = arith.constant 0 : index
    %c0_11 = arith.constant 0 : index
    %9 = vector.load %arg3[%c0_9, %c0_10, %c0_11] : memref<1x1x32xf32, #tpu.memory_space<vmem>>, vector<1x1x32xf32>
    %10 = vector.shape_cast %9 : vector<1x1x32xf32> to vector<1x1x32xf32>
    %11 = vector.broadcast %10 : vector<1x1x32xf32> to vector<2x1x32xf32>
    %c0_12 = arith.constant 0 : index
    %c0_13 = arith.constant 0 : index
    %c0_14 = arith.constant 0 : index
    %12 = vector.load %arg19[%c0_12, %c0_13, %c0_14] : memref<2x24x32xf32, #tpu.memory_space<vmem>>, vector<2x1x32xf32>
    tpu.vector_store %arg19[%c0_12, %c0_13, %c0_14], %11 {strides = array<i32>} : memref<2x24x32xf32, #tpu.memory_space<vmem>>, vector<2x1x32xf32>,
    %13 = vector.shape_cast %6 : vector<32x32xf32> to vector<2x16x32xf32>
    %c0_15 = arith.constant 0 : index
    %c0_16 = arith.constant 0 : index
    %14 = vector.load %arg4[%c0_15, %c0_16] : memref<16x32xf32, #tpu.memory_space<vmem>>, vector<16x32xf32>
    %15 = vector.shape_cast %14 : vector<16x32xf32> to vector<1x16x32xf32>
    %16 = vector.broadcast %15 : vector<1x16x32xf32> to vector<2x16x32xf32>
    %17 = arith.addf %13, %16 : vector<2x16x32xf32>
    %c0_17 = arith.constant 0 : index
    %c1 = arith.constant 1 : index
    %c0_18 = arith.constant 0 : index
    %18 = vector.load %arg19[%c0_17, %c1, %c0_18] : memref<2x24x32xf32, #tpu.memory_space<vmem>>, vector<2x16x32xf32>
    tpu.vector_store %arg19[%c0_17, %c1, %c0_18], %17 {strides = array<i32>} : memref<2x24x32xf32, #tpu.memory_space<vmem>>, vector<2x16x32xf32>,
    %c0_19 = arith.constant 0 : index
    %c0_20 = arith.constant 0 : index
    %c0_21 = arith.constant 0 : index
    %19 = vector.load %arg19[%c0_19, %c0_20, %c0_21] : memref<2x24x32xf32, #tpu.memory_space<vmem>>, vector<2x24x32xf32>
    %20 = vector.shape_cast %19 : vector<2x24x32xf32> to vector<48x32xf32>
    %21 = tpu.iota {dimensions = array<i32: 2>} : vector<1x1x24xi32>
    %c17_i32 = arith.constant 17 : i32
    %22 = vector.broadcast %c17_i32 : i32 to vector<1x1x24xi32>
    %23 = arith.cmpi slt, %21, %22 : vector<1x1x24xi32>
    %c0_22 = arith.constant 0 : index
    %c0_23 = arith.constant 0 : index
    %c0_24 = arith.constant 0 : index
    %24 = vector.load %arg5[%c0_22, %c0_23, %c0_24] : memref<2x1x32xf32, #tpu.memory_space<vmem>>, vector<1x1x32xf32>
    %25 = vector.shape_cast %24 : vector<1x1x32xf32> to vector<1x32xf32>
    %c0_25 = arith.constant 0 : index
    %c0_26 = arith.constant 0 : index
    %c0_27 = arith.constant 0 : index
    %26 = vector.load %arg6[%c0_25, %c0_26, %c0_27] : memref<2x1x32xf32, #tpu.memory_space<vmem>>, vector<1x1x32xf32>
    %27 = vector.shape_cast %26 : vector<1x1x32xf32> to vector<1x32xf32>
    %cst_28 = arith.constant dense<0.000000e+00> : vector<48xf32>
    %28 = vector.multi_reduction <add>, %20, %cst_28 [1] : vector<48x32xf32> to vector<48xf32>
    %29 = vector.shape_cast %28 : vector<48xf32> to vector<48x1xf32>
    %cst_29 = arith.constant 3.200000e+01 : f32
    %30 = vector.broadcast %cst_29 : f32 to vector<48x1xf32>
    %31 = arith.divf %29, %30 : vector<48x1xf32>
    %32 = vector.broadcast %31 : vector<48x1xf32> to vector<48x32xf32>
    %33 = arith.subf %20, %32 : vector<48x32xf32>
    %34 = arith.mulf %33, %33 : vector<48x32xf32>
    %cst_30 = arith.constant dense<0.000000e+00> : vector<48xf32>
    %35 = vector.multi_reduction <add>, %34, %cst_30 [1] : vector<48x32xf32> to vector<48xf32>
    %36 = vector.shape_cast %35 : vector<48xf32> to vector<48x1xf32>
    %cst_31 = arith.constant 3.200000e+01 : f32
    %37 = vector.broadcast %cst_31 : f32 to vector<48x1xf32>
    %38 = arith.divf %36, %37 : vector<48x1xf32>
    %cst_32 = arith.constant 9.99999997E-7 : f32
    %39 = vector.broadcast %cst_32 : f32 to vector<48x1xf32>
    %40 = arith.addf %38, %39 : vector<48x1xf32>
    %41 = math.rsqrt %40 : vector<48x1xf32>
    %42 = vector.broadcast %31 : vector<48x1xf32> to vector<48x32xf32>
    %43 = arith.subf %20, %42 : vector<48x32xf32>
    %44 = vector.broadcast %41 : vector<48x1xf32> to vector<48x32xf32>
    %45 = arith.mulf %43, %44 : vector<48x32xf32>
    %46 = vector.broadcast %25 : vector<1x32xf32> to vector<48x32xf32>
    %47 = arith.mulf %45, %46 : vector<48x32xf32>
    %48 = vector.broadcast %27 : vector<1x32xf32> to vector<48x32xf32>
    %49 = arith.addf %47, %48 : vector<48x32xf32>
    %50 = arith.truncf %49 : vector<48x32xf32> to vector<48x32xbf16>
    %c0_33 = arith.constant 0 : index
    %c0_34 = arith.constant 0 : index
    %c0_35 = arith.constant 0 : index
    %51 = vector.load %arg7[%c0_33, %c0_34, %c0_35] : memref<2x32x96xbf16, #tpu.memory_space<vmem>>, vector<1x32x96xbf16>
    %52 = vector.shape_cast %51 : vector<1x32x96xbf16> to vector<32x96xbf16>
    %cst_36 = arith.constant dense<0.000000e+00> : vector<48x96xf32>
    %53 = tpu.matmul %50, %52, %cst_36 {dimension_numbers = #tpu.dot_dimension_numbers<[1], [0], [0], [1], [0, 0, 1, 1], [], []>} : vector<48x32xbf16>, vector<32x96xbf16>, vector<48x96xf32> -> vector<48x96xf32>
    %c0_37 = arith.constant 0 : index
    %c0_38 = arith.constant 0 : index
    %c0_39 = arith.constant 0 : index
    %54 = vector.load %arg8[%c0_37, %c0_38, %c0_39] : memref<2x1x96xf32, #tpu.memory_space<vmem>>, vector<1x1x96xf32>
    %55 = vector.shape_cast %54 : vector<1x1x96xf32> to vector<1x96xf32>
    %56 = vector.broadcast %55 : vector<1x96xf32> to vector<48x96xf32>
    %57 = arith.addf %53, %56 : vector<48x96xf32>
    %58 = vector.shape_cast %57 : vector<48x96xf32> to vector<2x24x96xf32>
    %59 = vector.extract_strided_slice %58 {offsets = [0, 0, 0], sizes = [2, 24, 8], strides = [1, 1, 1]} : vector<2x24x96xf32> to vector<2x24x8xf32>
    %60 = arith.truncf %59 : vector<2x24x8xf32> to vector<2x24x8xbf16>
    %61 = vector.extract_strided_slice %58 {offsets = [0, 0, 32], sizes = [2, 24, 8], strides = [1, 1, 1]} : vector<2x24x96xf32> to vector<2x24x8xf32>
    %62 = arith.truncf %61 : vector<2x24x8xf32> to vector<2x24x8xbf16>
    %63 = vector.extract_strided_slice %58 {offsets = [0, 0, 64], sizes = [2, 24, 8], strides = [1, 1, 1]} : vector<2x24x96xf32> to vector<2x24x8xf32>
    %64 = arith.truncf %63 : vector<2x24x8xf32> to vector<2x24x8xbf16>
    "tpu.trace_start"() <{level = 10 : i32, message = "bqd,bkd->bqk"}> : () -> ()
    %cst_40 = arith.constant dense<0.000000e+00> : vector<2x24x24xf32>
    %65 = tpu.matmul %60, %62, %cst_40 {dimension_numbers = #tpu.dot_dimension_numbers<[2], [2], [1], [1], [0, 0, 0, 1, 1, 1], [0], [0]>} : vector<2x24x8xbf16>, vector<2x24x8xbf16>, vector<2x24x24xf32> -> vector<2x24x24xf32>
    %cst_41 = arith.constant -1.000000e+30 : f32
    "tpu.trace_stop"() : () -> ()
    %66 = vector.shape_cast %23 : vector<1x1x24xi1> to vector<1x1x24xi1>
    %67 = vector.broadcast %66 : vector<1x1x24xi1> to vector<2x24x24xi1>
    %68 = vector.broadcast %cst_41 : f32 to vector<2x24x24xf32>
    %69 = arith.select %67, %65, %68 : vector<2x24x24xi1>, vector<2x24x24xf32>
    %cst_42 = arith.constant dense<0xFF800000> : vector<2x24xf32>
    %70 = vector.multi_reduction <maximumf>, %69, %cst_42 [2] : vector<2x24x24xf32> to vector<2x24xf32>
    %71 = vector.shape_cast %70 : vector<2x24xf32> to vector<2x24x1xf32>
    %72 = vector.broadcast %71 : vector<2x24x1xf32> to vector<2x24x24xf32>
    %73 = arith.subf %69, %72 : vector<2x24x24xf32>
    %74 = math.exp %73 : vector<2x24x24xf32>
    %cst_43 = arith.constant dense<0.000000e+00> : vector<2x24xf32>
    %75 = vector.multi_reduction <add>, %74, %cst_43 [2] : vector<2x24x24xf32> to vector<2x24xf32>
    %76 = vector.shape_cast %75 : vector<2x24xf32> to vector<2x24x1xf32>
    %77 = tpu.reciprocal %76 {approx = true} : vector<2x24x1xf32> -> vector<2x24x1xf32>
    %78 = vector.broadcast %77 : vector<2x24x1xf32> to vector<2x24x24xf32>
    %79 = arith.mulf %74, %78 : vector<2x24x24xf32>
    %80 = arith.truncf %79 : vector<2x24x24xf32> to vector<2x24x24xbf16>
    "tpu.trace_start"() <{level = 10 : i32, message = "bqk,bkd->bqd"}> : () -> ()
    %cst_44 = arith.constant dense<0.000000e+00> : vector<2x24x8xf32>
    %81 = tpu.matmul %80, %64, %cst_44 {dimension_numbers = #tpu.dot_dimension_numbers<[2], [1], [1], [2], [0, 0, 0, 1, 1, 2], [0], [0]>} : vector<2x24x24xbf16>, vector<2x24x8xbf16>, vector<2x24x8xf32> -> vector<2x24x8xf32>
    "tpu.trace_stop"() : () -> ()
    %82 = vector.extract_strided_slice %58 {offsets = [0, 0, 8], sizes = [2, 24, 8], strides = [1, 1, 1]} : vector<2x24x96xf32> to vector<2x24x8xf32>
    %83 = arith.truncf %82 : vector<2x24x8xf32> to vector<2x24x8xbf16>
    %84 = vector.extract_strided_slice %58 {offsets = [0, 0, 40], sizes = [2, 24, 8], strides = [1, 1, 1]} : vector<2x24x96xf32> to vector<2x24x8xf32>
    %85 = arith.truncf %84 : vector<2x24x8xf32> to vector<2x24x8xbf16>
    %86 = vector.extract_strided_slice %58 {offsets = [0, 0, 72], sizes = [2, 24, 8], strides = [1, 1, 1]} : vector<2x24x96xf32> to vector<2x24x8xf32>
    %87 = arith.truncf %86 : vector<2x24x8xf32> to vector<2x24x8xbf16>
    "tpu.trace_start"() <{level = 10 : i32, message = "bqd,bkd->bqk"}> : () -> ()
    %cst_45 = arith.constant dense<0.000000e+00> : vector<2x24x24xf32>
    %88 = tpu.matmul %83, %85, %cst_45 {dimension_numbers = #tpu.dot_dimension_numbers<[2], [2], [1], [1], [0, 0, 0, 1, 1, 1], [0], [0]>} : vector<2x24x8xbf16>, vector<2x24x8xbf16>, vector<2x24x24xf32> -> vector<2x24x24xf32>
    %cst_46 = arith.constant -1.000000e+30 : f32
    "tpu.trace_stop"() : () -> ()
    %89 = vector.shape_cast %23 : vector<1x1x24xi1> to vector<1x1x24xi1>
    %90 = vector.broadcast %89 : vector<1x1x24xi1> to vector<2x24x24xi1>
    %91 = vector.broadcast %cst_46 : f32 to vector<2x24x24xf32>
    %92 = arith.select %90, %88, %91 : vector<2x24x24xi1>, vector<2x24x24xf32>
    %cst_47 = arith.constant dense<0xFF800000> : vector<2x24xf32>
    %93 = vector.multi_reduction <maximumf>, %92, %cst_47 [2] : vector<2x24x24xf32> to vector<2x24xf32>
    %94 = vector.shape_cast %93 : vector<2x24xf32> to vector<2x24x1xf32>
    %95 = vector.broadcast %94 : vector<2x24x1xf32> to vector<2x24x24xf32>
    %96 = arith.subf %92, %95 : vector<2x24x24xf32>
    %97 = math.exp %96 : vector<2x24x24xf32>
    %cst_48 = arith.constant dense<0.000000e+00> : vector<2x24xf32>
    %98 = vector.multi_reduction <add>, %97, %cst_48 [2] : vector<2x24x24xf32> to vector<2x24xf32>
    %99 = vector.shape_cast %98 : vector<2x24xf32> to vector<2x24x1xf32>
    %100 = tpu.reciprocal %99 {approx = true} : vector<2x24x1xf32> -> vector<2x24x1xf32>
    %101 = vector.broadcast %100 : vector<2x24x1xf32> to vector<2x24x24xf32>
    %102 = arith.mulf %97, %101 : vector<2x24x24xf32>
    %103 = arith.truncf %102 : vector<2x24x24xf32> to vector<2x24x24xbf16>
    "tpu.trace_start"() <{level = 10 : i32, message = "bqk,bkd->bqd"}> : () -> ()
    %cst_49 = arith.constant dense<0.000000e+00> : vector<2x24x8xf32>
    %104 = tpu.matmul %103, %87, %cst_49 {dimension_numbers = #tpu.dot_dimension_numbers<[2], [1], [1], [2], [0, 0, 0, 1, 1, 2], [0], [0]>} : vector<2x24x24xbf16>, vector<2x24x8xbf16>, vector<2x24x8xf32> -> vector<2x24x8xf32>
    "tpu.trace_stop"() : () -> ()
    %105 = vector.extract_strided_slice %58 {offsets = [0, 0, 16], sizes = [2, 24, 8], strides = [1, 1, 1]} : vector<2x24x96xf32> to vector<2x24x8xf32>
    %106 = arith.truncf %105 : vector<2x24x8xf32> to vector<2x24x8xbf16>
    %107 = vector.extract_strided_slice %58 {offsets = [0, 0, 48], sizes = [2, 24, 8], strides = [1, 1, 1]} : vector<2x24x96xf32> to vector<2x24x8xf32>
    %108 = arith.truncf %107 : vector<2x24x8xf32> to vector<2x24x8xbf16>
    %109 = vector.extract_strided_slice %58 {offsets = [0, 0, 80], sizes = [2, 24, 8], strides = [1, 1, 1]} : vector<2x24x96xf32> to vector<2x24x8xf32>
    %110 = arith.truncf %109 : vector<2x24x8xf32> to vector<2x24x8xbf16>
    "tpu.trace_start"() <{level = 10 : i32, message = "bqd,bkd->bqk"}> : () -> ()
    %cst_50 = arith.constant dense<0.000000e+00> : vector<2x24x24xf32>
    %111 = tpu.matmul %106, %108, %cst_50 {dimension_numbers = #tpu.dot_dimension_numbers<[2], [2], [1], [1], [0, 0, 0, 1, 1, 1], [0], [0]>} : vector<2x24x8xbf16>, vector<2x24x8xbf16>, vector<2x24x24xf32> -> vector<2x24x24xf32>
    %cst_51 = arith.constant -1.000000e+30 : f32
    "tpu.trace_stop"() : () -> ()
    %112 = vector.shape_cast %23 : vector<1x1x24xi1> to vector<1x1x24xi1>
    %113 = vector.broadcast %112 : vector<1x1x24xi1> to vector<2x24x24xi1>
    %114 = vector.broadcast %cst_51 : f32 to vector<2x24x24xf32>
    %115 = arith.select %113, %111, %114 : vector<2x24x24xi1>, vector<2x24x24xf32>
    %cst_52 = arith.constant dense<0xFF800000> : vector<2x24xf32>
    %116 = vector.multi_reduction <maximumf>, %115, %cst_52 [2] : vector<2x24x24xf32> to vector<2x24xf32>
    %117 = vector.shape_cast %116 : vector<2x24xf32> to vector<2x24x1xf32>
    %118 = vector.broadcast %117 : vector<2x24x1xf32> to vector<2x24x24xf32>
    %119 = arith.subf %115, %118 : vector<2x24x24xf32>
    %120 = math.exp %119 : vector<2x24x24xf32>
    %cst_53 = arith.constant dense<0.000000e+00> : vector<2x24xf32>
    %121 = vector.multi_reduction <add>, %120, %cst_53 [2] : vector<2x24x24xf32> to vector<2x24xf32>
    %122 = vector.shape_cast %121 : vector<2x24xf32> to vector<2x24x1xf32>
    %123 = tpu.reciprocal %122 {approx = true} : vector<2x24x1xf32> -> vector<2x24x1xf32>
    %124 = vector.broadcast %123 : vector<2x24x1xf32> to vector<2x24x24xf32>
    %125 = arith.mulf %120, %124 : vector<2x24x24xf32>
    %126 = arith.truncf %125 : vector<2x24x24xf32> to vector<2x24x24xbf16>
    "tpu.trace_start"() <{level = 10 : i32, message = "bqk,bkd->bqd"}> : () -> ()
    %cst_54 = arith.constant dense<0.000000e+00> : vector<2x24x8xf32>
    %127 = tpu.matmul %126, %110, %cst_54 {dimension_numbers = #tpu.dot_dimension_numbers<[2], [1], [1], [2], [0, 0, 0, 1, 1, 2], [0], [0]>} : vector<2x24x24xbf16>, vector<2x24x8xbf16>, vector<2x24x8xf32> -> vector<2x24x8xf32>
    "tpu.trace_stop"() : () -> ()
    %128 = vector.extract_strided_slice %58 {offsets = [0, 0, 24], sizes = [2, 24, 8], strides = [1, 1, 1]} : vector<2x24x96xf32> to vector<2x24x8xf32>
    %129 = arith.truncf %128 : vector<2x24x8xf32> to vector<2x24x8xbf16>
    %130 = vector.extract_strided_slice %58 {offsets = [0, 0, 56], sizes = [2, 24, 8], strides = [1, 1, 1]} : vector<2x24x96xf32> to vector<2x24x8xf32>
    %131 = arith.truncf %130 : vector<2x24x8xf32> to vector<2x24x8xbf16>
    %132 = vector.extract_strided_slice %58 {offsets = [0, 0, 88], sizes = [2, 24, 8], strides = [1, 1, 1]} : vector<2x24x96xf32> to vector<2x24x8xf32>
    %133 = arith.truncf %132 : vector<2x24x8xf32> to vector<2x24x8xbf16>
    "tpu.trace_start"() <{level = 10 : i32, message = "bqd,bkd->bqk"}> : () -> ()
    %cst_55 = arith.constant dense<0.000000e+00> : vector<2x24x24xf32>
    %134 = tpu.matmul %129, %131, %cst_55 {dimension_numbers = #tpu.dot_dimension_numbers<[2], [2], [1], [1], [0, 0, 0, 1, 1, 1], [0], [0]>} : vector<2x24x8xbf16>, vector<2x24x8xbf16>, vector<2x24x24xf32> -> vector<2x24x24xf32>
    %cst_56 = arith.constant -1.000000e+30 : f32
    "tpu.trace_stop"() : () -> ()
    %135 = vector.shape_cast %23 : vector<1x1x24xi1> to vector<1x1x24xi1>
    %136 = vector.broadcast %135 : vector<1x1x24xi1> to vector<2x24x24xi1>
    %137 = vector.broadcast %cst_56 : f32 to vector<2x24x24xf32>
    %138 = arith.select %136, %134, %137 : vector<2x24x24xi1>, vector<2x24x24xf32>
    %cst_57 = arith.constant dense<0xFF800000> : vector<2x24xf32>
    %139 = vector.multi_reduction <maximumf>, %138, %cst_57 [2] : vector<2x24x24xf32> to vector<2x24xf32>
    %140 = vector.shape_cast %139 : vector<2x24xf32> to vector<2x24x1xf32>
    %141 = vector.broadcast %140 : vector<2x24x1xf32> to vector<2x24x24xf32>
    %142 = arith.subf %138, %141 : vector<2x24x24xf32>
    %143 = math.exp %142 : vector<2x24x24xf32>
    %cst_58 = arith.constant dense<0.000000e+00> : vector<2x24xf32>
    %144 = vector.multi_reduction <add>, %143, %cst_58 [2] : vector<2x24x24xf32> to vector<2x24xf32>
    %145 = vector.shape_cast %144 : vector<2x24xf32> to vector<2x24x1xf32>
    %146 = tpu.reciprocal %145 {approx = true} : vector<2x24x1xf32> -> vector<2x24x1xf32>
    %147 = vector.broadcast %146 : vector<2x24x1xf32> to vector<2x24x24xf32>
    %148 = arith.mulf %143, %147 : vector<2x24x24xf32>
    %149 = arith.truncf %148 : vector<2x24x24xf32> to vector<2x24x24xbf16>
    "tpu.trace_start"() <{level = 10 : i32, message = "bqk,bkd->bqd"}> : () -> ()
    %cst_59 = arith.constant dense<0.000000e+00> : vector<2x24x8xf32>
    %150 = tpu.matmul %149, %133, %cst_59 {dimension_numbers = #tpu.dot_dimension_numbers<[2], [1], [1], [2], [0, 0, 0, 1, 1, 2], [0], [0]>} : vector<2x24x24xbf16>, vector<2x24x8xbf16>, vector<2x24x8xf32> -> vector<2x24x8xf32>
    "tpu.trace_stop"() : () -> ()
    %151 = tpu.concatenate %81, %104, %127, %150 in 2 : vector<2x24x8xf32>, vector<2x24x8xf32>, vector<2x24x8xf32>, vector<2x24x8xf32> -> vector<2x24x32xf32>
    %152 = vector.shape_cast %151 : vector<2x24x32xf32> to vector<48x32xf32>
    %153 = arith.truncf %152 : vector<48x32xf32> to vector<48x32xbf16>
    %c0_60 = arith.constant 0 : index
    %c0_61 = arith.constant 0 : index
    %c0_62 = arith.constant 0 : index
    %154 = vector.load %arg9[%c0_60, %c0_61, %c0_62] : memref<2x32x32xbf16, #tpu.memory_space<vmem>>, vector<1x32x32xbf16>
    %155 = vector.shape_cast %154 : vector<1x32x32xbf16> to vector<32x32xbf16>
    %cst_63 = arith.constant dense<0.000000e+00> : vector<48x32xf32>
    %156 = tpu.matmul %153, %155, %cst_63 {dimension_numbers = #tpu.dot_dimension_numbers<[1], [0], [0], [1], [0, 0, 1, 1], [], []>} : vector<48x32xbf16>, vector<32x32xbf16>, vector<48x32xf32> -> vector<48x32xf32>
    %c0_64 = arith.constant 0 : index
    %c0_65 = arith.constant 0 : index
    %c0_66 = arith.constant 0 : index
    %157 = vector.load %arg10[%c0_64, %c0_65, %c0_66] : memref<2x1x32xf32, #tpu.memory_space<vmem>>, vector<1x1x32xf32>
    %158 = vector.shape_cast %157 : vector<1x1x32xf32> to vector<1x32xf32>
    %159 = vector.broadcast %158 : vector<1x32xf32> to vector<48x32xf32>
    %160 = arith.addf %156, %159 : vector<48x32xf32>
    %161 = arith.addf %20, %160 : vector<48x32xf32>
    %c0_67 = arith.constant 0 : index
    %c0_68 = arith.constant 0 : index
    %c0_69 = arith.constant 0 : index
    %162 = vector.load %arg11[%c0_67, %c0_68, %c0_69] : memref<2x1x32xf32, #tpu.memory_space<vmem>>, vector<1x1x32xf32>
    %163 = vector.shape_cast %162 : vector<1x1x32xf32> to vector<1x32xf32>
    %c0_70 = arith.constant 0 : index
    %c0_71 = arith.constant 0 : index
    %c0_72 = arith.constant 0 : index
    %164 = vector.load %arg12[%c0_70, %c0_71, %c0_72] : memref<2x1x32xf32, #tpu.memory_space<vmem>>, vector<1x1x32xf32>
    %165 = vector.shape_cast %164 : vector<1x1x32xf32> to vector<1x32xf32>
    %cst_73 = arith.constant dense<0.000000e+00> : vector<48xf32>
    %166 = vector.multi_reduction <add>, %161, %cst_73 [1] : vector<48x32xf32> to vector<48xf32>
    %167 = vector.shape_cast %166 : vector<48xf32> to vector<48x1xf32>
    %cst_74 = arith.constant 3.200000e+01 : f32
    %168 = vector.broadcast %cst_74 : f32 to vector<48x1xf32>
    %169 = arith.divf %167, %168 : vector<48x1xf32>
    %170 = vector.broadcast %169 : vector<48x1xf32> to vector<48x32xf32>
    %171 = arith.subf %161, %170 : vector<48x32xf32>
    %172 = arith.mulf %171, %171 : vector<48x32xf32>
    %cst_75 = arith.constant dense<0.000000e+00> : vector<48xf32>
    %173 = vector.multi_reduction <add>, %172, %cst_75 [1] : vector<48x32xf32> to vector<48xf32>
    %174 = vector.shape_cast %173 : vector<48xf32> to vector<48x1xf32>
    %cst_76 = arith.constant 3.200000e+01 : f32
    %175 = vector.broadcast %cst_76 : f32 to vector<48x1xf32>
    %176 = arith.divf %174, %175 : vector<48x1xf32>
    %cst_77 = arith.constant 9.99999997E-7 : f32
    %177 = vector.broadcast %cst_77 : f32 to vector<48x1xf32>
    %178 = arith.addf %176, %177 : vector<48x1xf32>
    %179 = math.rsqrt %178 : vector<48x1xf32>
    %180 = vector.broadcast %169 : vector<48x1xf32> to vector<48x32xf32>
    %181 = arith.subf %161, %180 : vector<48x32xf32>
    %182 = vector.broadcast %179 : vector<48x1xf32> to vector<48x32xf32>
    %183 = arith.mulf %181, %182 : vector<48x32xf32>
    %184 = vector.broadcast %163 : vector<1x32xf32> to vector<48x32xf32>
    %185 = arith.mulf %183, %184 : vector<48x32xf32>
    %186 = vector.broadcast %165 : vector<1x32xf32> to vector<48x32xf32>
    %187 = arith.addf %185, %186 : vector<48x32xf32>
    %188 = arith.truncf %187 : vector<48x32xf32> to vector<48x32xbf16>
    %c0_78 = arith.constant 0 : index
    %c0_79 = arith.constant 0 : index
    %c0_80 = arith.constant 0 : index
    %189 = vector.load %arg13[%c0_78, %c0_79, %c0_80] : memref<2x32x128xbf16, #tpu.memory_space<vmem>>, vector<1x32x128xbf16>
    %190 = vector.shape_cast %189 : vector<1x32x128xbf16> to vector<32x128xbf16>
    %cst_81 = arith.constant dense<0.000000e+00> : vector<48x128xf32>
    %191 = tpu.matmul %188, %190, %cst_81 {dimension_numbers = #tpu.dot_dimension_numbers<[1], [0], [0], [1], [0, 0, 1, 1], [], []>} : vector<48x32xbf16>, vector<32x128xbf16>, vector<48x128xf32> -> vector<48x128xf32>
    %c0_82 = arith.constant 0 : index
    %c0_83 = arith.constant 0 : index
    %c0_84 = arith.constant 0 : index
    %192 = vector.load %arg14[%c0_82, %c0_83, %c0_84] : memref<2x1x128xf32, #tpu.memory_space<vmem>>, vector<1x1x128xf32>
    %193 = vector.shape_cast %192 : vector<1x1x128xf32> to vector<1x128xf32>
    %194 = vector.broadcast %193 : vector<1x128xf32> to vector<48x128xf32>
    %195 = arith.addf %191, %194 : vector<48x128xf32>
    %cst_85 = arith.constant 5.000000e-01 : f32
    %196 = vector.broadcast %cst_85 : f32 to vector<48x128xf32>
    %197 = arith.mulf %196, %195 : vector<48x128xf32>
    %cst_86 = arith.constant 4.471500e-02 : f32
    %198 = vector.broadcast %cst_86 : f32 to vector<48x128xf32>
    %199 = arith.mulf %198, %195 : vector<48x128xf32>
    %200 = arith.mulf %199, %195 : vector<48x128xf32>
    %201 = arith.mulf %200, %195 : vector<48x128xf32>
    %202 = arith.addf %195, %201 : vector<48x128xf32>
    %cst_87 = arith.constant 0.797884583 : f32
    %203 = vector.broadcast %cst_87 : f32 to vector<48x128xf32>
    %204 = arith.mulf %203, %202 : vector<48x128xf32>
    %205 = math.tanh %204 : vector<48x128xf32>
    %cst_88 = arith.constant 1.000000e+00 : f32
    %206 = vector.broadcast %cst_88 : f32 to vector<48x128xf32>
    %207 = arith.addf %206, %205 : vector<48x128xf32>
    %208 = arith.mulf %197, %207 : vector<48x128xf32>
    %209 = arith.truncf %208 : vector<48x128xf32> to vector<48x128xbf16>
    %c0_89 = arith.constant 0 : index
    %c0_90 = arith.constant 0 : index
    %c0_91 = arith.constant 0 : index
    %210 = vector.load %arg15[%c0_89, %c0_90, %c0_91] : memref<2x128x32xbf16, #tpu.memory_space<vmem>>, vector<1x128x32xbf16>
    %211 = vector.shape_cast %210 : vector<1x128x32xbf16> to vector<128x32xbf16>
    %cst_92 = arith.constant dense<0.000000e+00> : vector<48x32xf32>
    %212 = tpu.matmul %209, %211, %cst_92 {dimension_numbers = #tpu.dot_dimension_numbers<[1], [0], [0], [1], [0, 0, 1, 1], [], []>} : vector<48x128xbf16>, vector<128x32xbf16>, vector<48x32xf32> -> vector<48x32xf32>
    %c0_93 = arith.constant 0 : index
    %c0_94 = arith.constant 0 : index
    %c0_95 = arith.constant 0 : index
    %213 = vector.load %arg16[%c0_93, %c0_94, %c0_95] : memref<2x1x32xf32, #tpu.memory_space<vmem>>, vector<1x1x32xf32>
    %214 = vector.shape_cast %213 : vector<1x1x32xf32> to vector<1x32xf32>
    %215 = vector.broadcast %214 : vector<1x32xf32> to vector<48x32xf32>
    %216 = arith.addf %212, %215 : vector<48x32xf32>
    %217 = arith.addf %161, %216 : vector<48x32xf32>
    %c1_96 = arith.constant 1 : index
    %c0_97 = arith.constant 0 : index
    %c0_98 = arith.constant 0 : index
    %218 = vector.load %arg5[%c1_96, %c0_97, %c0_98] : memref<2x1x32xf32, #tpu.memory_space<vmem>>, vector<1x1x32xf32>
    %219 = vector.shape_cast %218 : vector<1x1x32xf32> to vector<1x32xf32>
    %c1_99 = arith.constant 1 : index
    %c0_100 = arith.constant 0 : index
    %c0_101 = arith.constant 0 : index
    %220 = vector.load %arg6[%c1_99, %c0_100, %c0_101] : memref<2x1x32xf32, #tpu.memory_space<vmem>>, vector<1x1x32xf32>
    %221 = vector.shape_cast %220 : vector<1x1x32xf32> to vector<1x32xf32>
    %cst_102 = arith.constant dense<0.000000e+00> : vector<48xf32>
    %222 = vector.multi_reduction <add>, %217, %cst_102 [1] : vector<48x32xf32> to vector<48xf32>
    %223 = vector.shape_cast %222 : vector<48xf32> to vector<48x1xf32>
    %cst_103 = arith.constant 3.200000e+01 : f32
    %224 = vector.broadcast %cst_103 : f32 to vector<48x1xf32>
    %225 = arith.divf %223, %224 : vector<48x1xf32>
    %226 = vector.broadcast %225 : vector<48x1xf32> to vector<48x32xf32>
    %227 = arith.subf %217, %226 : vector<48x32xf32>
    %228 = arith.mulf %227, %227 : vector<48x32xf32>
    %cst_104 = arith.constant dense<0.000000e+00> : vector<48xf32>
    %229 = vector.multi_reduction <add>, %228, %cst_104 [1] : vector<48x32xf32> to vector<48xf32>
    %230 = vector.shape_cast %229 : vector<48xf32> to vector<48x1xf32>
    %cst_105 = arith.constant 3.200000e+01 : f32
    %231 = vector.broadcast %cst_105 : f32 to vector<48x1xf32>
    %232 = arith.divf %230, %231 : vector<48x1xf32>
    %cst_106 = arith.constant 9.99999997E-7 : f32
    %233 = vector.broadcast %cst_106 : f32 to vector<48x1xf32>
    %234 = arith.addf %232, %233 : vector<48x1xf32>
    %235 = math.rsqrt %234 : vector<48x1xf32>
    %236 = vector.broadcast %225 : vector<48x1xf32> to vector<48x32xf32>
    %237 = arith.subf %217, %236 : vector<48x32xf32>
    %238 = vector.broadcast %235 : vector<48x1xf32> to vector<48x32xf32>
    %239 = arith.mulf %237, %238 : vector<48x32xf32>
    %240 = vector.broadcast %219 : vector<1x32xf32> to vector<48x32xf32>
    %241 = arith.mulf %239, %240 : vector<48x32xf32>
    %242 = vector.broadcast %221 : vector<1x32xf32> to vector<48x32xf32>
    %243 = arith.addf %241, %242 : vector<48x32xf32>
    %244 = arith.truncf %243 : vector<48x32xf32> to vector<48x32xbf16>
    %c1_107 = arith.constant 1 : index
    %c0_108 = arith.constant 0 : index
    %c0_109 = arith.constant 0 : index
    %245 = vector.load %arg7[%c1_107, %c0_108, %c0_109] : memref<2x32x96xbf16, #tpu.memory_space<vmem>>, vector<1x32x96xbf16>
    %246 = vector.shape_cast %245 : vector<1x32x96xbf16> to vector<32x96xbf16>
    %cst_110 = arith.constant dense<0.000000e+00> : vector<48x96xf32>
    %247 = tpu.matmul %244, %246, %cst_110 {dimension_numbers = #tpu.dot_dimension_numbers<[1], [0], [0], [1], [0, 0, 1, 1], [], []>} : vector<48x32xbf16>, vector<32x96xbf16>, vector<48x96xf32> -> vector<48x96xf32>
    %c1_111 = arith.constant 1 : index
    %c0_112 = arith.constant 0 : index
    %c0_113 = arith.constant 0 : index
    %248 = vector.load %arg8[%c1_111, %c0_112, %c0_113] : memref<2x1x96xf32, #tpu.memory_space<vmem>>, vector<1x1x96xf32>
    %249 = vector.shape_cast %248 : vector<1x1x96xf32> to vector<1x96xf32>
    %250 = vector.broadcast %249 : vector<1x96xf32> to vector<48x96xf32>
    %251 = arith.addf %247, %250 : vector<48x96xf32>
    %252 = vector.shape_cast %251 : vector<48x96xf32> to vector<2x24x96xf32>
    %253 = vector.extract_strided_slice %252 {offsets = [0, 0, 0], sizes = [2, 24, 8], strides = [1, 1, 1]} : vector<2x24x96xf32> to vector<2x24x8xf32>
    %254 = arith.truncf %253 : vector<2x24x8xf32> to vector<2x24x8xbf16>
    %255 = vector.extract_strided_slice %252 {offsets = [0, 0, 32], sizes = [2, 24, 8], strides = [1, 1, 1]} : vector<2x24x96xf32> to vector<2x24x8xf32>
    %256 = arith.truncf %255 : vector<2x24x8xf32> to vector<2x24x8xbf16>
    %257 = vector.extract_strided_slice %252 {offsets = [0, 0, 64], sizes = [2, 24, 8], strides = [1, 1, 1]} : vector<2x24x96xf32> to vector<2x24x8xf32>
    %258 = arith.truncf %257 : vector<2x24x8xf32> to vector<2x24x8xbf16>
    "tpu.trace_start"() <{level = 10 : i32, message = "bqd,bkd->bqk"}> : () -> ()
    %cst_114 = arith.constant dense<0.000000e+00> : vector<2x24x24xf32>
    %259 = tpu.matmul %254, %256, %cst_114 {dimension_numbers = #tpu.dot_dimension_numbers<[2], [2], [1], [1], [0, 0, 0, 1, 1, 1], [0], [0]>} : vector<2x24x8xbf16>, vector<2x24x8xbf16>, vector<2x24x24xf32> -> vector<2x24x24xf32>
    %cst_115 = arith.constant -1.000000e+30 : f32
    "tpu.trace_stop"() : () -> ()
    %260 = vector.shape_cast %23 : vector<1x1x24xi1> to vector<1x1x24xi1>
    %261 = vector.broadcast %260 : vector<1x1x24xi1> to vector<2x24x24xi1>
    %262 = vector.broadcast %cst_115 : f32 to vector<2x24x24xf32>
    %263 = arith.select %261, %259, %262 : vector<2x24x24xi1>, vector<2x24x24xf32>
    %cst_116 = arith.constant dense<0xFF800000> : vector<2x24xf32>
    %264 = vector.multi_reduction <maximumf>, %263, %cst_116 [2] : vector<2x24x24xf32> to vector<2x24xf32>
    %265 = vector.shape_cast %264 : vector<2x24xf32> to vector<2x24x1xf32>
    %266 = vector.broadcast %265 : vector<2x24x1xf32> to vector<2x24x24xf32>
    %267 = arith.subf %263, %266 : vector<2x24x24xf32>
    %268 = math.exp %267 : vector<2x24x24xf32>
    %cst_117 = arith.constant dense<0.000000e+00> : vector<2x24xf32>
    %269 = vector.multi_reduction <add>, %268, %cst_117 [2] : vector<2x24x24xf32> to vector<2x24xf32>
    %270 = vector.shape_cast %269 : vector<2x24xf32> to vector<2x24x1xf32>
    %271 = tpu.reciprocal %270 {approx = true} : vector<2x24x1xf32> -> vector<2x24x1xf32>
    %272 = vector.broadcast %271 : vector<2x24x1xf32> to vector<2x24x24xf32>
    %273 = arith.mulf %268, %272 : vector<2x24x24xf32>
    %274 = arith.truncf %273 : vector<2x24x24xf32> to vector<2x24x24xbf16>
    "tpu.trace_start"() <{level = 10 : i32, message = "bqk,bkd->bqd"}> : () -> ()
    %cst_118 = arith.constant dense<0.000000e+00> : vector<2x24x8xf32>
    %275 = tpu.matmul %274, %258, %cst_118 {dimension_numbers = #tpu.dot_dimension_numbers<[2], [1], [1], [2], [0, 0, 0, 1, 1, 2], [0], [0]>} : vector<2x24x24xbf16>, vector<2x24x8xbf16>, vector<2x24x8xf32> -> vector<2x24x8xf32>
    "tpu.trace_stop"() : () -> ()
    %276 = vector.extract_strided_slice %252 {offsets = [0, 0, 8], sizes = [2, 24, 8], strides = [1, 1, 1]} : vector<2x24x96xf32> to vector<2x24x8xf32>
    %277 = arith.truncf %276 : vector<2x24x8xf32> to vector<2x24x8xbf16>
    %278 = vector.extract_strided_slice %252 {offsets = [0, 0, 40], sizes = [2, 24, 8], strides = [1, 1, 1]} : vector<2x24x96xf32> to vector<2x24x8xf32>
    %279 = arith.truncf %278 : vector<2x24x8xf32> to vector<2x24x8xbf16>
    %280 = vector.extract_strided_slice %252 {offsets = [0, 0, 72], sizes = [2, 24, 8], strides = [1, 1, 1]} : vector<2x24x96xf32> to vector<2x24x8xf32>
    %281 = arith.truncf %280 : vector<2x24x8xf32> to vector<2x24x8xbf16>
    "tpu.trace_start"() <{level = 10 : i32, message = "bqd,bkd->bqk"}> : () -> ()
    %cst_119 = arith.constant dense<0.000000e+00> : vector<2x24x24xf32>
    %282 = tpu.matmul %277, %279, %cst_119 {dimension_numbers = #tpu.dot_dimension_numbers<[2], [2], [1], [1], [0, 0, 0, 1, 1, 1], [0], [0]>} : vector<2x24x8xbf16>, vector<2x24x8xbf16>, vector<2x24x24xf32> -> vector<2x24x24xf32>
    %cst_120 = arith.constant -1.000000e+30 : f32
    "tpu.trace_stop"() : () -> ()
    %283 = vector.shape_cast %23 : vector<1x1x24xi1> to vector<1x1x24xi1>
    %284 = vector.broadcast %283 : vector<1x1x24xi1> to vector<2x24x24xi1>
    %285 = vector.broadcast %cst_120 : f32 to vector<2x24x24xf32>
    %286 = arith.select %284, %282, %285 : vector<2x24x24xi1>, vector<2x24x24xf32>
    %cst_121 = arith.constant dense<0xFF800000> : vector<2x24xf32>
    %287 = vector.multi_reduction <maximumf>, %286, %cst_121 [2] : vector<2x24x24xf32> to vector<2x24xf32>
    %288 = vector.shape_cast %287 : vector<2x24xf32> to vector<2x24x1xf32>
    %289 = vector.broadcast %288 : vector<2x24x1xf32> to vector<2x24x24xf32>
    %290 = arith.subf %286, %289 : vector<2x24x24xf32>
    %291 = math.exp %290 : vector<2x24x24xf32>
    %cst_122 = arith.constant dense<0.000000e+00> : vector<2x24xf32>
    %292 = vector.multi_reduction <add>, %291, %cst_122 [2] : vector<2x24x24xf32> to vector<2x24xf32>
    %293 = vector.shape_cast %292 : vector<2x24xf32> to vector<2x24x1xf32>
    %294 = tpu.reciprocal %293 {approx = true} : vector<2x24x1xf32> -> vector<2x24x1xf32>
    %295 = vector.broadcast %294 : vector<2x24x1xf32> to vector<2x24x24xf32>
    %296 = arith.mulf %291, %295 : vector<2x24x24xf32>
    %297 = arith.truncf %296 : vector<2x24x24xf32> to vector<2x24x24xbf16>
    "tpu.trace_start"() <{level = 10 : i32, message = "bqk,bkd->bqd"}> : () -> ()
    %cst_123 = arith.constant dense<0.000000e+00> : vector<2x24x8xf32>
    %298 = tpu.matmul %297, %281, %cst_123 {dimension_numbers = #tpu.dot_dimension_numbers<[2], [1], [1], [2], [0, 0, 0, 1, 1, 2], [0], [0]>} : vector<2x24x24xbf16>, vector<2x24x8xbf16>, vector<2x24x8xf32> -> vector<2x24x8xf32>
    "tpu.trace_stop"() : () -> ()
    %299 = vector.extract_strided_slice %252 {offsets = [0, 0, 16], sizes = [2, 24, 8], strides = [1, 1, 1]} : vector<2x24x96xf32> to vector<2x24x8xf32>
    %300 = arith.truncf %299 : vector<2x24x8xf32> to vector<2x24x8xbf16>
    %301 = vector.extract_strided_slice %252 {offsets = [0, 0, 48], sizes = [2, 24, 8], strides = [1, 1, 1]} : vector<2x24x96xf32> to vector<2x24x8xf32>
    %302 = arith.truncf %301 : vector<2x24x8xf32> to vector<2x24x8xbf16>
    %303 = vector.extract_strided_slice %252 {offsets = [0, 0, 80], sizes = [2, 24, 8], strides = [1, 1, 1]} : vector<2x24x96xf32> to vector<2x24x8xf32>
    %304 = arith.truncf %303 : vector<2x24x8xf32> to vector<2x24x8xbf16>
    "tpu.trace_start"() <{level = 10 : i32, message = "bqd,bkd->bqk"}> : () -> ()
    %cst_124 = arith.constant dense<0.000000e+00> : vector<2x24x24xf32>
    %305 = tpu.matmul %300, %302, %cst_124 {dimension_numbers = #tpu.dot_dimension_numbers<[2], [2], [1], [1], [0, 0, 0, 1, 1, 1], [0], [0]>} : vector<2x24x8xbf16>, vector<2x24x8xbf16>, vector<2x24x24xf32> -> vector<2x24x24xf32>
    %cst_125 = arith.constant -1.000000e+30 : f32
    "tpu.trace_stop"() : () -> ()
    %306 = vector.shape_cast %23 : vector<1x1x24xi1> to vector<1x1x24xi1>
    %307 = vector.broadcast %306 : vector<1x1x24xi1> to vector<2x24x24xi1>
    %308 = vector.broadcast %cst_125 : f32 to vector<2x24x24xf32>
    %309 = arith.select %307, %305, %308 : vector<2x24x24xi1>, vector<2x24x24xf32>
    %cst_126 = arith.constant dense<0xFF800000> : vector<2x24xf32>
    %310 = vector.multi_reduction <maximumf>, %309, %cst_126 [2] : vector<2x24x24xf32> to vector<2x24xf32>
    %311 = vector.shape_cast %310 : vector<2x24xf32> to vector<2x24x1xf32>
    %312 = vector.broadcast %311 : vector<2x24x1xf32> to vector<2x24x24xf32>
    %313 = arith.subf %309, %312 : vector<2x24x24xf32>
    %314 = math.exp %313 : vector<2x24x24xf32>
    %cst_127 = arith.constant dense<0.000000e+00> : vector<2x24xf32>
    %315 = vector.multi_reduction <add>, %314, %cst_127 [2] : vector<2x24x24xf32> to vector<2x24xf32>
    %316 = vector.shape_cast %315 : vector<2x24xf32> to vector<2x24x1xf32>
    %317 = tpu.reciprocal %316 {approx = true} : vector<2x24x1xf32> -> vector<2x24x1xf32>
    %318 = vector.broadcast %317 : vector<2x24x1xf32> to vector<2x24x24xf32>
    %319 = arith.mulf %314, %318 : vector<2x24x24xf32>
    %320 = arith.truncf %319 : vector<2x24x24xf32> to vector<2x24x24xbf16>
    "tpu.trace_start"() <{level = 10 : i32, message = "bqk,bkd->bqd"}> : () -> ()
    %cst_128 = arith.constant dense<0.000000e+00> : vector<2x24x8xf32>
    %321 = tpu.matmul %320, %304, %cst_128 {dimension_numbers = #tpu.dot_dimension_numbers<[2], [1], [1], [2], [0, 0, 0, 1, 1, 2], [0], [0]>} : vector<2x24x24xbf16>, vector<2x24x8xbf16>, vector<2x24x8xf32> -> vector<2x24x8xf32>
    "tpu.trace_stop"() : () -> ()
    %322 = vector.extract_strided_slice %252 {offsets = [0, 0, 24], sizes = [2, 24, 8], strides = [1, 1, 1]} : vector<2x24x96xf32> to vector<2x24x8xf32>
    %323 = arith.truncf %322 : vector<2x24x8xf32> to vector<2x24x8xbf16>
    %324 = vector.extract_strided_slice %252 {offsets = [0, 0, 56], sizes = [2, 24, 8], strides = [1, 1, 1]} : vector<2x24x96xf32> to vector<2x24x8xf32>
    %325 = arith.truncf %324 : vector<2x24x8xf32> to vector<2x24x8xbf16>
    %326 = vector.extract_strided_slice %252 {offsets = [0, 0, 88], sizes = [2, 24, 8], strides = [1, 1, 1]} : vector<2x24x96xf32> to vector<2x24x8xf32>
    %327 = arith.truncf %326 : vector<2x24x8xf32> to vector<2x24x8xbf16>
    "tpu.trace_start"() <{level = 10 : i32, message = "bqd,bkd->bqk"}> : () -> ()
    %cst_129 = arith.constant dense<0.000000e+00> : vector<2x24x24xf32>
    %328 = tpu.matmul %323, %325, %cst_129 {dimension_numbers = #tpu.dot_dimension_numbers<[2], [2], [1], [1], [0, 0, 0, 1, 1, 1], [0], [0]>} : vector<2x24x8xbf16>, vector<2x24x8xbf16>, vector<2x24x24xf32> -> vector<2x24x24xf32>
    %cst_130 = arith.constant -1.000000e+30 : f32
    "tpu.trace_stop"() : () -> ()
    %329 = vector.shape_cast %23 : vector<1x1x24xi1> to vector<1x1x24xi1>
    %330 = vector.broadcast %329 : vector<1x1x24xi1> to vector<2x24x24xi1>
    %331 = vector.broadcast %cst_130 : f32 to vector<2x24x24xf32>
    %332 = arith.select %330, %328, %331 : vector<2x24x24xi1>, vector<2x24x24xf32>
    %cst_131 = arith.constant dense<0xFF800000> : vector<2x24xf32>
    %333 = vector.multi_reduction <maximumf>, %332, %cst_131 [2] : vector<2x24x24xf32> to vector<2x24xf32>
    %334 = vector.shape_cast %333 : vector<2x24xf32> to vector<2x24x1xf32>
    %335 = vector.broadcast %334 : vector<2x24x1xf32> to vector<2x24x24xf32>
    %336 = arith.subf %332, %335 : vector<2x24x24xf32>
    %337 = math.exp %336 : vector<2x24x24xf32>
    %cst_132 = arith.constant dense<0.000000e+00> : vector<2x24xf32>
    %338 = vector.multi_reduction <add>, %337, %cst_132 [2] : vector<2x24x24xf32> to vector<2x24xf32>
    %339 = vector.shape_cast %338 : vector<2x24xf32> to vector<2x24x1xf32>
    %340 = tpu.reciprocal %339 {approx = true} : vector<2x24x1xf32> -> vector<2x24x1xf32>
    %341 = vector.broadcast %340 : vector<2x24x1xf32> to vector<2x24x24xf32>
    %342 = arith.mulf %337, %341 : vector<2x24x24xf32>
    %343 = arith.truncf %342 : vector<2x24x24xf32> to vector<2x24x24xbf16>
    "tpu.trace_start"() <{level = 10 : i32, message = "bqk,bkd->bqd"}> : () -> ()
    %cst_133 = arith.constant dense<0.000000e+00> : vector<2x24x8xf32>
    %344 = tpu.matmul %343, %327, %cst_133 {dimension_numbers = #tpu.dot_dimension_numbers<[2], [1], [1], [2], [0, 0, 0, 1, 1, 2], [0], [0]>} : vector<2x24x24xbf16>, vector<2x24x8xbf16>, vector<2x24x8xf32> -> vector<2x24x8xf32>
    "tpu.trace_stop"() : () -> ()
    %345 = tpu.concatenate %275, %298, %321, %344 in 2 : vector<2x24x8xf32>, vector<2x24x8xf32>, vector<2x24x8xf32>, vector<2x24x8xf32> -> vector<2x24x32xf32>
    %346 = vector.shape_cast %345 : vector<2x24x32xf32> to vector<48x32xf32>
    %347 = arith.truncf %346 : vector<48x32xf32> to vector<48x32xbf16>
    %c1_134 = arith.constant 1 : index
    %c0_135 = arith.constant 0 : index
    %c0_136 = arith.constant 0 : index
    %348 = vector.load %arg9[%c1_134, %c0_135, %c0_136] : memref<2x32x32xbf16, #tpu.memory_space<vmem>>, vector<1x32x32xbf16>
    %349 = vector.shape_cast %348 : vector<1x32x32xbf16> to vector<32x32xbf16>
    %cst_137 = arith.constant dense<0.000000e+00> : vector<48x32xf32>
    %350 = tpu.matmul %347, %349, %cst_137 {dimension_numbers = #tpu.dot_dimension_numbers<[1], [0], [0], [1], [0, 0, 1, 1], [], []>} : vector<48x32xbf16>, vector<32x32xbf16>, vector<48x32xf32> -> vector<48x32xf32>
    %c1_138 = arith.constant 1 : index
    %c0_139 = arith.constant 0 : index
    %c0_140 = arith.constant 0 : index
    %351 = vector.load %arg10[%c1_138, %c0_139, %c0_140] : memref<2x1x32xf32, #tpu.memory_space<vmem>>, vector<1x1x32xf32>
    %352 = vector.shape_cast %351 : vector<1x1x32xf32> to vector<1x32xf32>
    %353 = vector.broadcast %352 : vector<1x32xf32> to vector<48x32xf32>
    %354 = arith.addf %350, %353 : vector<48x32xf32>
    %355 = arith.addf %217, %354 : vector<48x32xf32>
    %c1_141 = arith.constant 1 : index
    %c0_142 = arith.constant 0 : index
    %c0_143 = arith.constant 0 : index
    %356 = vector.load %arg11[%c1_141, %c0_142, %c0_143] : memref<2x1x32xf32, #tpu.memory_space<vmem>>, vector<1x1x32xf32>
    %357 = vector.shape_cast %356 : vector<1x1x32xf32> to vector<1x32xf32>
    %c1_144 = arith.constant 1 : index
    %c0_145 = arith.constant 0 : index
    %c0_146 = arith.constant 0 : index
    %358 = vector.load %arg12[%c1_144, %c0_145, %c0_146] : memref<2x1x32xf32, #tpu.memory_space<vmem>>, vector<1x1x32xf32>
    %359 = vector.shape_cast %358 : vector<1x1x32xf32> to vector<1x32xf32>
    %cst_147 = arith.constant dense<0.000000e+00> : vector<48xf32>
    %360 = vector.multi_reduction <add>, %355, %cst_147 [1] : vector<48x32xf32> to vector<48xf32>
    %361 = vector.shape_cast %360 : vector<48xf32> to vector<48x1xf32>
    %cst_148 = arith.constant 3.200000e+01 : f32
    %362 = vector.broadcast %cst_148 : f32 to vector<48x1xf32>
    %363 = arith.divf %361, %362 : vector<48x1xf32>
    %364 = vector.broadcast %363 : vector<48x1xf32> to vector<48x32xf32>
    %365 = arith.subf %355, %364 : vector<48x32xf32>
    %366 = arith.mulf %365, %365 : vector<48x32xf32>
    %cst_149 = arith.constant dense<0.000000e+00> : vector<48xf32>
    %367 = vector.multi_reduction <add>, %366, %cst_149 [1] : vector<48x32xf32> to vector<48xf32>
    %368 = vector.shape_cast %367 : vector<48xf32> to vector<48x1xf32>
    %cst_150 = arith.constant 3.200000e+01 : f32
    %369 = vector.broadcast %cst_150 : f32 to vector<48x1xf32>
    %370 = arith.divf %368, %369 : vector<48x1xf32>
    %cst_151 = arith.constant 9.99999997E-7 : f32
    %371 = vector.broadcast %cst_151 : f32 to vector<48x1xf32>
    %372 = arith.addf %370, %371 : vector<48x1xf32>
    %373 = math.rsqrt %372 : vector<48x1xf32>
    %374 = vector.broadcast %363 : vector<48x1xf32> to vector<48x32xf32>
    %375 = arith.subf %355, %374 : vector<48x32xf32>
    %376 = vector.broadcast %373 : vector<48x1xf32> to vector<48x32xf32>
    %377 = arith.mulf %375, %376 : vector<48x32xf32>
    %378 = vector.broadcast %357 : vector<1x32xf32> to vector<48x32xf32>
    %379 = arith.mulf %377, %378 : vector<48x32xf32>
    %380 = vector.broadcast %359 : vector<1x32xf32> to vector<48x32xf32>
    %381 = arith.addf %379, %380 : vector<48x32xf32>
    %382 = arith.truncf %381 : vector<48x32xf32> to vector<48x32xbf16>
    %c1_152 = arith.constant 1 : index
    %c0_153 = arith.constant 0 : index
    %c0_154 = arith.constant 0 : index
    %383 = vector.load %arg13[%c1_152, %c0_153, %c0_154] : memref<2x32x128xbf16, #tpu.memory_space<vmem>>, vector<1x32x128xbf16>
    %384 = vector.shape_cast %383 : vector<1x32x128xbf16> to vector<32x128xbf16>
    %cst_155 = arith.constant dense<0.000000e+00> : vector<48x128xf32>
    %385 = tpu.matmul %382, %384, %cst_155 {dimension_numbers = #tpu.dot_dimension_numbers<[1], [0], [0], [1], [0, 0, 1, 1], [], []>} : vector<48x32xbf16>, vector<32x128xbf16>, vector<48x128xf32> -> vector<48x128xf32>
    %c1_156 = arith.constant 1 : index
    %c0_157 = arith.constant 0 : index
    %c0_158 = arith.constant 0 : index
    %386 = vector.load %arg14[%c1_156, %c0_157, %c0_158] : memref<2x1x128xf32, #tpu.memory_space<vmem>>, vector<1x1x128xf32>
    %387 = vector.shape_cast %386 : vector<1x1x128xf32> to vector<1x128xf32>
    %388 = vector.broadcast %387 : vector<1x128xf32> to vector<48x128xf32>
    %389 = arith.addf %385, %388 : vector<48x128xf32>
    %cst_159 = arith.constant 5.000000e-01 : f32
    %390 = vector.broadcast %cst_159 : f32 to vector<48x128xf32>
    %391 = arith.mulf %390, %389 : vector<48x128xf32>
    %cst_160 = arith.constant 4.471500e-02 : f32
    %392 = vector.broadcast %cst_160 : f32 to vector<48x128xf32>
    %393 = arith.mulf %392, %389 : vector<48x128xf32>
    %394 = arith.mulf %393, %389 : vector<48x128xf32>
    %395 = arith.mulf %394, %389 : vector<48x128xf32>
    %396 = arith.addf %389, %395 : vector<48x128xf32>
    %cst_161 = arith.constant 0.797884583 : f32
    %397 = vector.broadcast %cst_161 : f32 to vector<48x128xf32>
    %398 = arith.mulf %397, %396 : vector<48x128xf32>
    %399 = math.tanh %398 : vector<48x128xf32>
    %cst_162 = arith.constant 1.000000e+00 : f32
    %400 = vector.broadcast %cst_162 : f32 to vector<48x128xf32>
    %401 = arith.addf %400, %399 : vector<48x128xf32>
    %402 = arith.mulf %391, %401 : vector<48x128xf32>
    %403 = arith.truncf %402 : vector<48x128xf32> to vector<48x128xbf16>
    %c1_163 = arith.constant 1 : index
    %c0_164 = arith.constant 0 : index
    %c0_165 = arith.constant 0 : index
    %404 = vector.load %arg15[%c1_163, %c0_164, %c0_165] : memref<2x128x32xbf16, #tpu.memory_space<vmem>>, vector<1x128x32xbf16>
    %405 = vector.shape_cast %404 : vector<1x128x32xbf16> to vector<128x32xbf16>
    %cst_166 = arith.constant dense<0.000000e+00> : vector<48x32xf32>
    %406 = tpu.matmul %403, %405, %cst_166 {dimension_numbers = #tpu.dot_dimension_numbers<[1], [0], [0], [1], [0, 0, 1, 1], [], []>} : vector<48x128xbf16>, vector<128x32xbf16>, vector<48x32xf32> -> vector<48x32xf32>
    %c1_167 = arith.constant 1 : index
    %c0_168 = arith.constant 0 : index
    %c0_169 = arith.constant 0 : index
    %407 = vector.load %arg16[%c1_167, %c0_168, %c0_169] : memref<2x1x32xf32, #tpu.memory_space<vmem>>, vector<1x1x32xf32>
    %408 = vector.shape_cast %407 : vector<1x1x32xf32> to vector<1x32xf32>
    %409 = vector.broadcast %408 : vector<1x32xf32> to vector<48x32xf32>
    %410 = arith.addf %406, %409 : vector<48x32xf32>
    %411 = arith.addf %355, %410 : vector<48x32xf32>
    %c0_170 = arith.constant 0 : index
    %c0_171 = arith.constant 0 : index
    %412 = vector.load %arg17[%c0_170, %c0_171] : memref<1x32xf32, #tpu.memory_space<vmem>>, vector<1x32xf32>
    %c0_172 = arith.constant 0 : index
    %c0_173 = arith.constant 0 : index
    %413 = vector.load %arg18[%c0_172, %c0_173] : memref<1x32xf32, #tpu.memory_space<vmem>>, vector<1x32xf32>
    %cst_174 = arith.constant dense<0.000000e+00> : vector<48xf32>
    %414 = vector.multi_reduction <add>, %411, %cst_174 [1] : vector<48x32xf32> to vector<48xf32>
    %415 = vector.shape_cast %414 : vector<48xf32> to vector<48x1xf32>
    %cst_175 = arith.constant 3.200000e+01 : f32
    %416 = vector.broadcast %cst_175 : f32 to vector<48x1xf32>
    %417 = arith.divf %415, %416 : vector<48x1xf32>
    %418 = vector.broadcast %417 : vector<48x1xf32> to vector<48x32xf32>
    %419 = arith.subf %411, %418 : vector<48x32xf32>
    %420 = arith.mulf %419, %419 : vector<48x32xf32>
    %cst_176 = arith.constant dense<0.000000e+00> : vector<48xf32>
    %421 = vector.multi_reduction <add>, %420, %cst_176 [1] : vector<48x32xf32> to vector<48xf32>
    %422 = vector.shape_cast %421 : vector<48xf32> to vector<48x1xf32>
    %cst_177 = arith.constant 3.200000e+01 : f32
    %423 = vector.broadcast %cst_177 : f32 to vector<48x1xf32>
    %424 = arith.divf %422, %423 : vector<48x1xf32>
    %cst_178 = arith.constant 9.99999997E-7 : f32
    %425 = vector.broadcast %cst_178 : f32 to vector<48x1xf32>
    %426 = arith.addf %424, %425 : vector<48x1xf32>
    %427 = math.rsqrt %426 : vector<48x1xf32>
    %428 = vector.broadcast %417 : vector<48x1xf32> to vector<48x32xf32>
    %429 = arith.subf %411, %428 : vector<48x32xf32>
    %430 = vector.broadcast %427 : vector<48x1xf32> to vector<48x32xf32>
    %431 = arith.mulf %429, %430 : vector<48x32xf32>
    %432 = vector.broadcast %412 : vector<1x32xf32> to vector<48x32xf32>
    %433 = arith.mulf %431, %432 : vector<48x32xf32>
    %434 = vector.broadcast %413 : vector<1x32xf32> to vector<48x32xf32>
    %435 = arith.addf %433, %434 : vector<48x32xf32>
    %436 = vector.shape_cast %435 : vector<48x32xf32> to vector<2x24x32xf32>
    %c0_179 = arith.constant 0 : index
    %c0_180 = arith.constant 0 : index
    %c0_181 = arith.constant 0 : index
    %437 = vector.load %arg19[%c0_179, %c0_180, %c0_181] : memref<2x24x32xf32, #tpu.memory_space<vmem>>, vector<2x24x32xf32>
    tpu.vector_store %arg19[%c0_179, %c0_180, %c0_181], %436 {strides = array<i32>} : memref<2x24x32xf32, #tpu.memory_space<vmem>>, vector<2x24x32xf32>,
    return
  }
}

</mosaic_0001>

<bundles_post_ra>
// kernel: vit_forward_features.1
= control target key start
LH: loop header
LB: loop body
LE: loop exit
PB: predicated region body
PF: predicated region fallthrough
CT: control target
= control target key end

     0   :  { %v5871_v0 = vmov 0   ;;  %vm178_vm0 = vcmask 523264   ;;  %vm234_vm1 = vcmask 261120   ;;  %vm242_vm2 = vcmask 253952   ;;  %s5876_s27 = smov 88   ;;  %s5877_s28 = smov 120   ;;  %s7446_s1 = inlined_call_operand.vmem [shape: bf16[192,32], index: 1, kind: input, shape index: {}]   ;;  %s7447_s0 = inlined_call_operand.vmem [shape: f32[32,192], index: 0, kind: input, shape index: {}]   ;;  %s7448_s3 = inlined_call_operand.vmem [shape: f32[1,1,32], index: 3, kind: input, shape index: {}]   ;;  %s7449_s19 = inlined_call_operand.vmem [shape: f32[2,24,32], index: 19, kind: output, shape index: {}]   ;;  %s7450_s2 = inlined_call_operand.vmem [shape: f32[1,32], index: 2, kind: input, shape index: {}]   ;;  %s7451_s4 = inlined_call_operand.vmem [shape: f32[16,32], index: 4, kind: input, shape index: {}]   ;;  %s7452_s7 = inlined_call_operand.vmem [shape: bf16[2,32,96], index: 7, kind: input, shape index: {}]   ;;  %s7453_s5 = inlined_call_operand.vmem [shape: f32[2,1,32], index: 5, kind: input, shape index: {}]   ;;  %s7454_s6 = inlined_call_operand.vmem [shape: f32[2,1,32], index: 6, kind: input, shape index: {}]   ;;  %s7455_s8 = inlined_call_operand.vmem [shape: f32[2,1,96], index: 8, kind: input, shape index: {}]   ;;  %s7456_s9 = inlined_call_operand.vmem [shape: bf16[2,32,32], index: 9, kind: input, shape index: {}]   ;;  %s7457_s10 = inlined_call_operand.vmem [shape: f32[2,1,32], index: 10, kind: input, shape index: {}]   ;;  %s7458_s13 = inlined_call_operand.vmem [shape: bf16[2,32,128], index: 13, kind: input, shape index: {}]   ;;  %s7459_s11 = inlined_call_operand.vmem [shape: f32[2,1,32], index: 11, kind: input, shape index: {}]   ;;  %s7460_s12 = inlined_call_operand.vmem [shape: f32[2,1,32], index: 12, kind: input, shape index: {}]   ;;  %s7461_s15 = inlined_call_operand.vmem [shape: bf16[2,128,32], index: 15, kind: input, shape index: {}]   ;;  %s7462_s14 = inlined_call_operand.vmem [shape: f32[2,1,128], index: 14, kind: input, shape index: {}]   ;;  %s7463_s16 = inlined_call_operand.vmem [shape: f32[2,1,32], index: 16, kind: input, shape index: {}]   ;;  %s7464_s17 = inlined_call_operand.vmem [shape: f32[1,32], index: 17, kind: input, shape index: {}]   ;;  %s7465_s18 = inlined_call_operand.vmem [shape: f32[1,32], index: 18, kind: input, shape index: {}]  }
   0x1   :  { %7481 = sst [smem:[#allocation2_spill]] %s7446_s1  ;;  %185 = vmatprep.subr.bf16.mxu0 %v5871_v0  ;;  %v5872_v26 = vmov 0.0   ;;  %v4627_v27 = vld [vmem:[%s7450_s2] ss:$0 sm:$0xff]  ;;  %v246_v34 = vld [vmem:[%s7451_s4 + $0x8] sm:$0xff]  ;;  %vm5873_vm3 = vmmov 0  }
   0x2   :  { %7482 = sst [smem:[#allocation3_spill]] %s7447_s0  ;;  %4986 = vmatprep.subr.bf16.mxu1 %v5872_v26  ;;  %v245_v29 = vld [vmem:[%s7451_s4] sm:$0xff]  ;;  %4990 = vmatprep.mubr.msk.bf16.mxu1 %vm5873_vm3, %v5872_v26  ;;  %vm471_vm4 = vcmask 64512   ;;  %vm606_vm6 = vcmask 195584   ;;  %vm688_vm7 = vcmask 1043456   ;;  %s5878_s2 = smov 56  }
   0x3   :  { %7483 = sst [smem:[#allocation4_spill]] %s7448_s3  ;;  %s5879_s29 = smov 80   ;;  %vm1888_vm8 = vcmask 130048  }
   0x4   :  { %7484 = sst [smem:[#allocation5_spill]] %s7449_s19  ;;  %s5874_s19 = smov 96  }
   0x5   :  { %s7485_s20 = sld [smem:[#allocation2_spill]]  ;;  %s5880_s1 = smov 112  }
   0x6   :  { %s7486_s26 = sld [smem:[#allocation3_spill]]  ;;  %s5881_s4 = smov 48  }
   0x7   :  { %s7487_s21 = sld [smem:[#allocation4_spill]]  ;;  %s7479_s30 = smov 72  }
   0x8   :  { %s7488_s3 = sld [smem:[#allocation5_spill]]  ;;  %s7469_s0 = smov 40  }
   0x9   :  { %s7475_s22 = smov 8   ;;  %s7477_s23 = smov 16  }
   0xa   :  { %s7494_s24 = smov 24  }
   0xb   :  { %v5549_v1 = vld [vmem:[%s7485_s20 + $0x38] sm:$0xff]   ;;  %v5550_v2 = vld [vmem:[%s7485_s20 + $0x30] sm:$0xff]   ;;  %v5551_v3 = vld [vmem:[%s7485_s20 + $0x28] sm:$0xff]  }
   0xc   :  { %186 = vmatpush1.bf16.msra.mxu0 %v5549_v1  ;;  %v5552_v4 = vld [vmem:[%s7485_s20 + $0x20] sm:$0xff]   ;;  %v64_v5 = vld [vmem:[%s7486_s26 + $0x8] sm:$0xff]  ;;  %v66_v6 = vld [vmem:[%s7486_s26 + $0x18] sm:$0xff] }
   0xd   :  { %187 = vmatprep.subr.bf16.mxu0 %v5871_v0  ;;  %v72_v7 = vpack.c.bf16 %v66_v6, %v64_v5  ;;  %v5553_v8 = vld [vmem:[%s7485_s20 + $0x18] sm:$0xff]   ;;  %v5554_v9 = vld [vmem:[%s7485_s20 + $0x10] sm:$0xff]   ;;  %v5555_v10 = vld [vmem:[%s7485_s20 + $0x8] sm:$0xff]  }
   0xe   :  { %v5556_v11 = vld [vmem:[%s7485_s20] sm:$0xff]   ;;  %v5557_v12 = vld [vmem:[%s7485_s20 + $0x58] sm:$0xff]   ;;  %v5558_v13 = vld [vmem:[%s7485_s20 + $0x50] sm:$0xff]   ;;  %235 = vst.msk [vmem:[%s7488_s3] sm:$0xff] %vm234_vm1, %v5872_v26 }
   0xf   :  { %4640 = vmatprep.mubr.msk.bf16.mxu0 %vm178_vm0, %v72_v7  ;;  %v5559_v14 = vld [vmem:[%s7485_s20 + $0x48] sm:$0xff]   ;;  %v5560_v15 = vld [vmem:[%s7485_s20 + $0x40] sm:$0xff]   ;;  %v65_v17 = vld [vmem:[%s7486_s26 + $0x10] sm:$0xff]  ;;  %236 = vst.msk [vmem:[%s7488_s3 + $0x8] sm:$0xff] %vm234_vm1, %v5872_v26  ;;  %s5875_s20 = smov 64  }
  0x10   :  { %188 = vmatpush1.bf16.msra.mxu0 %v5550_v2  ;;  %v63_v16 = vld [vmem:[%s7486_s26] sm:$0xff]  ;;  %v68_v18 = vld [vmem:[%s7486_s26 + $0x28] sm:$0xff]  ;;  %v70_v19 = vld [vmem:[%s7486_s26 + $0x38] sm:$0xff]  ;;  %237 = vst.msk [vmem:[%s7488_s3 + $0x10] sm:$0xff] %vm234_vm1, %v5872_v26 }
  0x11   :  { %189 = vmatprep.subr.bf16.mxu0 %v5871_v0  ;;  %v71_v20 = vpack.c.bf16 %v65_v17, %v63_v16  ;;  %v74_v21 = vpack.c.bf16 %v70_v19, %v68_v18  ;;  %v67_v22 = vld [vmem:[%s7486_s26 + $0x20] sm:$0xff]  ;;  %v69_v23 = vld [vmem:[%s7486_s26 + $0x30] sm:$0xff]  ;;  %238 = vst.msk [vmem:[%s7488_s3 + $0x18] sm:$0xff] %vm234_vm1, %v5872_v26  ;;  %239 = vst.msk [vmem:[%s7488_s3 + $0x20] sm:$0xff] %vm234_vm1, %v5872_v26 }
  0x12   :  { %v73_v24 = vpack.c.bf16 %v69_v23, %v67_v22  ;;  %v241_v25 = vld [vmem:[%s7487_s21] sm:$0x1]  ;;  %240 = vst.msk [vmem:[%s7488_s3 + $0x28] sm:$0xff] %vm234_vm1, %v5872_v26  ;;  %s7471_s21 = smov 104  }
  0x13   :  { %243 = vst.msk [vmem:[%s7488_s3] sm:$0x1] %vm242_vm2, %v241_v25  ;;  %244 = vst.msk [vmem:[%s7488_s3 + $0x18] sm:$0x1] %vm242_vm2, %v241_v25  ;;  %v5562_v25 = vld [vmem:[%s7452_s7] sm:$0xff]  }
  0x14   :  { %190 = vmatpush1.bf16.msra.mxu0 %v5551_v3 }
  0x15   :  { %191 = vmatprep.subr.bf16.mxu0 %v5871_v0 }
  0x18   :  { %192 = vmatpush1.bf16.msra.mxu0 %v5552_v4 }
  0x19   :  { %193 = vmatprep.subr.bf16.mxu0 %v5871_v0 }
  0x1c   :  { %194 = vmatpush1.bf16.msra.mxu0 %v5553_v8 }
  0x1d   :  { %195 = vmatprep.subr.bf16.mxu0 %v5871_v0 }
  0x20   :  { %196 = vmatpush1.bf16.msra.mxu0 %v5554_v9 }
  0x21   :  { %197 = vmatprep.subr.bf16.mxu0 %v5871_v0 }
  0x24   :  { %198 = vmatpush1.bf16.msra.mxu0 %v5555_v10 }
  0x25   :  { %199 = vmatprep.subr.bf16.mxu0 %v5871_v0 }
  0x28   :  { %200 = vmatpush1.bf16.msra.mxu0 %v5556_v11 }
  0x29   :  { %209 = vmatprep.subr.bf16.mxu0 %v5871_v0 }
  0x2c   :  { %210 = vmatpush2.bf16.msra.mxu0 %v5557_v12 }
  0x2d   :  { %211 = vmatprep.subr.bf16.mxu0 %v5871_v0 }
  0x30   :  { %212 = vmatpush2.bf16.msra.mxu0 %v5558_v13 }
  0x31   :  { %213 = vmatprep.subr.bf16.mxu0 %v5871_v0 }
  0x34   :  { %214 = vmatpush2.bf16.msra.mxu0 %v5559_v14 }
  0x35   :  { %215 = vmatprep.subr.bf16.mxu0 %v5871_v0 }
  0x38   :  { %216 = vmatpush2.bf16.msra.mxu0 %v5560_v15 }
  0x3b   :  { %218 = vmatmul.mubr.bf16.vlgmr.msra.gmra.mxu0 %v71_v20 }
  0x3c   :  { %4641 = vmatprep.mubr.msk.bf16.mxu0 %vm178_vm0, %v74_v21 }
  0x43   :  { %226 = vmatmul.mubr.bf16.gmra.mxu0 %v73_v24  ;;  %v5561_v24 = vld [vmem:[%s7452_s7 + $0x8] sm:$0xff]  }
  0x44   :  { %4987 = vmatpush3.bf16.msra.mxu1 %v5561_v24 }
  0x45   :  { %4988 = vmatprep.subr.bf16.mxu1 %v5872_v26 }
  0x48   :  { %4989 = vmatpush3.bf16.msra.mxu1 %v5562_v25 }
  0xfb   :  { %v219_v28 = vpop.f32.mrf.mxu0 }
  0xfc   :  { %v220_v30 = vadd.f32 %v4627_v27, %v219_v28 }
  0xfd   :  { %v221_v31 = vpop.f32.mrf.mxu0 }
  0xfe   :  { %v247_v32 = vadd.f32 %v245_v29, %v220_v30 }
  0xff   :  { %v222_v33 = vpop.f32.mrf.mxu0 }
 0x100   :  { %251 = vst.msk [vmem:[%s7488_s3 + $0x1] sm:$0xff] %vm234_vm1, %v247_v32  ;;  %v223_v35 = vadd.f32 %v4627_v27, %v222_v33 }
 0x101   :  { %v224_v36 = vpop.f32.mrf.mxu0 }
 0x102   :  { %v248_v37 = vadd.f32 %v246_v34, %v223_v35 }
 0x103   :  { %v227_v38 = vpop.f32.mrf.mxu0 }
 0x104   :  { %252 = vst.msk [vmem:[%s7488_s3 + $0x9] sm:$0xff] %vm234_vm1, %v248_v37  ;;  %v228_v39 = vadd.f32 %v4627_v27, %v227_v38 }
 0x105   :  { %v229_v40 = vpop.f32.mrf.mxu0 }
 0x106   :  { %v249_v41 = vadd.f32 %v245_v29, %v228_v39 }
 0x107   :  { %v230_v42 = vpop.f32.mrf.mxu0  ;;  %v255_v43 = vld [vmem:[%s7488_s3] sm:$0xff] }
 0x108   :  { %253 = vst.msk [vmem:[%s7488_s3 + $0x19] sm:$0xff] %vm234_vm1, %v249_v41  ;;  %v231_v44 = vadd.f32 %v4627_v27, %v230_v42  ;;  %v266_v45 = vsel %vm234_vm1, %v255_v43, 0.0 }
 0x109   :  { %v232_v46 = vpop.f32.mrf.mxu0  ;;  %267 = vadd.xlane.f32.xlu0 %v266_v45 }
 0x10a   :  { %v250_v47 = vadd.f32 %v246_v34, %v231_v44 }
 0x10b   :  { %v257_v48 = vld [vmem:[%s7488_s3 + $0x10] sm:$0xff]  ;;  %v256_v49 = vld [vmem:[%s7488_s3 + $0x8] sm:$0xff] }
 0x10c   :  { %254 = vst.msk [vmem:[%s7488_s3 + $0x21] sm:$0xff] %vm234_vm1, %v250_v47  ;;  %v272_v50 = vsel %vm234_vm1, %v257_v48, 0.0  ;;  %v269_v51 = vsel %vm234_vm1, %v256_v49, 0.0  ;;  %v4642_v47 = vld [vmem:[%s7453_s5] ss:$0 sm:$0xff] }
 0x10d   :  { %273 = vadd.xlane.f32.xlu1 %v272_v50  ;;  %270 = vadd.xlane.f32.xlu0 %v269_v51 }
 0x10f   :  { %v258_v52 = vld [vmem:[%s7488_s3 + $0x18] sm:$0xff] }
 0x110   :  { %v275_v53 = vsel %vm234_vm1, %v258_v52, 0.0 }
 0x111   :  { %276 = vadd.xlane.f32.xlu1 %v275_v53 }
 0x113   :  { %v260_v54 = vld [vmem:[%s7488_s3 + $0x28] sm:$0xff]  ;;  %v259_v55 = vld [vmem:[%s7488_s3 + $0x20] sm:$0xff] }
 0x114   :  { %v281_v56 = vsel %vm234_vm1, %v260_v54, 0.0  ;;  %v278_v57 = vsel %vm234_vm1, %v259_v55, 0.0 }
 0x115   :  { %282 = vadd.xlane.f32.xlu1 %v281_v56  ;;  %279 = vadd.xlane.f32.xlu0 %v278_v57 }
 0x192   :  { %v268_v58 = vpop.xlane.xlu0 %267 }
 0x193   :  { %v285_v59 = vmul.f32 0.03125, %v268_v58 }
 0x195   :  { %v6139_v60 = vsub.f32 %v255_v43, %v285_v59 }
 0x196   :  { %v274_v61 = vpop.xlane.xlu1 %273  ;;  %v271_v62 = vpop.xlane.xlu0 %270 }
 0x197   :  { %v287_v63 = vmul.f32 0.03125, %v274_v61  ;;  %v286_v0 = vmul.f32 0.03125, %v271_v62  ;;  %v297_v1 = vmul.f32 %v6139_v60, %v6139_v60 }
 0x199   :  { %v6143_v2 = vsub.f32 %v257_v48, %v287_v63  ;;  %v6145_v3 = vsub.f32 %v256_v49, %v286_v0  ;;  %v303_v4 = vsel %vm234_vm1, %v297_v1, 0.0 }
 0x19a   :  { %v277_v5 = vpop.xlane.xlu1 %276  ;;  %304 = vadd.xlane.f32.xlu0 %v303_v4 }
 0x19b   :  { %v288_v6 = vmul.f32 0.03125, %v277_v5  ;;  %v299_v7 = vmul.f32 %v6143_v2, %v6143_v2  ;;  %v298_v8 = vmul.f32 %v6145_v3, %v6145_v3 }
 0x19d   :  { %v6152_v9 = vsub.f32 %v258_v52, %v288_v6  ;;  %v309_v10 = vsel %vm234_vm1, %v299_v7, 0.0  ;;  %v306_v11 = vsel %vm234_vm1, %v298_v8, 0.0  ;;  %v4643_v52 = vld [vmem:[%s7454_s6] ss:$0 sm:$0xff] }
 0x19e   :  { %v283_v12 = vpop.xlane.xlu1 %282  ;;  %310 = vadd.xlane.f32.xlu0 %v309_v10  ;;  %307 = vadd.xlane.f32.xlu1 %v306_v11  ;;  %v280_v13 = vpop.xlane.xlu0 %279  ;;  %v4644_v11 = vld [vmem:[%s7455_s8] ss:$0 sm:$0xff] }
 0x19f   :  { %v290_v14 = vmul.f32 0.03125, %v283_v12  ;;  %v289_v15 = vmul.f32 0.03125, %v280_v13  ;;  %v300_v16 = vmul.f32 %v6152_v9, %v6152_v9 }
 0x1a1   :  { %v6158_v17 = vsub.f32 %v260_v54, %v290_v14  ;;  %v6160_v18 = vsub.f32 %v259_v55, %v289_v15  ;;  %v312_v19 = vsel %vm234_vm1, %v300_v16, 0.0 }
 0x1a2   :  { %313 = vadd.xlane.f32.xlu1 %v312_v19 }
 0x1a3   :  { %v302_v20 = vmul.f32 %v6158_v17, %v6158_v17  ;;  %v301_v21 = vmul.f32 %v6160_v18, %v6160_v18 }
 0x1a5   :  { %v318_v22 = vsel %vm234_vm1, %v302_v20, 0.0  ;;  %v315_v23 = vsel %vm234_vm1, %v301_v21, 0.0 }
 0x1a6   :  { %319 = vadd.xlane.f32.xlu1 %v318_v22  ;;  %316 = vadd.xlane.f32.xlu0 %v315_v23 }
 0x223   :  { %v305_v27 = vpop.xlane.xlu0 %304 }
 0x224   :  { %v321_v28 = vmul.f32 0.03125, %v305_v27 }
 0x226   :  { %v327_v29 = vadd.f32 1e-06, %v321_v28 }
 0x227   :  { %v308_v30 = vpop.xlane.xlu1 %307  ;;  %v311_v31 = vpop.xlane.xlu0 %310 }
 0x228   :  { %5589 = vrsqrt.f32 %v327_v29  ;;  %v322_v32 = vmul.f32 0.03125, %v308_v30  ;;  %v323_v33 = vmul.f32 0.03125, %v311_v31 }
 0x22a   :  { %v328_v34 = vadd.f32 1e-06, %v322_v32  ;;  %v329_v35 = vadd.f32 1e-06, %v323_v33 }
 0x22b   :  { %v314_v36 = vpop.xlane.xlu1 %313 }
 0x22c   :  { %5591 = vrsqrt.f32 %v328_v34  ;;  %v324_v37 = vmul.f32 0.03125, %v314_v36 }
 0x22d   :  { %5593 = vrsqrt.f32 %v329_v35 }
 0x22e   :  { %v330_v38 = vadd.f32 1e-06, %v324_v37 }
 0x22f   :  { %v320_v39 = vpop.xlane.xlu1 %319  ;;  %v317_v40 = vpop.xlane.xlu0 %316 }
 0x230   :  { %5595 = vrsqrt.f32 %v330_v38  ;;  %v326_v41 = vmul.f32 0.03125, %v320_v39  ;;  %v325_v42 = vmul.f32 0.03125, %v317_v40 }
 0x232   :  { %v332_v43 = vadd.f32 1e-06, %v326_v41  ;;  %v331_v44 = vadd.f32 1e-06, %v325_v42  ;;  %v261_v42 = vlaneseq }
 0x234   :  { %5597 = vrsqrt.f32 %v332_v43  ;;  %v6232_v43 = vand.u32 127, %v261_v42 }
 0x235   :  { %v5590_v45 = vpop.eup %5589  ;;  %5599 = vrsqrt.f32 %v331_v44 }
 0x236   :  { %v339_v46 = vmul.f32 %v5590_v45, %v6139_v60  ;;  %vm263_vm5 = vcmp.lt.s32.totalorder %v6232_v43, 17 }
 0x238   :  { %v351_v50 = vmul.f32 %v4642_v47, %v339_v46 }
 0x239   :  { %v5592_v48 = vpop.eup %5591 }
 0x23a   :  { %v340_v49 = vmul.f32 %v5592_v48, %v6145_v3  ;;  %v5594_v51 = vpop.eup %5593  ;;  %v363_v55 = vadd.f32 %v4643_v52, %v351_v50 }
 0x23b   :  { %v341_v57 = vmul.f32 %v5594_v51, %v6143_v2 }
 0x23c   :  { %v352_v53 = vmul.f32 %v4642_v47, %v340_v49 }
 0x23d   :  { %v5596_v54 = vpop.eup %5595  ;;  %v353_v63 = vmul.f32 %v4642_v47, %v341_v57 }
 0x23e   :  { %v364_v56 = vadd.f32 %v4643_v52, %v352_v53  ;;  %v342_v58 = vmul.f32 %v5596_v54, %v6152_v9 }
 0x23f   :  { %v365_v4 = vadd.f32 %v4643_v52, %v353_v63 }
 0x240   :  { %v369_v59 = vpack.c.bf16 %v364_v56, %v363_v55  ;;  %v354_v60 = vmul.f32 %v4642_v47, %v342_v58 }
 0x241   :  { %v5598_v61 = vpop.eup %5597 }
 0x242   :  { %v5600_v62 = vpop.eup %5599  ;;  %4991 = vmatmul.mubr.msk.bf16.vlgmr.msra.gmra.mxu1 %vm234_vm1, %v369_v59  ;;  %v366_v0 = vadd.f32 %v4643_v52, %v354_v60  ;;  %v344_v3 = vmul.f32 %v5598_v61, %v6158_v17 }
 0x243   :  { %4994 = vmatprep.mubr.msk.bf16.mxu1 %vm5873_vm3, %v5872_v26  ;;  %v343_v1 = vmul.f32 %v5600_v62, %v6160_v18 }
 0x244   :  { %v370_v5 = vpack.c.bf16 %v366_v0, %v365_v4  ;;  %v356_v6 = vmul.f32 %v4642_v47, %v344_v3 }
 0x245   :  { %v355_v2 = vmul.f32 %v4642_v47, %v343_v1 }
 0x246   :  { %v368_v8 = vadd.f32 %v4643_v52, %v356_v6 }
 0x247   :  { %v367_v7 = vadd.f32 %v4643_v52, %v355_v2 }
 0x249   :  { %v371_v9 = vpack.c.bf16 %v368_v8, %v367_v7 }
 0x24a   :  { %4995 = vmatmul.mubr.msk.bf16.gmra.mxu1 %vm234_vm1, %v370_v5 }
 0x24b   :  { %4998 = vmatprep.mubr.msk.bf16.mxu1 %vm5873_vm3, %v5872_v26 }
 0x252   :  { %4999 = vmatmul.mubr.msk.bf16.gmra.mxu1 %vm234_vm1, %v371_v9 }
 0x302   :  { %v438_v10 = vpop.f32.mrf.mxu1 }
 0x303   :  { %v439_v14 = vadd.f32 %v4644_v11, %v438_v10 }
 0x304   :  { %v4992_v12 = vpop.f32.mrf.mxu1 }
 0x306   :  { %v441_v13 = vpop.f32.mrf.mxu1 }
 0x307   :  { %v442_v15 = vadd.f32 %v4644_v11, %v441_v13 }
 0x308   :  { %v4993_v16 = vpop.f32.mrf.mxu1 }
 0x309   :  { %v6200_v17 = vpack.c.bf16 %v442_v15, %v439_v14 }
 0x30a   :  { %v446_v18 = vpop.f32.mrf.mxu1 }
 0x30b   :  { %v447_v19 = vadd.f32 %v4644_v11, %v446_v18  ;;  %467 = vrot.lane.b32.xlu1 %v6200_v17, %s5874_s19  ;;  %5006 = vmatprep.mubr.msk.bf16.mxu1 %vm471_vm4, %v6200_v17 }
 0x30c   :  { %v4996_v20 = vpop.f32.mrf.mxu1 }
 0x30d   :  { %v6206_v21 = vpack.c.bf16 %v447_v19, %v447_v19 }
 0x30e   :  { %v449_v22 = vpop.f32.mrf.mxu1 }
 0x30f   :  { %469 = vrot.lane.b32.xlu0 %v6206_v21, %s5874_s19  ;;  %v450_v32 = vadd.f32 %v4644_v11, %v449_v22 }
 0x310   :  { %v4997_v23 = vpop.f32.mrf.mxu1 }
 0x312   :  { %v454_v24 = vpop.f32.mrf.mxu1 }
 0x313   :  { %v455_v30 = vadd.f32 %v4644_v11, %v454_v24 }
 0x314   :  { %v5000_v25 = vpop.f32.mrf.mxu1 }
 0x315   :  { %v6214_v33 = vpack.c.bf16 %v455_v30, %v450_v32 }
 0x316   :  { %v457_v27 = vpop.f32.mrf.mxu1 }
 0x317   :  { %v458_v28 = vadd.f32 %v4644_v11, %v457_v27 }
 0x318   :  { %v5001_v29 = vpop.f32.mrf.mxu1 }
 0x319   :  { %v6210_v31 = vpack.c.bf16 %v458_v28, %v458_v28 }
 0x31b   :  { %536 = vrot.lane.b32.xlu1 %v6210_v31, %s5874_s19 }
 0x31f   :  { %534 = vrot.lane.b32.xlu1 %v6214_v33, %s5874_s19 }
 0x37d   :  { %v468_v36 = vpop.permute.xlu1 %467 }
 0x37e   :  { %v479_v37 = vsel %vm471_vm4, %v468_v36, 0 }
 0x381   :  { %v470_v34 = vpop.permute.xlu0 %469 }
 0x382   :  { %5394 = vmatprep.subr.msk.bf16.mxu1 %vm471_vm4, %v470_v34  ;;  %v482_v35 = vsel %vm471_vm4, %v470_v34, 0 }
 0x383   :  { %5003 = vmatpush3.bf16.xpose.msra.mxu1 %v482_v35 }
 0x384   :  { %5395 = vmatprep.subr.msk.bf16.mxu1 %vm471_vm4, %v468_v36 }
 0x38b   :  { %5005 = vmatpush3.bf16.xpose.msra.mxu1 %v479_v37 }
 0x38d   :  { %v537_v38 = vpop.permute.xlu1 %536 }
 0x38e   :  { %5396 = vmatprep.subr.msk.bf16.mxu1 %vm471_vm4, %v537_v38  ;;  %v548_v39 = vsel %vm471_vm4, %v537_v38, 0 }
 0x391   :  { %v535_v40 = vpop.permute.xlu1 %534 }
 0x392   :  { %5007 = vmatmul.mubr.msk.bf16.vlgmr.msra.gmra.mxu1 %vm471_vm4, %v6206_v21  ;;  %v545_v41 = vsel %vm471_vm4, %v535_v40, 0 }
 0x393   :  { %5011 = vmatpush3.bf16.xpose.msra.mxu1 %v548_v39  ;;  %5014 = vmatprep.mubr.msk.bf16.mxu1 %vm471_vm4, %v6214_v33 }
 0x394   :  { %5397 = vmatprep.subr.msk.bf16.mxu1 %vm471_vm4, %v535_v40 }
 0x39b   :  { %5013 = vmatpush3.bf16.xpose.msra.mxu1 %v545_v41 }
 0x3a2   :  { %5015 = vmatmul.mubr.msk.bf16.vlgmr.msra.gmra.mxu1 %vm471_vm4, %v6210_v31 }
 0x452   :  { %v5008_v44 = vpop.f32.mrf.mxu1 }
 0x453   :  { %v602_v49 = vsel %vm263_vm5, %v5008_v44, -1e+30 }
 0x454   :  { %v518_v45 = vpop.f32.mrf.mxu1  ;;  %v613_v52 = vsel %vm606_vm6, %v602_v49, -inf }
 0x455   :  { %v600_v46 = vsel %vm263_vm5, %v518_v45, -1e+30 }
 0x456   :  { %v5009_v47 = vpop.f32.mrf.mxu1  ;;  %v607_v48 = vsel %vm606_vm6, %v600_v46, -inf }
 0x457   :  { %608 = vmax.xlane.f32.xlu0 %v607_v48 }
 0x458   :  { %v521_v50 = vpop.f32.mrf.mxu1 }
 0x459   :  { %v601_v51 = vsel %vm263_vm5, %v521_v50, -1e+30 }
 0x45a   :  { %v610_v53 = vsel %vm606_vm6, %v601_v51, -inf }
 0x45b   :  { %614 = vmax.xlane.f32.xlu0 %v613_v52  ;;  %611 = vmax.xlane.f32.xlu1 %v610_v53 }
 0x462   :  { %v5016_v54 = vpop.f32.mrf.mxu1 }
 0x463   :  { %v605_v55 = vsel %vm263_vm5, %v5016_v54, -1e+30 }
 0x464   :  { %v584_v56 = vpop.f32.mrf.mxu1  ;;  %v622_v57 = vsel %vm606_vm6, %v605_v55, -inf }
 0x465   :  { %v603_v58 = vsel %vm263_vm5, %v584_v56, -1e+30  ;;  %623 = vmax.xlane.f32.xlu1 %v622_v57 }
 0x466   :  { %v5017_v59 = vpop.f32.mrf.mxu1  ;;  %v616_v60 = vsel %vm606_vm6, %v603_v58, -inf }
 0x467   :  { %617 = vmax.xlane.f32.xlu0 %v616_v60 }
 0x468   :  { %v587_v61 = vpop.f32.mrf.mxu1 }
 0x469   :  { %v604_v62 = vsel %vm263_vm5, %v587_v61, -1e+30 }
 0x46a   :  { %v619_v63 = vsel %vm606_vm6, %v604_v62, -inf }
 0x46b   :  { %620 = vmax.xlane.f32.xlu0 %v619_v63 }
 0x476   :  { %677 = vrot.lane.b32.xlu1 %v6200_v17, %s5875_s20 }
 0x47a   :  { %742 = vrot.lane.b32.xlu1 %v6210_v31, %s5875_s20 }
 0x4e0   :  { %v609_v0 = vpop.xlane.xlu0 %608 }
 0x4e1   :  { %v625_v1 = vsub.f32 %v600_v46, %v609_v0 }
 0x4e3   :  { %v631_v6 = vmul.f32 1.442695, %v625_v1 }
 0x4e4   :  { %v615_v3 = vpop.xlane.xlu0 %614  ;;  %v612_v4 = vpop.xlane.xlu1 %611 }
 0x4e5   :  { %v627_v5 = vsub.f32 %v602_v49, %v615_v3  ;;  %v626_v2 = vsub.f32 %v601_v51, %v612_v4 }
 0x4e7   :  { %v635_v7 = vmul.f32 1.442695, %v627_v5  ;;  %v633_v8 = vmul.f32 1.442695, %v626_v2 }
 0x4e9   :  { %5601 = vpow2.f32 %v635_v7 }
 0x4ea   :  { %5603 = vpow2.f32 %v633_v8 }
 0x4eb   :  { %5605 = vpow2.f32 %v631_v6 }
 0x4ee   :  { %v624_v9 = vpop.xlane.xlu1 %623 }
 0x4ef   :  { %v630_v10 = vsub.f32 %v605_v55, %v624_v9 }
 0x4f0   :  { %v618_v11 = vpop.xlane.xlu0 %617 }
 0x4f1   :  { %v641_v12 = vmul.f32 1.442695, %v630_v10  ;;  %v628_v13 = vsub.f32 %v603_v58, %v618_v11 }
 0x4f2   :  { %v678_v35 = vpop.permute.xlu1 %677 }
 0x4f3   :  { %5607 = vpow2.f32 %v641_v12  ;;  %v637_v14 = vmul.f32 1.442695, %v628_v13 }
 0x4f4   :  { %v621_v28 = vpop.xlane.xlu0 %620 }
 0x4f5   :  { %5609 = vpow2.f32 %v637_v14  ;;  %v629_v29 = vsub.f32 %v604_v62, %v621_v28 }
 0x4f6   :  { %v5602_v15 = vpop.eup %5601  ;;  %v743_v36 = vpop.permute.xlu1 %742 }
 0x4f7   :  { %v5604_v16 = vpop.eup %5603  ;;  %v649_v18 = vsel %vm606_vm6, %v5602_v15, 0.0  ;;  %v639_v30 = vmul.f32 1.442695, %v629_v29  ;;  %v752_v53 = vsel %vm688_vm7, %v743_v36, 0 }
 0x4f8   :  { %v5606_v19 = vpop.eup %5605  ;;  %v646_v20 = vsel %vm606_vm6, %v5604_v16, 0.0  ;;  %650 = vadd.xlane.f32.xlu0 %v649_v18 }
 0x4f9   :  { %647 = vadd.xlane.f32.xlu1 %v646_v20  ;;  %v643_v22 = vsel %vm606_vm6, %v5606_v19, 0.0  ;;  %5611 = vpow2.f32 %v639_v30 }
 0x4fc   :  { %644 = vadd.xlane.f32.xlu0 %v643_v22 }
 0x500   :  { %v6260_v23 = vpop.eup %5607 }
 0x501   :  { %v658_v24 = vsel %vm606_vm6, %v6260_v23, 0.0 }
 0x502   :  { %v6264_v25 = vpop.eup %5609  ;;  %659 = vadd.xlane.f32.xlu1 %v658_v24 }
 0x503   :  { %v652_v27 = vsel %vm606_vm6, %v6264_v25, 0.0 }
 0x506   :  { %653 = vadd.xlane.f32.xlu1 %v652_v27  ;;  %v5612_v32 = vpop.eup %5611 }
 0x507   :  { %v655_v34 = vsel %vm606_vm6, %v5612_v32, 0.0 }
 0x512   :  { %679 = vrot.lane.b32.xlu0 %v6206_v21, %s5875_s20 }
 0x517   :  { %740 = vrot.lane.b32.xlu1 %v6214_v33, %s5875_s20 }
 0x51b   :  { %806 = vrot.lane.b32.xlu1 %v6200_v17, %s5876_s27 }
 0x51f   :  { %802 = vrot.lane.b32.xlu1 %v6200_v17, %s5877_s28 }
 0x523   :  { %874 = vrot.lane.b32.xlu1 %v6214_v33, %s5876_s27 }
 0x527   :  { %872 = vrot.lane.b32.xlu1 %v6210_v31, %s5877_s28 }
 0x531   :  { %656 = vadd.xlane.f32.xlu0 %v655_v34 }
 0x547   :  { %808 = vrot.lane.b32.xlu0 %v6206_v21, %s5876_s27 }
 0x54b   :  { %876 = vrot.lane.b32.xlu0 %v6210_v31, %s5876_s27 }
 0x54f   :  { %804 = vrot.lane.b32.xlu0 %v6206_v21, %s5877_s28 }
 0x553   :  { %870 = vrot.lane.b32.xlu0 %v6214_v33, %s5877_s28 }
 0x581   :  { %v651_v37 = vpop.xlane.xlu0 %650 }
 0x582   :  { %v648_v38 = vpop.xlane.xlu1 %647  ;;  %5613 = vrcp.f32 %v651_v37 }
 0x583   :  { %5615 = vrcp.f32 %v648_v38 }
 0x585   :  { %v645_v39 = vpop.xlane.xlu0 %644 }
 0x586   :  { %5617 = vrcp.f32 %v645_v39 }
 0x589   :  { %v680_v40 = vpop.permute.xlu0 %679 }
 0x58a   :  { %5398 = vmatprep.subr.msk.bf16.mxu1 %vm688_vm7, %v680_v40  ;;  %v690_v41 = vsel %vm688_vm7, %v680_v40, 0 }
 0x58b   :  { %5019 = vmatpush3.bf16.msra.mxu1 %v690_v41  ;;  %v660_v42 = vpop.xlane.xlu1 %659 }
 0x58c   :  { %5020 = vmatprep.subr.bf16.mxu1 %v678_v35  ;;  %5619 = vrcp.f32 %v660_v42 }
 0x58f   :  { %5021 = vmatpush3.bf16.msra.mxu1 %v678_v35  ;;  %v5614_v44 = vpop.eup %5613  ;;  %v654_v48 = vpop.xlane.xlu1 %653 }
 0x590   :  { %5399 = vmatprep.subr.msk.bf16.mxu1 %vm688_vm7, %v743_v36  ;;  %v5616_v45 = vpop.eup %5615  ;;  %v669_v47 = vmul.f32 %v5614_v44, %v5602_v15  ;;  %5621 = vrcp.f32 %v654_v48 }
 0x591   :  { %v668_v50 = vmul.f32 %v5616_v45, %v5604_v16 }
 0x592   :  { %v674_v52 = vpack.c.bf16 %v669_v47, %v669_v47 }
 0x593   :  { %v5618_v46 = vpop.eup %5617  ;;  %v741_v54 = vpop.permute.xlu1 %740 }
 0x594   :  { %v667_v49 = vmul.f32 %v5618_v46, %v5606_v19 }
 0x596   :  { %v673_v51 = vpack.c.bf16 %v668_v50, %v667_v49 }
 0x597   :  { %v807_v55 = vpop.permute.xlu1 %806 }
 0x598   :  { %5022 = vmatprep.mubr.msk.bf16.mxu1 %vm606_vm6, %v673_v51  ;;  %v817_v11 = vsel %vm471_vm4, %v807_v55, 0 }
 0x599   :  { %5023 = vmatmul.mubr.msk.bf16.vlgmr.msra.gmra.mxu1 %vm606_vm6, %v674_v52  ;;  %v5620_v62 = vpop.eup %5619 }
 0x59a   :  { %5027 = vmatpush3.bf16.msra.mxu1 %v752_v53  ;;  %v672_v3 = vmul.f32 %v5620_v62, %v6260_v23 }
 0x59b   :  { %5028 = vmatprep.subr.bf16.mxu1 %v741_v54  ;;  %v803_v57 = vpop.permute.xlu1 %802 }
 0x59c   :  { %v676_v8 = vpack.c.bf16 %v672_v3, %v672_v3 }
 0x59d   :  { %v5622_v63 = vpop.eup %5621 }
 0x59e   :  { %5029 = vmatpush3.bf16.msra.mxu1 %v741_v54  ;;  %v670_v4 = vmul.f32 %v5622_v63, %v6264_v25 }
 0x59f   :  { %v875_v61 = vpop.permute.xlu1 %874 }
 0x5a0   :  { %v885_v6 = vsel %vm471_vm4, %v875_v61, 0 }
 0x5a3   :  { %v873_v10 = vpop.permute.xlu1 %872 }
 0x5ba   :  { %v657_v56 = vpop.xlane.xlu0 %656 }
 0x5bb   :  { %5623 = vrcp.f32 %v657_v56 }
 0x5be   :  { %v809_v58 = vpop.permute.xlu0 %808 }
 0x5bf   :  { %5400 = vmatprep.subr.msk.bf16.mxu1 %vm471_vm4, %v809_v58  ;;  %v820_v9 = vsel %vm471_vm4, %v809_v58, 0 }
 0x5c2   :  { %v877_v59 = vpop.permute.xlu0 %876 }
 0x5c3   :  { %5402 = vmatprep.subr.msk.bf16.mxu0 %vm471_vm4, %v877_v59  ;;  %v888_v60 = vsel %vm471_vm4, %v877_v59, 0 }
 0x5c4   :  { %5043 = vmatpush3.bf16.xpose.msra.mxu0 %v888_v60 }
 0x5c5   :  { %5403 = vmatprep.subr.msk.bf16.mxu0 %vm471_vm4, %v875_v61 }
 0x5c6   :  { %v805_v0 = vpop.permute.xlu0 %804 }
 0x5c8   :  { %v5624_v1 = vpop.eup %5623 }
 0x5c9   :  { %v671_v5 = vmul.f32 %v5624_v1, %v5612_v32 }
 0x5ca   :  { %v871_v2 = vpop.permute.xlu0 %870 }
 0x5cb   :  { %5046 = vmatprep.mubr.msk.bf16.mxu0 %vm471_vm4, %v871_v2  ;;  %v675_v7 = vpack.c.bf16 %v671_v5, %v670_v4 }
 0x5cc   :  { %5045 = vmatpush3.bf16.xpose.msra.mxu0 %v885_v6 }
 0x5cd   :  { %5030 = vmatprep.mubr.msk.bf16.mxu1 %vm606_vm6, %v675_v7 }
 0x5ce   :  { %5031 = vmatmul.mubr.msk.bf16.vlgmr.msra.gmra.mxu1 %vm606_vm6, %v676_v8 }
 0x5cf   :  { %5035 = vmatpush3.bf16.xpose.msra.mxu1 %v820_v9  ;;  %5038 = vmatprep.mubr.msk.bf16.mxu1 %vm471_vm4, %v803_v57 }
 0x5d0   :  { %5401 = vmatprep.subr.msk.bf16.mxu1 %vm471_vm4, %v807_v55 }
 0x5d3   :  { %5047 = vmatmul.mubr.msk.bf16.vlgmr.msra.gmra.mxu0 %vm471_vm4, %v873_v10 }
 0x5d7   :  { %5037 = vmatpush3.bf16.xpose.msra.mxu1 %v817_v11 }
 0x5de   :  { %5039 = vmatmul.mubr.msk.bf16.vlgmr.msra.gmra.mxu1 %vm471_vm4, %v805_v0 }
 0x659   :  { %v6311_v12 = vpop.f32.mrf.mxu1 }
 0x65b   :  { %v6313_v13 = vpop.f32.mrf.mxu1 }
 0x65d   :  { %v5025_v14 = vpop.f32.mrf.mxu1 }
 0x65f   :  { %v6315_v15 = vpop.f32.mrf.mxu1 }
 0x68e   :  { %v6317_v16 = vpop.f32.mrf.mxu1 }
 0x690   :  { %v6319_v18 = vpop.f32.mrf.mxu1 }
 0x692   :  { %v5033_v19 = vpop.f32.mrf.mxu1 }
 0x693   :  { %v5048_v20 = vpop.f32.mrf.mxu0 }
 0x694   :  { %v6321_v24 = vpop.f32.mrf.mxu1  ;;  %v943_v38 = vsel %vm263_vm5, %v5048_v20, -1e+30 }
 0x695   :  { %v924_v22 = vpop.f32.mrf.mxu0  ;;  %v959_v41 = vsel %vm606_vm6, %v943_v38, -inf }
 0x696   :  { %v941_v39 = vsel %vm263_vm5, %v924_v22, -1e+30 }
 0x697   :  { %v5049_v23 = vpop.f32.mrf.mxu0  ;;  %v953_v42 = vsel %vm606_vm6, %v941_v39, -inf }
 0x699   :  { %v927_v40 = vpop.f32.mrf.mxu0 }
 0x69a   :  { %v942_v44 = vsel %vm263_vm5, %v927_v40, -1e+30 }
 0x69b   :  { %v956_v45 = vsel %vm606_vm6, %v942_v44, -inf }
 0x69e   :  { %v5040_v25 = vpop.f32.mrf.mxu1 }
 0x69f   :  { %v940_v32 = vsel %vm263_vm5, %v5040_v25, -1e+30 }
 0x6a0   :  { %v856_v27 = vpop.f32.mrf.mxu1  ;;  %v950_v36 = vsel %vm606_vm6, %v940_v32, -inf }
 0x6a1   :  { %v938_v28 = vsel %vm263_vm5, %v856_v27, -1e+30 }
 0x6a2   :  { %v5041_v29 = vpop.f32.mrf.mxu1  ;;  %v944_v30 = vsel %vm606_vm6, %v938_v28, -inf }
 0x6a3   :  { %945 = vmax.xlane.f32.xlu0 %v944_v30 }
 0x6a4   :  { %v859_v34 = vpop.f32.mrf.mxu1 }
 0x6a5   :  { %v939_v35 = vsel %vm263_vm5, %v859_v34, -1e+30 }
 0x6a6   :  { %v947_v37 = vsel %vm606_vm6, %v939_v35, -inf }
 0x6a7   :  { %951 = vmax.xlane.f32.xlu0 %v950_v36  ;;  %948 = vmax.xlane.f32.xlu1 %v947_v37 }
 0x6ab   :  { %960 = vmax.xlane.f32.xlu1 %v959_v41  ;;  %954 = vmax.xlane.f32.xlu0 %v953_v42 }
 0x6af   :  { %957 = vmax.xlane.f32.xlu0 %v956_v45 }
 0x72c   :  { %v946_v46 = vpop.xlane.xlu0 %945 }
 0x72d   :  { %v962_v58 = vsub.f32 %v938_v28, %v946_v46 }
 0x72f   :  { %v968_v61 = vmul.f32 1.442695, %v962_v58 }
 0x730   :  { %v949_v47 = vpop.xlane.xlu1 %948  ;;  %v952_v48 = vpop.xlane.xlu0 %951 }
 0x731   :  { %v964_v53 = vsub.f32 %v940_v32, %v952_v48  ;;  %v963_v8 = vsub.f32 %v939_v35, %v949_v47 }
 0x733   :  { %v972_v59 = vmul.f32 1.442695, %v964_v53  ;;  %v970_v9 = vmul.f32 1.442695, %v963_v8 }
 0x734   :  { %v961_v49 = vpop.xlane.xlu1 %960  ;;  %v955_v50 = vpop.xlane.xlu0 %954 }
 0x735   :  { %v967_v51 = vsub.f32 %v943_v38, %v961_v49  ;;  %v965_v52 = vsub.f32 %v941_v39, %v955_v50 }
 0x737   :  { %v974_v54 = vmul.f32 1.442695, %v965_v52  ;;  %v978_v55 = vmul.f32 1.442695, %v967_v51 }
 0x738   :  { %v958_v56 = vpop.xlane.xlu0 %957 }
 0x739   :  { %v966_v57 = vsub.f32 %v942_v44, %v958_v56  ;;  %5625 = vpow2.f32 %v974_v54 }
 0x73a   :  { %5627 = vpow2.f32 %v978_v55 }
 0x73b   :  { %v976_v60 = vmul.f32 1.442695, %v966_v57 }
 0x73d   :  { %5629 = vpow2.f32 %v976_v60 }
 0x73e   :  { %5631 = vpow2.f32 %v972_v59 }
 0x73f   :  { %5633 = vpow2.f32 %v968_v61 }
 0x740   :  { %5635 = vpow2.f32 %v970_v9 }
 0x746   :  { %v5626_v62 = vpop.eup %5625 }
 0x747   :  { %v989_v63 = vsel %vm606_vm6, %v5626_v62, 0.0  ;;  %v6342_v0 = vpop.eup %5627 }
 0x748   :  { %990 = vadd.xlane.f32.xlu1 %v989_v63  ;;  %v995_v5 = vsel %vm606_vm6, %v6342_v0, 0.0 }
 0x74a   :  { %v5630_v1 = vpop.eup %5629 }
 0x74b   :  { %v992_v3 = vsel %vm606_vm6, %v5630_v1, 0.0  ;;  %v6345_v4 = vpop.eup %5631 }
 0x74c   :  { %993 = vadd.xlane.f32.xlu0 %v992_v3  ;;  %996 = vadd.xlane.f32.xlu1 %v995_v5  ;;  %v986_v2 = vsel %vm606_vm6, %v6345_v4, 0.0  ;;  %v6351_v6 = vpop.eup %5633 }
 0x74d   :  { %v980_v7 = vsel %vm606_vm6, %v6351_v6, 0.0  ;;  %v5636_v10 = vpop.eup %5635 }
 0x74e   :  { %v983_v11 = vsel %vm606_vm6, %v5636_v10, 0.0 }
 0x750   :  { %987 = vadd.xlane.f32.xlu0 %v986_v2 }
 0x754   :  { %981 = vadd.xlane.f32.xlu0 %v980_v7 }
 0x75d   :  { %1014 = vrot.lane.b32.xlu1 %v6200_v17, %s5878_s2 }
 0x761   :  { %1144 = vrot.lane.b32.xlu1 %v6206_v21, %s5879_s29 }
 0x76a   :  { %1016 = vrot.lane.b32.xlu0 %v6206_v21, %s5878_s2 }
 0x76e   :  { %1076 = vrot.lane.b32.xlu0 %v6214_v33, %s5878_s2 }
 0x772   :  { %1212 = vrot.lane.b32.xlu0 %v6210_v31, %s5879_s29 }
 0x776   :  { %1140 = vrot.lane.b32.xlu0 %v6206_v21, %s5880_s1 }
 0x77a   :  { %1206 = vrot.lane.b32.xlu0 %v6214_v33, %s5880_s1 }
 0x785   :  { %984 = vadd.xlane.f32.xlu1 %v983_v11 }
 0x796   :  { %1078 = vrot.lane.b32.xlu1 %v6210_v31, %s5878_s2 }
 0x79a   :  { %1142 = vrot.lane.b32.xlu1 %v6200_v17, %s5879_s29 }
 0x79e   :  { %1138 = vrot.lane.b32.xlu1 %v6200_v17, %s5880_s1 }
 0x7a2   :  { %1210 = vrot.lane.b32.xlu1 %v6214_v33, %s5879_s29 }
 0x7a6   :  { %1208 = vrot.lane.b32.xlu1 %v6210_v31, %s5880_s1 }
 0x7d1   :  { %v991_v14 = vpop.xlane.xlu1 %990 }
 0x7d2   :  { %5637 = vrcp.f32 %v991_v14 }
 0x7d5   :  { %v994_v19 = vpop.xlane.xlu0 %993  ;;  %v997_v22 = vpop.xlane.xlu1 %996 }
 0x7d6   :  { %5639 = vrcp.f32 %v994_v19 }
 0x7d7   :  { %5641 = vrcp.f32 %v997_v22 }
 0x7d9   :  { %v988_v20 = vpop.xlane.xlu0 %987  ;;  %v1015_v27 = vpop.permute.xlu1 %1014 }
 0x7da   :  { %5643 = vrcp.f32 %v988_v20 }
 0x7dd   :  { %v982_v23 = vpop.xlane.xlu0 %981  ;;  %v1145_v36 = vpop.permute.xlu1 %1144 }
 0x7de   :  { %5645 = vrcp.f32 %v982_v23  ;;  %v1156_v60 = vsel %vm471_vm4, %v1145_v36, 0 }
 0x7df   :  { %v5638_v25 = vpop.eup %5637 }
 0x7e0   :  { %v1007_v32 = vmul.f32 %v5638_v25, %v5626_v62 }
 0x7e1   :  { %v1017_v28 = vpop.permute.xlu0 %1016 }
 0x7e2   :  { %5404 = vmatprep.subr.msk.bf16.mxu1 %vm688_vm7, %v1017_v28  ;;  %v1026_v29 = vsel %vm688_vm7, %v1017_v28, 0 }
 0x7e3   :  { %v5640_v30 = vpop.eup %5639  ;;  %5051 = vmatpush3.bf16.msra.mxu1 %v1026_v29 }
 0x7e4   :  { %5052 = vmatprep.subr.bf16.mxu1 %v1015_v27  ;;  %v1008_v34 = vmul.f32 %v5640_v30, %v5630_v1  ;;  %v5642_v40 = vpop.eup %5641 }
 0x7e5   :  { %v1077_v37 = vpop.permute.xlu0 %1076  ;;  %v1009_v45 = vmul.f32 %v5642_v40, %v6342_v0 }
 0x7e6   :  { %v1012_v35 = vpack.c.bf16 %v1008_v34, %v1007_v32 }
 0x7e7   :  { %5053 = vmatpush3.bf16.msra.mxu1 %v1015_v27  ;;  %v5644_v47 = vpop.eup %5643  ;;  %v1013_v48 = vpack.c.bf16 %v1009_v45, %v1009_v45 }
 0x7e8   :  { %5062 = vmatprep.mubr.msk.bf16.mxu0 %vm606_vm6, %v1012_v35  ;;  %5406 = vmatprep.subr.msk.bf16.mxu1 %vm471_vm4, %v1145_v36  ;;  %v1006_v54 = vmul.f32 %v5644_v47, %v6345_v4 }
 0x7e9   :  { %v1213_v39 = vpop.permute.xlu0 %1212 }
 0x7ea   :  { %v1224_v52 = vsel %vm471_vm4, %v1213_v39, 0  ;;  %v1011_v59 = vpack.c.bf16 %v1006_v54, %v1006_v54 }
 0x7eb   :  { %v5646_v49 = vpop.eup %5645 }
 0x7ec   :  { %v1004_v55 = vmul.f32 %v5646_v49, %v6351_v6 }
 0x7ed   :  { %v1141_v44 = vpop.permute.xlu0 %1140 }
 0x7f1   :  { %v1207_v51 = vpop.permute.xlu0 %1206 }
 0x80e   :  { %v985_v38 = vpop.xlane.xlu1 %984 }
 0x80f   :  { %5647 = vrcp.f32 %v985_v38 }
 0x812   :  { %v1079_v41 = vpop.permute.xlu1 %1078 }
 0x813   :  { %5405 = vmatprep.subr.msk.bf16.mxu0 %vm688_vm7, %v1079_v41  ;;  %v1088_v42 = vsel %vm688_vm7, %v1079_v41, 0 }
 0x814   :  { %5059 = vmatpush3.bf16.msra.mxu0 %v1088_v42 }
 0x815   :  { %5060 = vmatprep.subr.bf16.mxu0 %v1077_v37 }
 0x816   :  { %v1143_v46 = vpop.permute.xlu1 %1142 }
 0x817   :  { %v1153_v63 = vsel %vm471_vm4, %v1143_v46, 0 }
 0x818   :  { %5061 = vmatpush3.bf16.msra.mxu0 %v1077_v37 }
 0x819   :  { %5408 = vmatprep.subr.msk.bf16.mxu0 %vm471_vm4, %v1213_v39 }
 0x81a   :  { %v1139_v50 = vpop.permute.xlu1 %1138 }
 0x81b   :  { %5063 = vmatmul.mubr.msk.bf16.vlgmr.msra.gmra.mxu0 %vm606_vm6, %v1013_v48 }
 0x81c   :  { %v5648_v53 = vpop.eup %5647  ;;  %5075 = vmatpush3.bf16.xpose.msra.mxu0 %v1224_v52  ;;  %5078 = vmatprep.mubr.msk.bf16.mxu0 %vm471_vm4, %v1207_v51 }
 0x81d   :  { %v1005_v56 = vmul.f32 %v5648_v53, %v5636_v10 }
 0x81e   :  { %v1211_v57 = vpop.permute.xlu1 %1210 }
 0x81f   :  { %5409 = vmatprep.subr.msk.bf16.mxu0 %vm471_vm4, %v1211_v57  ;;  %v1010_v58 = vpack.c.bf16 %v1005_v56, %v1004_v55  ;;  %v1221_v61 = vsel %vm471_vm4, %v1211_v57, 0 }
 0x821   :  { %5054 = vmatprep.mubr.msk.bf16.mxu1 %vm606_vm6, %v1010_v58 }
 0x822   :  { %5055 = vmatmul.mubr.msk.bf16.vlgmr.msra.gmra.mxu1 %vm606_vm6, %v1011_v59  ;;  %v1209_v62 = vpop.permute.xlu1 %1208 }
 0x823   :  { %5067 = vmatpush3.bf16.xpose.msra.mxu1 %v1156_v60  ;;  %5070 = vmatprep.mubr.msk.bf16.mxu1 %vm471_vm4, %v1139_v50 }
 0x824   :  { %5407 = vmatprep.subr.msk.bf16.mxu1 %vm471_vm4, %v1143_v46  ;;  %5077 = vmatpush3.bf16.xpose.msra.mxu0 %v1221_v61 }
 0x82b   :  { %5069 = vmatpush3.bf16.xpose.msra.mxu1 %v1153_v63  ;;  %5079 = vmatmul.mubr.msk.bf16.vlgmr.msra.gmra.mxu0 %vm471_vm4, %v1209_v62 }
 0x832   :  { %5071 = vmatmul.mubr.msk.bf16.vlgmr.msra.gmra.mxu1 %vm471_vm4, %v1141_v44 }
 0x8db   :  { %v6403_v0 = vpop.f32.mrf.mxu0 }
 0x8dd   :  { %v6405_v1 = vpop.f32.mrf.mxu0 }
 0x8df   :  { %v5065_v3 = vpop.f32.mrf.mxu0 }
 0x8e1   :  { %v6407_v4 = vpop.f32.mrf.mxu0 }
 0x8e2   :  { %v5489_v5 = vpack.i.bf16 %v6403_v0, %v6407_v4  ;;  %v6411_v2 = vpop.f32.mrf.mxu1 }
 0x8e3   :  { %v5474_v6 = vpack.i.bf16 %v6405_v1, %v6411_v2 }
 0x8e4   :  { %v6415_v7 = vpop.f32.mrf.mxu1 }
 0x8e6   :  { %v5057_v8 = vpop.f32.mrf.mxu1 }
 0x8e8   :  { %v6417_v9 = vpop.f32.mrf.mxu1 }
 0x8e9   :  { %v5459_v10 = vpack.i.bf16 %v6417_v9, %v6415_v7 }
 0x8eb   :  { %v5080_v11 = vpop.f32.mrf.mxu0 }
 0x8ec   :  { %v1279_v35 = vsel %vm263_vm5, %v5080_v11, -1e+30 }
 0x8ed   :  { %v1260_v14 = vpop.f32.mrf.mxu0  ;;  %v1295_v38 = vsel %vm606_vm6, %v1279_v35, -inf }
 0x8ee   :  { %v1277_v36 = vsel %vm263_vm5, %v1260_v14, -1e+30 }
 0x8ef   :  { %v5081_v19 = vpop.f32.mrf.mxu0  ;;  %v1289_v39 = vsel %vm606_vm6, %v1277_v36, -inf }
 0x8f1   :  { %v1263_v37 = vpop.f32.mrf.mxu0 }
 0x8f2   :  { %v5072_v20 = vpop.f32.mrf.mxu1  ;;  %v1278_v40 = vsel %vm263_vm5, %v1263_v37, -1e+30 }
 0x8f3   :  { %v1276_v28 = vsel %vm263_vm5, %v5072_v20, -1e+30  ;;  %v1292_v41 = vsel %vm606_vm6, %v1278_v40, -inf }
 0x8f4   :  { %v1192_v22 = vpop.f32.mrf.mxu1  ;;  %v1286_v32 = vsel %vm606_vm6, %v1276_v28, -inf }
 0x8f5   :  { %v1274_v23 = vsel %vm263_vm5, %v1192_v22, -1e+30 }
 0x8f6   :  { %v5073_v25 = vpop.f32.mrf.mxu1  ;;  %v1280_v27 = vsel %vm606_vm6, %v1274_v23, -inf }
 0x8f7   :  { %1281 = vmax.xlane.f32.xlu0 %v1280_v27 }
 0x8f8   :  { %v1195_v29 = vpop.f32.mrf.mxu1 }
 0x8f9   :  { %v1275_v30 = vsel %vm263_vm5, %v1195_v29, -1e+30 }
 0x8fa   :  { %v1283_v34 = vsel %vm606_vm6, %v1275_v30, -inf }
 0x8fb   :  { %1287 = vmax.xlane.f32.xlu0 %v1286_v32  ;;  %1284 = vmax.xlane.f32.xlu1 %v1283_v34 }
 0x8ff   :  { %1296 = vmax.xlane.f32.xlu1 %v1295_v38  ;;  %1290 = vmax.xlane.f32.xlu0 %v1289_v39 }
 0x903   :  { %1293 = vmax.xlane.f32.xlu0 %v1292_v41 }
 0x980   :  { %v1282_v42 = vpop.xlane.xlu0 %1281 }
 0x981   :  { %v1298_v55 = vsub.f32 %v1274_v23, %v1282_v42 }
 0x983   :  { %v1304_v58 = vmul.f32 1.442695, %v1298_v55 }
 0x984   :  { %v1285_v44 = vpop.xlane.xlu1 %1284  ;;  %v1288_v45 = vpop.xlane.xlu0 %1287 }
 0x985   :  { %v1300_v50 = vsub.f32 %v1276_v28, %v1288_v45  ;;  %v1299_v20 = vsub.f32 %v1275_v30, %v1285_v44 }
 0x987   :  { %v1308_v56 = vmul.f32 1.442695, %v1300_v50  ;;  %v1306_v22 = vmul.f32 1.442695, %v1299_v20 }
 0x988   :  { %v1297_v46 = vpop.xlane.xlu1 %1296  ;;  %v1291_v47 = vpop.xlane.xlu0 %1290 }
 0x989   :  { %v1303_v48 = vsub.f32 %v1279_v35, %v1297_v46  ;;  %v1301_v49 = vsub.f32 %v1277_v36, %v1291_v47 }
 0x98b   :  { %v1310_v51 = vmul.f32 1.442695, %v1301_v49  ;;  %v1314_v52 = vmul.f32 1.442695, %v1303_v48 }
 0x98c   :  { %v1294_v53 = vpop.xlane.xlu0 %1293 }
 0x98d   :  { %v1302_v54 = vsub.f32 %v1278_v40, %v1294_v53  ;;  %5649 = vpow2.f32 %v1310_v51 }
 0x98e   :  { %5651 = vpow2.f32 %v1314_v52 }
 0x98f   :  { %v1312_v57 = vmul.f32 1.442695, %v1302_v54 }
 0x991   :  { %5653 = vpow2.f32 %v1312_v57 }
 0x992   :  { %5655 = vpow2.f32 %v1308_v56 }
 0x993   :  { %5657 = vpow2.f32 %v1304_v58 }
 0x994   :  { %5659 = vpow2.f32 %v1306_v22 }
 0x99a   :  { %v5650_v59 = vpop.eup %5649 }
 0x99b   :  { %v1325_v60 = vsel %vm606_vm6, %v5650_v59, 0.0  ;;  %v6440_v61 = vpop.eup %5651 }
 0x99c   :  { %1326 = vadd.xlane.f32.xlu1 %v1325_v60  ;;  %v1331_v8 = vsel %vm606_vm6, %v6440_v61, 0.0 }
 0x99e   :  { %v5654_v62 = vpop.eup %5653 }
 0x99f   :  { %v1328_v63 = vsel %vm606_vm6, %v5654_v62, 0.0  ;;  %v6443_v3 = vpop.eup %5655 }
 0x9a0   :  { %1329 = vadd.xlane.f32.xlu0 %v1328_v63  ;;  %1332 = vadd.xlane.f32.xlu1 %v1331_v8  ;;  %v1322_v11 = vsel %vm606_vm6, %v6443_v3, 0.0  ;;  %v6449_v14 = vpop.eup %5657 }
 0x9a1   :  { %v1316_v19 = vsel %vm606_vm6, %v6449_v14, 0.0  ;;  %v5660_v23 = vpop.eup %5659 }
 0x9a2   :  { %v1319_v25 = vsel %vm606_vm6, %v5660_v23, 0.0 }
 0x9a4   :  { %1323 = vadd.xlane.f32.xlu0 %v1322_v11 }
 0x9a8   :  { %1317 = vadd.xlane.f32.xlu0 %v1316_v19 }
 0x9b1   :  { %1350 = vrot.lane.b32.xlu1 %v6200_v17, %s5881_s4 }
 0x9b5   :  { %1480 = vrot.lane.b32.xlu1 %v6206_v21, %s7479_s30 }
 0x9be   :  { %1352 = vrot.lane.b32.xlu0 %v6206_v21, %s5881_s4 }
 0x9c2   :  { %1412 = vrot.lane.b32.xlu0 %v6214_v33, %s5881_s4 }
 0x9c6   :  { %1548 = vrot.lane.b32.xlu0 %v6210_v31, %s7479_s30 }
 0x9ca   :  { %1476 = vrot.lane.b32.xlu0 %v6206_v21, %s7471_s21 }
 0x9ce   :  { %1542 = vrot.lane.b32.xlu0 %v6214_v33, %s7471_s21 }
 0x9d9   :  { %1320 = vadd.xlane.f32.xlu1 %v1319_v25 }
 0x9ea   :  { %1414 = vrot.lane.b32.xlu1 %v6210_v31, %s5881_s4 }
 0x9ee   :  { %1478 = vrot.lane.b32.xlu1 %v6200_v17, %s7479_s30 }
 0x9f2   :  { %1474 = vrot.lane.b32.xlu1 %v6200_v17, %s7471_s21 }
 0x9f6   :  { %1546 = vrot.lane.b32.xlu1 %v6214_v33, %s7479_s30 }
 0x9fa   :  { %1544 = vrot.lane.b32.xlu1 %v6210_v31, %s7471_s21  ;;  %s7473_s21 = smov 24  }
 0xa25   :  { %v1327_v27 = vpop.xlane.xlu1 %1326 }
 0xa26   :  { %5661 = vrcp.f32 %v1327_v27 }
 0xa29   :  { %v1330_v28 = vpop.xlane.xlu0 %1329  ;;  %v1333_v30 = vpop.xlane.xlu1 %1332 }
 0xa2a   :  { %5663 = vrcp.f32 %v1330_v28 }
 0xa2b   :  { %5665 = vrcp.f32 %v1333_v30 }
 0xa2d   :  { %v1324_v29 = vpop.xlane.xlu0 %1323  ;;  %v1351_v35 = vpop.permute.xlu1 %1350 }
 0xa2e   :  { %5667 = vrcp.f32 %v1324_v29 }
 0xa31   :  { %v1318_v32 = vpop.xlane.xlu0 %1317  ;;  %v1481_v42 = vpop.permute.xlu1 %1480 }
 0xa32   :  { %5669 = vrcp.f32 %v1318_v32  ;;  %v1492_v19 = vsel %vm471_vm4, %v1481_v42, 0 }
 0xa33   :  { %v5662_v34 = vpop.eup %5661 }
 0xa34   :  { %v1343_v39 = vmul.f32 %v5662_v34, %v5650_v59 }
 0xa35   :  { %v1353_v36 = vpop.permute.xlu0 %1352 }
 0xa36   :  { %5410 = vmatprep.subr.msk.bf16.mxu1 %vm688_vm7, %v1353_v36  ;;  %v1362_v37 = vsel %vm688_vm7, %v1353_v36, 0 }
 0xa37   :  { %v5664_v38 = vpop.eup %5663  ;;  %5083 = vmatpush3.bf16.msra.mxu1 %v1362_v37 }
 0xa38   :  { %5084 = vmatprep.subr.bf16.mxu1 %v1351_v35  ;;  %v1344_v40 = vmul.f32 %v5664_v38, %v5654_v62  ;;  %v5666_v47 = vpop.eup %5665 }
 0xa39   :  { %v1413_v44 = vpop.permute.xlu0 %1412  ;;  %v1345_v51 = vmul.f32 %v5666_v47, %v6440_v61 }
 0xa3a   :  { %v1348_v41 = vpack.c.bf16 %v1344_v40, %v1343_v39 }
 0xa3b   :  { %5085 = vmatpush3.bf16.msra.mxu1 %v1351_v35  ;;  %v5668_v53 = vpop.eup %5667  ;;  %v1349_v54 = vpack.c.bf16 %v1345_v51, %v1345_v51 }
 0xa3c   :  { %5094 = vmatprep.mubr.msk.bf16.mxu0 %vm606_vm6, %v1348_v41  ;;  %5412 = vmatprep.subr.msk.bf16.mxu1 %vm471_vm4, %v1481_v42  ;;  %v1342_v60 = vmul.f32 %v5668_v53, %v6443_v3 }
 0xa3d   :  { %v1549_v46 = vpop.permute.xlu0 %1548 }
 0xa3e   :  { %v1560_v58 = vsel %vm471_vm4, %v1549_v46, 0  ;;  %v1347_v11 = vpack.c.bf16 %v1342_v60, %v1342_v60 }
 0xa3f   :  { %v5670_v55 = vpop.eup %5669 }
 0xa40   :  { %v1340_v61 = vmul.f32 %v5670_v55, %v6449_v14 }
 0xa41   :  { %v1477_v50 = vpop.permute.xlu0 %1476 }
 0xa45   :  { %v1543_v57 = vpop.permute.xlu0 %1542 }
 0xa62   :  { %v1321_v45 = vpop.xlane.xlu1 %1320 }
 0xa63   :  { %5671 = vrcp.f32 %v1321_v45 }
 0xa66   :  { %v1415_v48 = vpop.permute.xlu1 %1414 }
 0xa67   :  { %5411 = vmatprep.subr.msk.bf16.mxu0 %vm688_vm7, %v1415_v48  ;;  %v1424_v49 = vsel %vm688_vm7, %v1415_v48, 0 }
 0xa68   :  { %5091 = vmatpush3.bf16.msra.mxu0 %v1424_v49 }
 0xa69   :  { %5092 = vmatprep.subr.bf16.mxu0 %v1413_v44 }
 0xa6a   :  { %v1479_v52 = vpop.permute.xlu1 %1478 }
 0xa6b   :  { %v1489_v14 = vsel %vm471_vm4, %v1479_v52, 0 }
 0xa6c   :  { %5093 = vmatpush3.bf16.msra.mxu0 %v1413_v44 }
 0xa6d   :  { %5414 = vmatprep.subr.msk.bf16.mxu0 %vm471_vm4, %v1549_v46 }
 0xa6e   :  { %v1475_v56 = vpop.permute.xlu1 %1474 }
 0xa6f   :  { %5095 = vmatmul.mubr.msk.bf16.vlgmr.msra.gmra.mxu0 %vm606_vm6, %v1349_v54 }
 0xa70   :  { %v5672_v59 = vpop.eup %5671  ;;  %5107 = vmatpush3.bf16.xpose.msra.mxu0 %v1560_v58  ;;  %5110 = vmatprep.mubr.msk.bf16.mxu0 %vm471_vm4, %v1543_v57 }
 0xa71   :  { %v1341_v62 = vmul.f32 %v5672_v59, %v5660_v23 }
 0xa72   :  { %v1547_v63 = vpop.permute.xlu1 %1546 }
 0xa73   :  { %5415 = vmatprep.subr.msk.bf16.mxu0 %vm471_vm4, %v1547_v63  ;;  %v1346_v8 = vpack.c.bf16 %v1341_v62, %v1340_v61  ;;  %v1557_v20 = vsel %vm471_vm4, %v1547_v63, 0 }
 0xa75   :  { %5086 = vmatprep.mubr.msk.bf16.mxu1 %vm606_vm6, %v1346_v8 }
 0xa76   :  { %5087 = vmatmul.mubr.msk.bf16.vlgmr.msra.gmra.mxu1 %vm606_vm6, %v1347_v11  ;;  %v1545_v3 = vpop.permute.xlu1 %1544 }
 0xa77   :  { %5099 = vmatpush3.bf16.xpose.msra.mxu1 %v1492_v19  ;;  %5102 = vmatprep.mubr.msk.bf16.mxu1 %vm471_vm4, %v1475_v56 }
 0xa78   :  { %5413 = vmatprep.subr.msk.bf16.mxu1 %vm471_vm4, %v1479_v52  ;;  %5109 = vmatpush3.bf16.xpose.msra.mxu0 %v1557_v20 }
 0xa7f   :  { %5101 = vmatpush3.bf16.xpose.msra.mxu1 %v1489_v14  ;;  %5111 = vmatmul.mubr.msk.bf16.vlgmr.msra.gmra.mxu0 %vm471_vm4, %v1545_v3 }
 0xa86   :  { %5103 = vmatmul.mubr.msk.bf16.vlgmr.msra.gmra.mxu1 %vm471_vm4, %v1477_v50 }
 0xb2f   :  { %v6501_v22 = vpop.f32.mrf.mxu0 }
 0xb31   :  { %v6503_v23 = vpop.f32.mrf.mxu0 }
 0xb33   :  { %v5097_v25 = vpop.f32.mrf.mxu0 }
 0xb35   :  { %v6505_v27 = vpop.f32.mrf.mxu0 }
 0xb36   :  { %v5494_v28 = vpack.i.bf16 %v6501_v22, %v6505_v27  ;;  %v6509_v29 = vpop.f32.mrf.mxu1 }
 0xb37   :  { %v5479_v30 = vpack.i.bf16 %v6503_v23, %v6509_v29 }
 0xb38   :  { %v6513_v32 = vpop.f32.mrf.mxu1 }
 0xb3a   :  { %v5089_v34 = vpop.f32.mrf.mxu1 }
 0xb3c   :  { %v6515_v35 = vpop.f32.mrf.mxu1 }
 0xb3d   :  { %v5464_v36 = vpack.i.bf16 %v6515_v35, %v6513_v32 }
 0xb3f   :  { %v5112_v37 = vpop.f32.mrf.mxu0 }
 0xb40   :  { %v1615_v51 = vsel %vm263_vm5, %v5112_v37, -1e+30 }
 0xb41   :  { %v1596_v38 = vpop.f32.mrf.mxu0  ;;  %v1631_v54 = vsel %vm606_vm6, %v1615_v51, -inf }
 0xb42   :  { %v1613_v52 = vsel %vm263_vm5, %v1596_v38, -1e+30 }
 0xb43   :  { %v5113_v39 = vpop.f32.mrf.mxu0  ;;  %v1625_v55 = vsel %vm606_vm6, %v1613_v52, -inf }
 0xb45   :  { %v1599_v53 = vpop.f32.mrf.mxu0 }
 0xb46   :  { %v5104_v40 = vpop.f32.mrf.mxu1  ;;  %v1614_v56 = vsel %vm263_vm5, %v1599_v53, -1e+30 }
 0xb47   :  { %v1612_v46 = vsel %vm263_vm5, %v5104_v40, -1e+30  ;;  %v1628_v57 = vsel %vm606_vm6, %v1614_v56, -inf }
 0xb48   :  { %v1528_v41 = vpop.f32.mrf.mxu1  ;;  %v1622_v49 = vsel %vm606_vm6, %v1612_v46, -inf }
 0xb49   :  { %v1610_v42 = vsel %vm263_vm5, %v1528_v41, -1e+30 }
 0xb4a   :  { %v5105_v44 = vpop.f32.mrf.mxu1  ;;  %v1616_v45 = vsel %vm606_vm6, %v1610_v42, -inf }
 0xb4b   :  { %1617 = vmax.xlane.f32.xlu0 %v1616_v45 }
 0xb4c   :  { %v1531_v47 = vpop.f32.mrf.mxu1 }
 0xb4d   :  { %v1611_v48 = vsel %vm263_vm5, %v1531_v47, -1e+30 }
 0xb4e   :  { %v1619_v50 = vsel %vm606_vm6, %v1611_v48, -inf }
 0xb4f   :  { %1623 = vmax.xlane.f32.xlu0 %v1622_v49  ;;  %1620 = vmax.xlane.f32.xlu1 %v1619_v50 }
 0xb53   :  { %1632 = vmax.xlane.f32.xlu1 %v1631_v54  ;;  %1626 = vmax.xlane.f32.xlu0 %v1625_v55 }
 0xb57   :  { %1629 = vmax.xlane.f32.xlu0 %v1628_v57 }
 0xbd4   :  { %v1618_v58 = vpop.xlane.xlu0 %1617 }
 0xbd5   :  { %v1634_v25 = vsub.f32 %v1610_v42, %v1618_v58 }
 0xbd7   :  { %v1640_v38 = vmul.f32 1.442695, %v1634_v25 }
 0xbd8   :  { %v1621_v59 = vpop.xlane.xlu1 %1620  ;;  %v1624_v60 = vpop.xlane.xlu0 %1623 }
 0xbd9   :  { %v1636_v11 = vsub.f32 %v1612_v46, %v1624_v60 }
 0xbdb   :  { %v1644_v34 = vmul.f32 1.442695, %v1636_v11 }
 0xbdc   :  { %v1633_v61 = vpop.xlane.xlu1 %1632  ;;  %v1627_v62 = vpop.xlane.xlu0 %1626 }
 0xbdd   :  { %v1639_v63 = vsub.f32 %v1615_v51, %v1633_v61  ;;  %v1637_v8 = vsub.f32 %v1613_v52, %v1627_v62  ;;  %v1635_v51 = vsub.f32 %v1611_v48, %v1621_v59 }
 0xbdf   :  { %v1646_v19 = vmul.f32 1.442695, %v1637_v8  ;;  %v1650_v20 = vmul.f32 1.442695, %v1639_v63  ;;  %v1642_v52 = vmul.f32 1.442695, %v1635_v51 }
 0xbe0   :  { %v1630_v3 = vpop.xlane.xlu0 %1629 }
 0xbe1   :  { %v1638_v14 = vsub.f32 %v1614_v56, %v1630_v3  ;;  %5673 = vpow2.f32 %v1646_v19 }
 0xbe2   :  { %5675 = vpow2.f32 %v1650_v20 }
 0xbe3   :  { %v1648_v37 = vmul.f32 1.442695, %v1638_v14  ;;  %v5563_v14 = vld [vmem:[%s7456_s9 + $0x8] sm:$0xff]  }
 0xbe5   :  { %5677 = vpow2.f32 %v1648_v37  ;;  %v5564_v37 = vld [vmem:[%s7456_s9] sm:$0xff]  }
 0xbe6   :  { %5679 = vpow2.f32 %v1644_v34 }
 0xbe7   :  { %5681 = vpow2.f32 %v1640_v38 }
 0xbe8   :  { %5683 = vpow2.f32 %v1642_v52 }
 0xbee   :  { %v5674_v39 = vpop.eup %5673 }
 0xbef   :  { %v1661_v40 = vsel %vm606_vm6, %v5674_v39, 0.0  ;;  %v5676_v41 = vpop.eup %5675 }
 0xbf0   :  { %1662 = vadd.xlane.f32.xlu1 %v1661_v40  ;;  %v1667_v47 = vsel %vm606_vm6, %v5676_v41, 0.0 }
 0xbf2   :  { %v5678_v44 = vpop.eup %5677 }
 0xbf3   :  { %v1664_v45 = vsel %vm606_vm6, %v5678_v44, 0.0  ;;  %v6539_v46 = vpop.eup %5679 }
 0xbf4   :  { %1665 = vadd.xlane.f32.xlu0 %v1664_v45  ;;  %1668 = vadd.xlane.f32.xlu1 %v1667_v47  ;;  %v1658_v42 = vsel %vm606_vm6, %v6539_v46, 0.0  ;;  %v6544_v49 = vpop.eup %5681 }
 0xbf5   :  { %v1652_v50 = vsel %vm606_vm6, %v6544_v49, 0.0  ;;  %v5684_v53 = vpop.eup %5683 }
 0xbf6   :  { %v1655_v54 = vsel %vm606_vm6, %v5684_v53, 0.0 }
 0xbf8   :  { %1659 = vadd.xlane.f32.xlu0 %v1658_v42 }
 0xbfc   :  { %1653 = vadd.xlane.f32.xlu0 %v1652_v50 }
 0xc05   :  { %1686 = vrot.lane.b32.xlu1 %v6200_v17, %s7469_s0 }
 0xc12   :  { %1688 = vrot.lane.b32.xlu0 %v6206_v21, %s7469_s0 }
 0xc16   :  { %5460 = vrot.lane.b32.xlu0 %v5459_v10, %s7475_s22 }
 0xc29   :  { %1656 = vadd.xlane.f32.xlu1 %v1655_v54 }
 0xc3a   :  { %1750 = vrot.lane.b32.xlu1 %v6210_v31, %s7469_s0 }
 0xc3e   :  { %1748 = vrot.lane.b32.xlu1 %v6214_v33, %s7469_s0 }
 0xc42   :  { %5465 = vrot.lane.b32.xlu1 %v5464_v36, %s7477_s23 }
 0xc46   :  { %5475 = vrot.lane.b32.xlu1 %v5474_v6, %s7475_s22 }
 0xc79   :  { %v1663_v17 = vpop.xlane.xlu1 %1662 }
 0xc7a   :  { %5685 = vrcp.f32 %v1663_v17 }
 0xc7d   :  { %v1666_v21 = vpop.xlane.xlu0 %1665  ;;  %v1669_v31 = vpop.xlane.xlu1 %1668 }
 0xc7e   :  { %5687 = vrcp.f32 %v1666_v21 }
 0xc7f   :  { %5689 = vrcp.f32 %v1669_v31 }
 0xc81   :  { %v1660_v7 = vpop.xlane.xlu0 %1659  ;;  %v1687_v35 = vpop.permute.xlu1 %1686 }
 0xc82   :  { %5691 = vrcp.f32 %v1660_v7 }
 0xc85   :  { %v1654_v9 = vpop.xlane.xlu0 %1653 }
 0xc86   :  { %5693 = vrcp.f32 %v1654_v9 }
 0xc87   :  { %v5686_v10 = vpop.eup %5685 }
 0xc88   :  { %v1679_v36 = vmul.f32 %v5686_v10, %v5674_v39 }
 0xc89   :  { %v1689_v33 = vpop.permute.xlu0 %1688 }
 0xc8a   :  { %5416 = vmatprep.subr.msk.bf16.mxu1 %vm688_vm7, %v1689_v33  ;;  %v1698_v48 = vsel %vm688_vm7, %v1689_v33, 0 }
 0xc8b   :  { %v5688_v32 = vpop.eup %5687  ;;  %5115 = vmatpush3.bf16.msra.mxu1 %v1698_v48 }
 0xc8c   :  { %5116 = vmatprep.subr.bf16.mxu1 %v1687_v35  ;;  %v1680_v1 = vmul.f32 %v5688_v32, %v5678_v44  ;;  %v5690_v55 = vpop.eup %5689 }
 0xc8d   :  { %v1681_v58 = vmul.f32 %v5690_v55, %v5676_v41  ;;  %v5461_v50 = vpop.permute.xlu0 %5460 }
 0xc8e   :  { %v1684_v2 = vpack.c.bf16 %v1680_v1, %v1679_v36  ;;  %v5463_v22 = vunpack.i.h.bf16 %v5461_v50  ;;  %v5462_v27 = vunpack.i.l.bf16 %v5461_v50 }
 0xc8f   :  { %5117 = vmatpush3.bf16.msra.mxu1 %v1687_v35  ;;  %v5692_v60 = vpop.eup %5691  ;;  %v1685_v61 = vpack.c.bf16 %v1681_v58, %v1681_v58 }
 0xc90   :  { %5126 = vmatprep.mubr.msk.bf16.mxu0 %vm606_vm6, %v1684_v2  ;;  %5130 = vmatprep.subr.bf16.mxu1 %v5872_v26  ;;  %v1678_v8 = vmul.f32 %v5692_v60, %v6539_v46  ;;  %v1883_v23 = vsel %vm471_vm4, %v6315_v15, %v5463_v22  ;;  %v1882_v29 = vsel %vm471_vm4, %v6313_v13, %v5462_v27  ;;  %v5867_v22 = vld [vmem:[%s7488_s3 + $0x10] sm:$0xff] }
 0xc92   :  { %v1683_v3 = vpack.c.bf16 %v1678_v8, %v1678_v8 }
 0xc93   :  { %v5694_v62 = vpop.eup %5693 }
 0xc94   :  { %v1676_v11 = vmul.f32 %v5694_v62, %v6544_v49 }
 0xcb2   :  { %v1657_v6 = vpop.xlane.xlu1 %1656 }
 0xcb3   :  { %5695 = vrcp.f32 %v1657_v6 }
 0xcb6   :  { %v1751_v56 = vpop.permute.xlu1 %1750 }
 0xcb7   :  { %5417 = vmatprep.subr.msk.bf16.mxu0 %vm688_vm7, %v1751_v56  ;;  %v1760_v57 = vsel %vm688_vm7, %v1751_v56, 0 }
 0xcb8   :  { %5123 = vmatpush3.bf16.msra.mxu0 %v1760_v57 }
 0xcba   :  { %v1749_v59 = vpop.permute.xlu1 %1748 }
 0xcbb   :  { %5124 = vmatprep.subr.bf16.mxu0 %v1749_v59 }
 0xcbc   :  { %5125 = vmatpush3.bf16.msra.mxu0 %v1749_v59 }
 0xcbd   :  { %5146 = vmatprep.subr.bf16.mxu0 %v5872_v26 }
 0xcbe   :  { %v5466_v49 = vpop.permute.xlu1 %5465 }
 0xcbf   :  { %5127 = vmatmul.mubr.msk.bf16.vlgmr.msra.gmra.mxu0 %vm606_vm6, %v1685_v61  ;;  %v5467_v51 = vunpack.i.l.bf16 %v5466_v49 }
 0xcc0   :  { %v5696_v63 = vpop.eup %5695  ;;  %5150 = vmatprep.mubr.msk.bf16.mxu0 %vm5873_vm3, %v5872_v26 }
 0xcc1   :  { %v1677_v19 = vmul.f32 %v5696_v63, %v5684_v53 }
 0xcc2   :  { %v5476_v52 = vpop.permute.xlu1 %5475 }
 0xcc3   :  { %v1682_v20 = vpack.c.bf16 %v1677_v19, %v1676_v11  ;;  %v5478_v54 = vunpack.i.h.bf16 %v5476_v52  ;;  %v5477_v17 = vunpack.i.l.bf16 %v5476_v52 }
 0xcc5   :  { %5118 = vmatprep.mubr.msk.bf16.mxu1 %vm606_vm6, %v1682_v20  ;;  %v1885_v13 = vsel %vm471_vm4, %v6319_v18, %v5478_v54  ;;  %v1884_v48 = vsel %vm471_vm4, %v6311_v12, %v5477_v17  ;;  %v5869_v54 = vld [vmem:[%s7488_s3 + $0x20] sm:$0xff] }
 0xcc6   :  { %5119 = vmatmul.mubr.msk.bf16.vlgmr.msra.gmra.mxu1 %vm606_vm6, %v1683_v3 }
 0xcc7   :  { %5134 = vmatprep.mubr.msk.bf16.mxu1 %vm5873_vm3, %v5872_v26  ;;  %5131 = vmatpush3.bf16.msra.mxu1 %v5563_v14 }
 0xcc8   :  { %5132 = vmatprep.subr.bf16.mxu1 %v5872_v26 }
 0xccb   :  { %5133 = vmatpush3.bf16.msra.mxu1 %v5564_v37  ;;  %v5865_v37 = vld [vmem:[%s7488_s3] sm:$0xff] }
 0xccc   :  { %5162 = vmatprep.subr.bf16.mxu1 %v5872_v26 }
 0xd7f   :  { %v5128_v25 = vpop.f32.mrf.mxu0 }
 0xd81   :  { %v1796_v34 = vpop.f32.mrf.mxu0 }
 0xd83   :  { %v5129_v38 = vpop.f32.mrf.mxu0 }
 0xd85   :  { %v1799_v47 = vpop.f32.mrf.mxu0 }
 0xd86   :  { %v5120_v39 = vpop.f32.mrf.mxu1  ;;  %v5499_v42 = vpack.i.bf16 %v5128_v25, %v1799_v47 }
 0xd87   :  { %v5484_v40 = vpack.i.bf16 %v1796_v34, %v5120_v39 }
 0xd88   :  { %v1734_v41 = vpop.f32.mrf.mxu1 }
 0xd89   :  { %5485 = vrot.lane.b32.xlu1 %v5484_v40, %s7473_s21 }
 0xd8a   :  { %v5121_v44 = vpop.f32.mrf.mxu1 }
 0xd8c   :  { %v1737_v45 = vpop.f32.mrf.mxu1 }
 0xd8d   :  { %v5469_v46 = vpack.i.bf16 %v1737_v45, %v1734_v41  ;;  %5495 = vrot.lane.b32.xlu1 %v5494_v28, %s7477_s23  ;;  %v5468_v28 = vunpack.i.h.bf16 %v5466_v49  ;;  %v5866_v45 = vld [vmem:[%s7488_s3 + $0x8] sm:$0xff] }
 0xd8f   :  { %5470 = vrot.lane.b32.xlu0 %v5469_v46, %s7473_s21 }
 0xd93   :  { %5480 = vrot.lane.b32.xlu0 %v5479_v30, %s7477_s23  ;;  %v1890_v30 = vsel %vm1888_vm8, %v1883_v23, %v5468_v28  ;;  %v5868_v23 = vld [vmem:[%s7488_s3 + $0x18] sm:$0xff] }
 0xd97   :  { %5490 = vrot.lane.b32.xlu0 %v5489_v5, %s7475_s22  ;;  %v1889_v5 = vsel %vm1888_vm8, %v1882_v29, %v5467_v51 }
 0xd9b   :  { %5500 = vrot.lane.b32.xlu0 %v5499_v42, %s7473_s21 }
 0xdfb   :  { %v5486_v31 = vpop.permute.xlu1 %5485 }
 0xdfc   :  { %v5488_v32 = vunpack.i.h.bf16 %v5486_v31  ;;  %v5487_v35 = vunpack.i.l.bf16 %v5486_v31 }
 0xdff   :  { %v5496_v57 = vpop.permute.xlu1 %5495 }
 0xe00   :  { %v5498_v63 = vunpack.i.h.bf16 %v5496_v57  ;;  %v5497_v8 = vunpack.i.l.bf16 %v5496_v57 }
 0xe01   :  { %v5471_v53 = vpop.permute.xlu0 %5470 }
 0xe02   :  { %v5473_v0 = vunpack.i.h.bf16 %v5471_v53  ;;  %v5472_v4 = vunpack.i.l.bf16 %v5471_v53 }
 0xe04   :  { %v1895_v21 = vsel %vm606_vm6, %v1889_v5, %v5472_v4  ;;  %v1896_v7 = vsel %vm606_vm6, %v1890_v30, %v5473_v0 }
 0xe05   :  { %v1901_v9 = vpack.c.bf16 %v1896_v7, %v1895_v21  ;;  %v5481_v10 = vpop.permute.xlu0 %5480 }
 0xe06   :  { %v5483_v33 = vunpack.i.h.bf16 %v5481_v10  ;;  %v5482_v15 = vunpack.i.l.bf16 %v5481_v10  ;;  %v5870_v10 = vld [vmem:[%s7488_s3 + $0x28] sm:$0xff] }
 0xe07   :  { %5135 = vmatmul.mubr.msk.bf16.vlgmr.msra.gmra.mxu1 %vm234_vm1, %v1901_v9 }
 0xe08   :  { %v1892_v36 = vsel %vm1888_vm8, %v1885_v13, %v5483_v33  ;;  %v1891_v1 = vsel %vm1888_vm8, %v1884_v48, %v5482_v15  ;;  %5138 = vmatprep.mubr.msk.bf16.mxu1 %vm5873_vm3, %v5872_v26 }
 0xe09   :  { %v5491_v2 = vpop.permute.xlu0 %5490  ;;  %v1897_v56 = vsel %vm606_vm6, %v1891_v1, %v5487_v35  ;;  %v1898_v18 = vsel %vm606_vm6, %v1892_v36, %v5488_v32 }
 0xe0a   :  { %v5493_v6 = vunpack.i.h.bf16 %v5491_v2  ;;  %v5492_v55 = vunpack.i.l.bf16 %v5491_v2  ;;  %v1902_v58 = vpack.c.bf16 %v1898_v18, %v1897_v56 }
 0xe0c   :  { %v1887_v59 = vsel %vm471_vm4, %v6317_v16, %v5493_v6  ;;  %v1886_v60 = vsel %vm471_vm4, %v6321_v24, %v5492_v55  ;;  %v4682_v24 = vld [vmem:[%s7457_s10] ss:$0 sm:$0xff] }
 0xe0d   :  { %v5501_v12 = vpop.permute.xlu0 %5500  ;;  %v1893_v11 = vsel %vm1888_vm8, %v1886_v60, %v5497_v8  ;;  %v1894_v19 = vsel %vm1888_vm8, %v1887_v59, %v5498_v63 }
 0xe0e   :  { %v5503_v61 = vunpack.i.h.bf16 %v5501_v12  ;;  %v5502_v62 = vunpack.i.l.bf16 %v5501_v12 }
 0xe0f   :  { %5139 = vmatmul.mubr.msk.bf16.gmra.mxu1 %vm234_vm1, %v1902_v58 }
 0xe10   :  { %5142 = vmatprep.mubr.msk.bf16.mxu1 %vm5873_vm3, %v5872_v26  ;;  %v1899_v20 = vsel %vm606_vm6, %v1893_v11, %v5502_v62  ;;  %v1900_v16 = vsel %vm606_vm6, %v1894_v19, %v5503_v61 }
 0xe11   :  { %v1903_v3 = vpack.c.bf16 %v1900_v16, %v1899_v20 }
 0xe17   :  { %5143 = vmatmul.mubr.msk.bf16.gmra.mxu1 %vm234_vm1, %v1903_v3 }
 0xe18   :  { %5178 = vmatprep.mubr.msk.bf16.mxu1 %vm5873_vm3, %v5872_v26 }
 0xec7   :  { %v1970_v14 = vpop.f32.mrf.mxu1 }
 0xec8   :  { %v1971_v25 = vadd.f32 %v4682_v24, %v1970_v14 }
 0xec9   :  { %v5136_v34 = vpop.f32.mrf.mxu1 }
 0xeca   :  { %v6647_v38 = vadd.f32 %v5865_v37, %v1971_v25 }
 0xecb   :  { %v1973_v39 = vpop.f32.mrf.mxu1 }
 0xecc   :  { %v1974_v40 = vadd.f32 %v4682_v24, %v1973_v39  ;;  %v2001_v41 = vsel %vm234_vm1, %v6647_v38, 0.0  ;;  %v5565_v39 = vld [vmem:[%s7458_s13 + $0x8] sm:$0xff]  }
 0xecd   :  { %2002 = vadd.xlane.f32.xlu1 %v2001_v41  ;;  %v5137_v44 = vpop.f32.mrf.mxu1  ;;  %5147 = vmatpush3.bf16.msra.mxu0 %v5565_v39  ;;  %v5574_v39 = vld [vmem:[%s7461_s15] sm:$0xff]  }
 0xece   :  { %v6654_v46 = vadd.f32 %v5866_v45, %v1974_v40  ;;  %5148 = vmatprep.subr.bf16.mxu0 %v5872_v26  ;;  %v5566_v40 = vld [vmem:[%s7458_s13] sm:$0xff]  }
 0xecf   :  { %v1978_v47 = vpop.f32.mrf.mxu1 }
 0xed0   :  { %v1979_v42 = vadd.f32 %v4682_v24, %v1978_v47  ;;  %v2004_v49 = vsel %vm234_vm1, %v6654_v46, 0.0 }
 0xed1   :  { %2005 = vadd.xlane.f32.xlu0 %v2004_v49  ;;  %v5140_v50 = vpop.f32.mrf.mxu1  ;;  %5149 = vmatpush3.bf16.msra.mxu0 %v5566_v40  ;;  %v4690_v40 = vld [vmem:[%s7462_s14] ss:$0 sm:$0xff] }
 0xed2   :  { %v6661_v27 = vadd.f32 %v5867_v22, %v1979_v42  ;;  %5190 = vmatprep.subr.bf16.mxu0 %v5872_v26 }
 0xed3   :  { %v1981_v28 = vpop.f32.mrf.mxu1 }
 0xed4   :  { %v1982_v51 = vadd.f32 %v4682_v24, %v1981_v28  ;;  %v2007_v52 = vsel %vm234_vm1, %v6661_v27, 0.0 }
 0xed5   :  { %2008 = vadd.xlane.f32.xlu0 %v2007_v52  ;;  %v5141_v53 = vpop.f32.mrf.mxu1 }
 0xed6   :  { %v6668_v29 = vadd.f32 %v5868_v23, %v1982_v51 }
 0xed7   :  { %v1986_v0 = vpop.f32.mrf.mxu1 }
 0xed8   :  { %v1987_v4 = vadd.f32 %v4682_v24, %v1986_v0  ;;  %v2010_v5 = vsel %vm234_vm1, %v6668_v29, 0.0 }
 0xed9   :  { %2011 = vadd.xlane.f32.xlu0 %v2010_v5  ;;  %v5144_v30 = vpop.f32.mrf.mxu1 }
 0xeda   :  { %v6675_v17 = vadd.f32 %v5869_v54, %v1987_v4 }
 0xedb   :  { %v1989_v21 = vpop.f32.mrf.mxu1 }
 0xedc   :  { %v1990_v7 = vadd.f32 %v4682_v24, %v1989_v21  ;;  %v2013_v31 = vsel %vm234_vm1, %v6675_v17, 0.0  ;;  %v4688_v21 = vld [vmem:[%s7459_s11] ss:$0 sm:$0xff] }
 0xedd   :  { %2014 = vadd.xlane.f32.xlu1 %v2013_v31  ;;  %v5145_v9 = vpop.f32.mrf.mxu1 }
 0xede   :  { %v6682_v33 = vadd.f32 %v5870_v10, %v1990_v7 }
 0xee0   :  { %v2016_v15 = vsel %vm234_vm1, %v6682_v33, 0.0 }
 0xee1   :  { %2017 = vadd.xlane.f32.xlu0 %v2016_v15 }
 0xf56   :  { %v2003_v13 = vpop.xlane.xlu1 %2002 }
 0xf57   :  { %v2019_v48 = vmul.f32 0.03125, %v2003_v13  ;;  %v4689_v13 = vld [vmem:[%s7460_s12] ss:$0 sm:$0xff] }
 0xf59   :  { %v2025_v32 = vsub.f32 %v6647_v38, %v2019_v48 }
 0xf5a   :  { %v2006_v35 = vpop.xlane.xlu0 %2005 }
 0xf5b   :  { %v2020_v36 = vmul.f32 0.03125, %v2006_v35  ;;  %v2031_v1 = vmul.f32 %v2025_v32, %v2025_v32 }
 0xf5d   :  { %v6688_v2 = vsub.f32 %v6654_v46, %v2020_v36  ;;  %v2037_v6 = vsel %vm234_vm1, %v2031_v1, 0.0 }
 0xf5e   :  { %v2009_v55 = vpop.xlane.xlu0 %2008  ;;  %2038 = vadd.xlane.f32.xlu1 %v2037_v6 }
 0xf5f   :  { %v2021_v56 = vmul.f32 0.03125, %v2009_v55  ;;  %v2032_v18 = vmul.f32 %v6688_v2, %v6688_v2 }
 0xf61   :  { %v6694_v57 = vsub.f32 %v6661_v27, %v2021_v56  ;;  %v2040_v12 = vsel %vm234_vm1, %v2032_v18, 0.0 }
 0xf62   :  { %v2012_v58 = vpop.xlane.xlu0 %2011  ;;  %2041 = vadd.xlane.f32.xlu0 %v2040_v12 }
 0xf63   :  { %v2022_v59 = vmul.f32 0.03125, %v2012_v58  ;;  %v2033_v60 = vmul.f32 %v6694_v57, %v6694_v57 }
 0xf65   :  { %v6700_v61 = vsub.f32 %v6668_v29, %v2022_v59  ;;  %v2043_v62 = vsel %vm234_vm1, %v2033_v60, 0.0 }
 0xf66   :  { %2044 = vadd.xlane.f32.xlu1 %v2043_v62  ;;  %v2015_v63 = vpop.xlane.xlu1 %2014 }
 0xf67   :  { %v2023_v8 = vmul.f32 0.03125, %v2015_v63  ;;  %v2034_v11 = vmul.f32 %v6700_v61, %v6700_v61 }
 0xf69   :  { %v6706_v19 = vsub.f32 %v6675_v17, %v2023_v8  ;;  %v2046_v20 = vsel %vm234_vm1, %v2034_v11, 0.0 }
 0xf6a   :  { %2047 = vadd.xlane.f32.xlu0 %v2046_v20  ;;  %v2018_v16 = vpop.xlane.xlu0 %2017 }
 0xf6b   :  { %v2024_v3 = vmul.f32 0.03125, %v2018_v16  ;;  %v2035_v24 = vmul.f32 %v6706_v19, %v6706_v19 }
 0xf6d   :  { %v6712_v14 = vsub.f32 %v6682_v33, %v2024_v3  ;;  %v2049_v25 = vsel %vm234_vm1, %v2035_v24, 0.0  ;;  %v5568_v3 = vld [vmem:[%s7461_s15 + $0x30] sm:$0xff]   ;;  %v5569_v24 = vld [vmem:[%s7461_s15 + $0x28] sm:$0xff]  }
 0xf6e   :  { %2050 = vadd.xlane.f32.xlu1 %v2049_v25  ;;  %v5571_v25 = vld [vmem:[%s7461_s15 + $0x18] sm:$0xff]  }
 0xf6f   :  { %v2036_v34 = vmul.f32 %v6712_v14, %v6712_v14 }
 0xf71   :  { %v2052_v37 = vsel %vm234_vm1, %v2036_v34, 0.0  ;;  %v5572_v34 = vld [vmem:[%s7461_s15 + $0x10] sm:$0xff]  }
 0xf72   :  { %2053 = vadd.xlane.f32.xlu0 %v2052_v37  ;;  %v5573_v37 = vld [vmem:[%s7461_s15 + $0x8] sm:$0xff]  }
 0xfe7   :  { %v2039_v41 = vpop.xlane.xlu1 %2038 }
 0xfe8   :  { %v2055_v44 = vmul.f32 0.03125, %v2039_v41 }
 0xfea   :  { %v2061_v45 = vadd.f32 1e-06, %v2055_v44 }
 0xfeb   :  { %v2042_v47 = vpop.xlane.xlu0 %2041 }
 0xfec   :  { %5697 = vrsqrt.f32 %v2061_v45  ;;  %v2056_v42 = vmul.f32 0.03125, %v2042_v47 }
 0xfee   :  { %v2062_v49 = vadd.f32 1e-06, %v2056_v42 }
 0xfef   :  { %v2045_v50 = vpop.xlane.xlu1 %2044 }
 0xff0   :  { %5699 = vrsqrt.f32 %v2062_v49  ;;  %v2057_v22 = vmul.f32 0.03125, %v2045_v50 }
 0xff2   :  { %v2063_v28 = vadd.f32 1e-06, %v2057_v22 }
 0xff3   :  { %v2048_v51 = vpop.xlane.xlu0 %2047 }
 0xff4   :  { %5701 = vrsqrt.f32 %v2063_v28  ;;  %v2058_v52 = vmul.f32 0.03125, %v2048_v51 }
 0xff6   :  { %v2064_v53 = vadd.f32 1e-06, %v2058_v52 }
 0xff7   :  { %v2051_v23 = vpop.xlane.xlu1 %2050 }
 0xff8   :  { %5703 = vrsqrt.f32 %v2064_v53  ;;  %v2059_v0 = vmul.f32 0.03125, %v2051_v23 }
 0xff9   :  { %v5698_v4 = vpop.eup %5697 }
 0xffa   :  { %v2073_v5 = vmul.f32 %v5698_v4, %v2025_v32  ;;  %v2065_v30 = vadd.f32 1e-06, %v2059_v0 }
 0xffb   :  { %v2054_v54 = vpop.xlane.xlu0 %2053 }
 0xffc   :  { %5705 = vrsqrt.f32 %v2065_v30  ;;  %v2060_v7 = vmul.f32 0.03125, %v2054_v54  ;;  %v2085_v15 = vmul.f32 %v4688_v21, %v2073_v5 }
 0xffd   :  { %v5700_v31 = vpop.eup %5699 }
 0xffe   :  { %v2074_v9 = vmul.f32 %v5700_v31, %v6688_v2  ;;  %v2066_v10 = vadd.f32 1e-06, %v2060_v7  ;;  %v2097_v35 = vadd.f32 %v4689_v13, %v2085_v15 }
0x1000   :  { %5707 = vrsqrt.f32 %v2066_v10  ;;  %v2086_v48 = vmul.f32 %v4688_v21, %v2074_v9 }
0x1001   :  { %v5702_v32 = vpop.eup %5701 }
0x1002   :  { %v2098_v36 = vadd.f32 %v4689_v13, %v2086_v48  ;;  %v2075_v1 = vmul.f32 %v5702_v32, %v6694_v57 }
0x1004   :  { %v2103_v6 = vpack.c.bf16 %v2098_v36, %v2097_v35  ;;  %v2087_v2 = vmul.f32 %v4688_v21, %v2075_v1 }
0x1005   :  { %v5704_v55 = vpop.eup %5703 }
0x1006   :  { %5151 = vmatmul.mubr.msk.bf16.vlgmr.msra.gmra.mxu0 %vm234_vm1, %v2103_v6  ;;  %v2076_v56 = vmul.f32 %v5704_v55, %v6700_v61  ;;  %v2099_v58 = vadd.f32 %v4689_v13, %v2087_v2 }
0x1007   :  { %5154 = vmatprep.mubr.msk.bf16.mxu0 %vm5873_vm3, %v5872_v26 }
0x1008   :  { %v2088_v18 = vmul.f32 %v4688_v21, %v2076_v56 }
0x1009   :  { %v5706_v12 = vpop.eup %5705 }
0x100a   :  { %v2100_v59 = vadd.f32 %v4689_v13, %v2088_v18  ;;  %v2077_v60 = vmul.f32 %v5706_v12, %v6706_v19  ;;  %v5567_v19 = vld [vmem:[%s7461_s15 + $0x38] sm:$0xff]  }
0x100b   :  { %5163 = vmatpush3.bf16.msra.mxu1 %v5567_v19 }
0x100c   :  { %v2104_v62 = vpack.c.bf16 %v2100_v59, %v2099_v58  ;;  %v2089_v8 = vmul.f32 %v4688_v21, %v2077_v60  ;;  %5164 = vmatprep.subr.bf16.mxu1 %v5872_v26 }
0x100d   :  { %v5708_v63 = vpop.eup %5707 }
0x100e   :  { %5155 = vmatmul.mubr.msk.bf16.gmra.mxu0 %vm234_vm1, %v2104_v62  ;;  %v2078_v57 = vmul.f32 %v5708_v63, %v6712_v14  ;;  %v2101_v11 = vadd.f32 %v4689_v13, %v2089_v8  ;;  %v5570_v14 = vld [vmem:[%s7461_s15 + $0x20] sm:$0xff]  }
0x100f   :  { %5158 = vmatprep.mubr.msk.bf16.mxu0 %vm5873_vm3, %v5872_v26  ;;  %5165 = vmatpush3.bf16.msra.mxu1 %v5568_v3 }
0x1010   :  { %v2090_v61 = vmul.f32 %v4688_v21, %v2078_v57  ;;  %5166 = vmatprep.subr.bf16.mxu1 %v5872_v26 }
0x1012   :  { %v2102_v20 = vadd.f32 %v4689_v13, %v2090_v61 }
0x1013   :  { %5167 = vmatpush3.bf16.msra.mxu1 %v5569_v24 }
0x1014   :  { %v2105_v16 = vpack.c.bf16 %v2102_v20, %v2101_v11  ;;  %5168 = vmatprep.subr.bf16.mxu1 %v5872_v26 }
0x1016   :  { %5159 = vmatmul.mubr.msk.bf16.gmra.mxu0 %vm234_vm1, %v2105_v16 }
0x1017   :  { %5194 = vmatprep.mubr.msk.bf16.mxu0 %vm5873_vm3, %v5872_v26  ;;  %5169 = vmatpush3.bf16.msra.mxu1 %v5570_v14 }
0x1018   :  { %5170 = vmatprep.subr.bf16.mxu1 %v5872_v26 }
0x101b   :  { %5171 = vmatpush3.bf16.msra.mxu1 %v5571_v25 }
0x101c   :  { %5172 = vmatprep.subr.bf16.mxu1 %v5872_v26 }
0x101f   :  { %5173 = vmatpush3.bf16.msra.mxu1 %v5572_v34 }
0x1020   :  { %5174 = vmatprep.subr.bf16.mxu1 %v5872_v26 }
0x1023   :  { %5175 = vmatpush3.bf16.msra.mxu1 %v5573_v37 }
0x1024   :  { %5176 = vmatprep.subr.bf16.mxu1 %v5872_v26 }
0x1027   :  { %5177 = vmatpush3.bf16.msra.mxu1 %v5574_v39 }
0x10c6   :  { %v2172_v41 = vpop.f32.mrf.mxu0 }
0x10c7   :  { %v2173_v44 = vadd.f32 %v4690_v40, %v2172_v41 }
0x10c8   :  { %v5152_v45 = vpop.f32.mrf.mxu0 }
0x10c9   :  { %v2201_v47 = vmul.f32 0.044715, %v2173_v44  ;;  %v2195_v14 = vmul.f32 0.5, %v2173_v44 }
0x10ca   :  { %v2175_v42 = vpop.f32.mrf.mxu0 }
0x10cb   :  { %v2207_v49 = vmul.f32 %v2201_v47, %v2173_v44  ;;  %v2176_v50 = vadd.f32 %v4690_v40, %v2175_v42 }
0x10cc   :  { %v5153_v22 = vpop.f32.mrf.mxu0 }
0x10cd   :  { %v2213_v28 = vmul.f32 %v2207_v49, %v2173_v44  ;;  %v2202_v51 = vmul.f32 0.044715, %v2176_v50  ;;  %v2196_v25 = vmul.f32 0.5, %v2176_v50 }
0x10ce   :  { %v2180_v52 = vpop.f32.mrf.mxu0 }
0x10cf   :  { %v2219_v53 = vadd.f32 %v2213_v28, %v2173_v44  ;;  %v2208_v23 = vmul.f32 %v2202_v51, %v2176_v50  ;;  %v2181_v0 = vadd.f32 %v4690_v40, %v2180_v52 }
0x10d0   :  { %v5156_v4 = vpop.f32.mrf.mxu0 }
0x10d1   :  { %v2225_v5 = vmul.f32 0.7978846, %v2219_v53  ;;  %v2214_v30 = vmul.f32 %v2208_v23, %v2176_v50  ;;  %v2203_v54 = vmul.f32 0.044715, %v2181_v0  ;;  %v2197_v49 = vmul.f32 0.5, %v2181_v0 }
0x10d2   :  { %v2183_v21 = vpop.f32.mrf.mxu0 }
0x10d3   :  { %5709 = vtanh.f32 %v2225_v5  ;;  %v2220_v7 = vadd.f32 %v2214_v30, %v2176_v50  ;;  %v2209_v31 = vmul.f32 %v2203_v54, %v2181_v0  ;;  %v2184_v9 = vadd.f32 %v4690_v40, %v2183_v21 }
0x10d4   :  { %v5157_v10 = vpop.f32.mrf.mxu0 }
0x10d5   :  { %v2226_v15 = vmul.f32 0.7978846, %v2220_v7  ;;  %v2215_v13 = vmul.f32 %v2209_v31, %v2181_v0  ;;  %v2204_v48 = vmul.f32 0.044715, %v2184_v9  ;;  %v2198_v22 = vmul.f32 0.5, %v2184_v9 }
0x10d6   :  { %v2188_v32 = vpop.f32.mrf.mxu0 }
0x10d7   :  { %5711 = vtanh.f32 %v2226_v15  ;;  %v2210_v35 = vmul.f32 %v2204_v48, %v2184_v9  ;;  %v2189_v36 = vadd.f32 %v4690_v40, %v2188_v32  ;;  %v2221_v1 = vadd.f32 %v2215_v13, %v2181_v0  ;;  %v4696_v0 = vld [vmem:[%s7463_s16] ss:$0 sm:$0xff] }
0x10d8   :  { %v5160_v6 = vpop.f32.mrf.mxu0 }
0x10d9   :  { %v2216_v55 = vmul.f32 %v2210_v35, %v2184_v9  ;;  %v2205_v56 = vmul.f32 0.044715, %v2189_v36  ;;  %v2227_v2 = vmul.f32 0.7978846, %v2221_v1  ;;  %v2199_v4 = vmul.f32 0.5, %v2189_v36 }
0x10da   :  { %v2191_v18 = vpop.f32.mrf.mxu0 }
0x10db   :  { %v2211_v12 = vmul.f32 %v2205_v56, %v2189_v36  ;;  %v2192_v58 = vadd.f32 %v4690_v40, %v2191_v18  ;;  %v2222_v59 = vadd.f32 %v2216_v55, %v2184_v9  ;;  %5713 = vtanh.f32 %v2227_v2 }
0x10dc   :  { %v5161_v60 = vpop.f32.mrf.mxu0 }
0x10dd   :  { %v2217_v62 = vmul.f32 %v2211_v12, %v2189_v36  ;;  %v2206_v63 = vmul.f32 0.044715, %v2192_v58  ;;  %v2228_v57 = vmul.f32 0.7978846, %v2222_v59  ;;  %v2200_v5 = vmul.f32 0.5, %v2192_v58 }
0x10df   :  { %v2212_v8 = vmul.f32 %v2206_v63, %v2192_v58  ;;  %5715 = vtanh.f32 %v2228_v57  ;;  %v2223_v61 = vadd.f32 %v2217_v62, %v2189_v36 }
0x10e0   :  { %v5710_v11 = vpop.eup %5709 }
0x10e1   :  { %v2218_v20 = vmul.f32 %v2212_v8, %v2192_v58  ;;  %v2229_v16 = vmul.f32 0.7978846, %v2223_v61  ;;  %v2237_v19 = vadd.f32 1.0, %v5710_v11 }
0x10e3   :  { %v2224_v3 = vadd.f32 %v2218_v20, %v2192_v58  ;;  %5717 = vtanh.f32 %v2229_v16  ;;  %v2243_v39 = vmul.f32 %v2237_v19, %v2195_v14 }
0x10e4   :  { %v5712_v24 = vpop.eup %5711 }
0x10e5   :  { %v2238_v34 = vadd.f32 1.0, %v5712_v24  ;;  %v2230_v37 = vmul.f32 0.7978846, %v2224_v3 }
0x10e7   :  { %v2244_v40 = vmul.f32 %v2238_v34, %v2196_v25  ;;  %5719 = vtanh.f32 %v2230_v37 }
0x10e8   :  { %v5714_v41 = vpop.eup %5713 }
0x10e9   :  { %v2249_v45 = vpack.c.bf16 %v2244_v40, %v2243_v39  ;;  %v2239_v47 = vadd.f32 1.0, %v5714_v41 }
0x10eb   :  { %5179 = vmatmul.mubr.bf16.vlgmr.msra.gmra.mxu1 %v2249_v45  ;;  %v2245_v51 = vmul.f32 %v2239_v47, %v2197_v49 }
0x10ec   :  { %v5716_v42 = vpop.eup %5715  ;;  %5182 = vmatprep.mubr.msk.bf16.mxu1 %vm5873_vm3, %v5872_v26 }
0x10ed   :  { %v2240_v28 = vadd.f32 1.0, %v5716_v42 }
0x10ef   :  { %v2246_v52 = vmul.f32 %v2240_v28, %v2198_v22 }
0x10f0   :  { %v5718_v44 = vpop.eup %5717 }
0x10f1   :  { %v2250_v50 = vpack.c.bf16 %v2246_v52, %v2245_v51  ;;  %v2241_v53 = vadd.f32 1.0, %v5718_v44 }
0x10f3   :  { %5183 = vmatmul.mubr.bf16.gmra.mxu1 %v2250_v50  ;;  %v2247_v54 = vmul.f32 %v2241_v53, %v2199_v4 }
0x10f4   :  { %v5720_v23 = vpop.eup %5719  ;;  %5186 = vmatprep.mubr.msk.bf16.mxu1 %vm5873_vm3, %v5872_v26 }
0x10f5   :  { %v2242_v30 = vadd.f32 1.0, %v5720_v23 }
0x10f7   :  { %v2248_v21 = vmul.f32 %v2242_v30, %v2200_v5 }
0x10f9   :  { %v2251_v7 = vpack.c.bf16 %v2248_v21, %v2247_v54 }
0x10fb   :  { %5187 = vmatmul.mubr.bf16.gmra.mxu1 %v2251_v7  ;;  %v5575_v7 = vld [vmem:[%s7452_s7 + $0x18] sm:$0xff]  }
0x10fc   :  { %5191 = vmatpush3.bf16.msra.mxu0 %v5575_v7 }
0x10fd   :  { %5192 = vmatprep.subr.bf16.mxu0 %v5872_v26 }
0x11ab   :  { %v2357_v31 = vpop.f32.mrf.mxu1 }
0x11ac   :  { %v2358_v9 = vadd.f32 %v4696_v0, %v2357_v31 }
0x11ad   :  { %v5180_v10 = vpop.f32.mrf.mxu1 }
0x11ae   :  { %v6788_v15 = vadd.f32 %v2358_v9, %v6647_v38 }
0x11af   :  { %v2360_v13 = vpop.f32.mrf.mxu1 }
0x11b0   :  { %v2361_v48 = vadd.f32 %v4696_v0, %v2360_v13  ;;  %v2390_v32 = vsel %vm234_vm1, %v6788_v15, 0.0 }
0x11b1   :  { %2391 = vadd.xlane.f32.xlu1 %v2390_v32  ;;  %v5181_v35 = vpop.f32.mrf.mxu1 }
0x11b2   :  { %v6793_v36 = vadd.f32 %v2361_v48, %v6654_v46 }
0x11b3   :  { %v2365_v1 = vpop.f32.mrf.mxu1 }
0x11b4   :  { %v2366_v6 = vadd.f32 %v4696_v0, %v2365_v1  ;;  %v2393_v55 = vsel %vm234_vm1, %v6793_v36, 0.0 }
0x11b5   :  { %2394 = vadd.xlane.f32.xlu0 %v2393_v55  ;;  %v5184_v56 = vpop.f32.mrf.mxu1 }
0x11b6   :  { %v6798_v38 = vadd.f32 %v2366_v6, %v6661_v27 }
0x11b7   :  { %v2368_v2 = vpop.f32.mrf.mxu1 }
0x11b8   :  { %v2369_v18 = vadd.f32 %v4696_v0, %v2368_v2  ;;  %v2396_v12 = vsel %vm234_vm1, %v6798_v38, 0.0 }
0x11b9   :  { %2397 = vadd.xlane.f32.xlu1 %v2396_v12  ;;  %v5185_v58 = vpop.f32.mrf.mxu1 }
0x11ba   :  { %v6803_v46 = vadd.f32 %v2369_v18, %v6668_v29 }
0x11bb   :  { %v2373_v59 = vpop.f32.mrf.mxu1 }
0x11bc   :  { %v2374_v60 = vadd.f32 %v4696_v0, %v2373_v59  ;;  %v2399_v62 = vsel %vm234_vm1, %v6803_v46, 0.0  ;;  %v4707_v59 = vld [vmem:[%s7453_s5 + $0x1] ss:$0 sm:$0xff] }
0x11bd   :  { %2400 = vadd.xlane.f32.xlu0 %v2399_v62  ;;  %v5188_v63 = vpop.f32.mrf.mxu1 }
0x11be   :  { %v6808_v27 = vadd.f32 %v2374_v60, %v6675_v17  ;;  %v4708_v63 = vld [vmem:[%s7454_s6 + $0x1] ss:$0 sm:$0xff] }
0x11bf   :  { %v2376_v57 = vpop.f32.mrf.mxu1 }
0x11c0   :  { %v2377_v8 = vadd.f32 %v4696_v0, %v2376_v57  ;;  %v2402_v61 = vsel %vm234_vm1, %v6808_v27, 0.0  ;;  %v5576_v0 = vld [vmem:[%s7452_s7 + $0x10] sm:$0xff]  }
0x11c1   :  { %2403 = vadd.xlane.f32.xlu1 %v2402_v61  ;;  %v5189_v11 = vpop.f32.mrf.mxu1  ;;  %5193 = vmatpush3.bf16.msra.mxu0 %v5576_v0 }
0x11c2   :  { %v6813_v29 = vadd.f32 %v2377_v8, %v6682_v33 }
0x11c4   :  { %v2405_v20 = vsel %vm234_vm1, %v6813_v29, 0.0 }
0x11c5   :  { %2406 = vadd.xlane.f32.xlu0 %v2405_v20 }
0x123a   :  { %v2392_v16 = vpop.xlane.xlu1 %2391 }
0x123b   :  { %v2408_v19 = vmul.f32 0.03125, %v2392_v16 }
0x123d   :  { %v2414_v3 = vsub.f32 %v6788_v15, %v2408_v19 }
0x123e   :  { %v2395_v17 = vpop.xlane.xlu0 %2394 }
0x123f   :  { %v2409_v24 = vmul.f32 0.03125, %v2395_v17  ;;  %v2420_v14 = vmul.f32 %v2414_v3, %v2414_v3 }
0x1241   :  { %v6819_v25 = vsub.f32 %v6793_v36, %v2409_v24  ;;  %v2426_v34 = vsel %vm234_vm1, %v2420_v14, 0.0 }
0x1242   :  { %v2398_v37 = vpop.xlane.xlu1 %2397  ;;  %2427 = vadd.xlane.f32.xlu1 %v2426_v34 }
0x1243   :  { %v2410_v33 = vmul.f32 0.03125, %v2398_v37  ;;  %v2421_v39 = vmul.f32 %v6819_v25, %v6819_v25 }
0x1245   :  { %v6825_v40 = vsub.f32 %v6798_v38, %v2410_v33  ;;  %v2429_v41 = vsel %vm234_vm1, %v2421_v39, 0.0 }
0x1246   :  { %v2401_v45 = vpop.xlane.xlu0 %2400  ;;  %2430 = vadd.xlane.f32.xlu0 %v2429_v41 }
0x1247   :  { %v2411_v47 = vmul.f32 0.03125, %v2401_v45  ;;  %v2422_v42 = vmul.f32 %v6825_v40, %v6825_v40 }
0x1249   :  { %v6831_v49 = vsub.f32 %v6803_v46, %v2411_v47  ;;  %v2432_v22 = vsel %vm234_vm1, %v2422_v42, 0.0 }
0x124a   :  { %2433 = vadd.xlane.f32.xlu1 %v2432_v22  ;;  %v2404_v28 = vpop.xlane.xlu1 %2403 }
0x124b   :  { %v2412_v51 = vmul.f32 0.03125, %v2404_v28  ;;  %v2423_v52 = vmul.f32 %v6831_v49, %v6831_v49 }
0x124d   :  { %v6837_v44 = vsub.f32 %v6808_v27, %v2412_v51  ;;  %v2435_v50 = vsel %vm234_vm1, %v2423_v52, 0.0 }
0x124e   :  { %2436 = vadd.xlane.f32.xlu0 %v2435_v50  ;;  %v2407_v53 = vpop.xlane.xlu0 %2406 }
0x124f   :  { %v2413_v23 = vmul.f32 0.03125, %v2407_v53  ;;  %v2424_v4 = vmul.f32 %v6837_v44, %v6837_v44 }
0x1251   :  { %v2419_v5 = vsub.f32 %v6813_v29, %v2413_v23  ;;  %v2438_v30 = vsel %vm234_vm1, %v2424_v4, 0.0 }
0x1252   :  { %2439 = vadd.xlane.f32.xlu1 %v2438_v30 }
0x1253   :  { %v2425_v54 = vmul.f32 %v2419_v5, %v2419_v5 }
0x1255   :  { %v2441_v21 = vsel %vm234_vm1, %v2425_v54, 0.0 }
0x1256   :  { %2442 = vadd.xlane.f32.xlu0 %v2441_v21 }
0x12cb   :  { %v2428_v31 = vpop.xlane.xlu1 %2427 }
0x12cc   :  { %v2444_v9 = vmul.f32 0.03125, %v2428_v31 }
0x12ce   :  { %v2450_v10 = vadd.f32 1e-06, %v2444_v9 }
0x12cf   :  { %v2431_v13 = vpop.xlane.xlu0 %2430 }
0x12d0   :  { %5721 = vrsqrt.f32 %v2450_v10  ;;  %v2445_v48 = vmul.f32 0.03125, %v2431_v13 }
0x12d2   :  { %v2451_v32 = vadd.f32 1e-06, %v2445_v48 }
0x12d3   :  { %v2434_v35 = vpop.xlane.xlu1 %2433 }
0x12d4   :  { %5723 = vrsqrt.f32 %v2451_v32  ;;  %v2446_v1 = vmul.f32 0.03125, %v2434_v35 }
0x12d6   :  { %v2452_v6 = vadd.f32 1e-06, %v2446_v1 }
0x12d7   :  { %v2437_v55 = vpop.xlane.xlu0 %2436 }
0x12d8   :  { %5725 = vrsqrt.f32 %v2452_v6  ;;  %v2447_v56 = vmul.f32 0.03125, %v2437_v55 }
0x12da   :  { %v2453_v2 = vadd.f32 1e-06, %v2447_v56 }
0x12db   :  { %v2440_v18 = vpop.xlane.xlu1 %2439 }
0x12dc   :  { %5727 = vrsqrt.f32 %v2453_v2  ;;  %v2448_v12 = vmul.f32 0.03125, %v2440_v18 }
0x12dd   :  { %v5722_v58 = vpop.eup %5721 }
0x12de   :  { %v2462_v60 = vmul.f32 %v5722_v58, %v2414_v3  ;;  %v2454_v62 = vadd.f32 1e-06, %v2448_v12 }
0x12df   :  { %v2443_v57 = vpop.xlane.xlu0 %2442 }
0x12e0   :  { %v2474_v8 = vmul.f32 %v4707_v59, %v2462_v60  ;;  %5729 = vrsqrt.f32 %v2454_v62  ;;  %v2449_v61 = vmul.f32 0.03125, %v2443_v57 }
0x12e1   :  { %v5724_v11 = vpop.eup %5723 }
0x12e2   :  { %v2463_v20 = vmul.f32 %v5724_v11, %v6819_v25  ;;  %v2455_v16 = vadd.f32 1e-06, %v2449_v61  ;;  %v2486_v19 = vadd.f32 %v4708_v63, %v2474_v8 }
0x12e4   :  { %v2475_v17 = vmul.f32 %v4707_v59, %v2463_v20  ;;  %5731 = vrsqrt.f32 %v2455_v16 }
0x12e5   :  { %v5726_v24 = vpop.eup %5725 }
0x12e6   :  { %v2487_v14 = vadd.f32 %v4708_v63, %v2475_v17  ;;  %v2464_v3 = vmul.f32 %v5726_v24, %v6825_v40 }
0x12e8   :  { %v2492_v34 = vpack.c.bf16 %v2487_v14, %v2486_v19  ;;  %v2476_v37 = vmul.f32 %v4707_v59, %v2464_v3 }
0x12e9   :  { %v5728_v33 = vpop.eup %5727 }
0x12ea   :  { %5195 = vmatmul.mubr.msk.bf16.vlgmr.msra.gmra.mxu0 %vm234_vm1, %v2492_v34  ;;  %v2465_v39 = vmul.f32 %v5728_v33, %v6831_v49  ;;  %v2488_v41 = vadd.f32 %v4708_v63, %v2476_v37 }
0x12eb   :  { %5198 = vmatprep.mubr.msk.bf16.mxu0 %vm5873_vm3, %v5872_v26 }
0x12ec   :  { %v2477_v25 = vmul.f32 %v4707_v59, %v2465_v39 }
0x12ed   :  { %v5730_v45 = vpop.eup %5729 }
0x12ee   :  { %v2489_v47 = vadd.f32 %v4708_v63, %v2477_v25  ;;  %v2466_v42 = vmul.f32 %v5730_v45, %v6837_v44  ;;  %v4714_v44 = vld [vmem:[%s7455_s8 + $0x1] ss:$0 sm:$0xff]  ;;  %s7489_s8 = smov 72  }
0x12f0   :  { %v2493_v22 = vpack.c.bf16 %v2489_v47, %v2488_v41  ;;  %v2478_v28 = vmul.f32 %v4707_v59, %v2466_v42 }
0x12f1   :  { %v5732_v51 = vpop.eup %5731 }
0x12f2   :  { %5199 = vmatmul.mubr.msk.bf16.gmra.mxu0 %vm234_vm1, %v2493_v22  ;;  %v2467_v40 = vmul.f32 %v5732_v51, %v2419_v5  ;;  %v2490_v52 = vadd.f32 %v4708_v63, %v2478_v28 }
0x12f3   :  { %5202 = vmatprep.mubr.msk.bf16.mxu0 %vm5873_vm3, %v5872_v26 }
0x12f4   :  { %v2479_v49 = vmul.f32 %v4707_v59, %v2467_v40 }
0x12f6   :  { %v2491_v50 = vadd.f32 %v4708_v63, %v2479_v49 }
0x12f8   :  { %v2494_v53 = vpack.c.bf16 %v2491_v50, %v2490_v52 }
0x12fa   :  { %5203 = vmatmul.mubr.msk.bf16.gmra.mxu0 %vm234_vm1, %v2494_v53 }
0x13aa   :  { %v2563_v23 = vpop.f32.mrf.mxu0 }
0x13ab   :  { %v2564_v54 = vadd.f32 %v4714_v44, %v2563_v23 }
0x13ac   :  { %v5196_v4 = vpop.f32.mrf.mxu0 }
0x13ae   :  { %v2566_v30 = vpop.f32.mrf.mxu0 }
0x13af   :  { %v2567_v21 = vadd.f32 %v4714_v44, %v2566_v30 }
0x13b0   :  { %v5197_v7 = vpop.f32.mrf.mxu0 }
0x13b1   :  { %v6872_v5 = vpack.c.bf16 %v2567_v21, %v2564_v54 }
0x13b2   :  { %v2571_v0 = vpop.f32.mrf.mxu0 }
0x13b3   :  { %v2572_v31 = vadd.f32 %v4714_v44, %v2571_v0  ;;  %2592 = vrot.lane.b32.xlu0 %v6872_v5, %s5874_s19  ;;  %5210 = vmatprep.mubr.msk.bf16.mxu0 %vm471_vm4, %v6872_v5 }
0x13b4   :  { %v5200_v9 = vpop.f32.mrf.mxu0 }
0x13b5   :  { %v6878_v10 = vpack.c.bf16 %v2572_v31, %v2572_v31 }
0x13b6   :  { %v2574_v13 = vpop.f32.mrf.mxu0 }
0x13b7   :  { %2594 = vrot.lane.b32.xlu1 %v6878_v10, %s5874_s19  ;;  %v2575_v35 = vadd.f32 %v4714_v44, %v2574_v13 }
0x13b8   :  { %v5201_v48 = vpop.f32.mrf.mxu0 }
0x13ba   :  { %v2579_v32 = vpop.f32.mrf.mxu0 }
0x13bb   :  { %v2580_v1 = vadd.f32 %v4714_v44, %v2579_v32 }
0x13bc   :  { %v5204_v6 = vpop.f32.mrf.mxu0 }
0x13bd   :  { %v6882_v55 = vpack.c.bf16 %v2580_v1, %v2575_v35 }
0x13be   :  { %v2582_v56 = vpop.f32.mrf.mxu0 }
0x13bf   :  { %v2583_v2 = vadd.f32 %v4714_v44, %v2582_v56  ;;  %5218 = vmatprep.mubr.msk.bf16.mxu1 %vm471_vm4, %v6882_v55 }
0x13c0   :  { %v5205_v18 = vpop.f32.mrf.mxu0 }
0x13c1   :  { %v6886_v12 = vpack.c.bf16 %v2583_v2, %v2583_v2 }
0x13c3   :  { %2660 = vrot.lane.b32.xlu1 %v6886_v12, %s5874_s19 }
0x13c7   :  { %2658 = vrot.lane.b32.xlu1 %v6882_v55, %s5874_s19  ;;  %s7490_s19 = smov 104  }
0x1425   :  { %v2593_v60 = vpop.permute.xlu0 %2592 }
0x1426   :  { %v2603_v62 = vsel %vm471_vm4, %v2593_v60, 0 }
0x1429   :  { %v2595_v58 = vpop.permute.xlu1 %2594 }
0x142a   :  { %5418 = vmatprep.subr.msk.bf16.mxu0 %vm471_vm4, %v2595_v58  ;;  %v2606_v59 = vsel %vm471_vm4, %v2595_v58, 0 }
0x142b   :  { %5207 = vmatpush3.bf16.xpose.msra.mxu0 %v2606_v59 }
0x142c   :  { %5419 = vmatprep.subr.msk.bf16.mxu0 %vm471_vm4, %v2593_v60 }
0x1433   :  { %5209 = vmatpush3.bf16.xpose.msra.mxu0 %v2603_v62 }
0x1435   :  { %v2661_v63 = vpop.permute.xlu1 %2660 }
0x1436   :  { %5420 = vmatprep.subr.msk.bf16.mxu1 %vm471_vm4, %v2661_v63  ;;  %v2672_v57 = vsel %vm471_vm4, %v2661_v63, 0 }
0x1437   :  { %5215 = vmatpush3.bf16.xpose.msra.mxu1 %v2672_v57 }
0x1439   :  { %v2659_v8 = vpop.permute.xlu1 %2658 }
0x143a   :  { %5211 = vmatmul.mubr.msk.bf16.vlgmr.msra.gmra.mxu0 %vm471_vm4, %v6878_v10  ;;  %5421 = vmatprep.subr.msk.bf16.mxu1 %vm471_vm4, %v2659_v8  ;;  %v2669_v61 = vsel %vm471_vm4, %v2659_v8, 0 }
0x143f   :  { %5217 = vmatpush3.bf16.xpose.msra.mxu1 %v2669_v61 }
0x1446   :  { %5219 = vmatmul.mubr.msk.bf16.vlgmr.msra.gmra.mxu1 %vm471_vm4, %v6886_v12 }
0x14fa   :  { %v5212_v11 = vpop.f32.mrf.mxu0 }
0x14fb   :  { %v2724_v34 = vsel %vm263_vm5, %v5212_v11, -1e+30 }
0x14fc   :  { %v2642_v20 = vpop.f32.mrf.mxu0  ;;  %v2734_v37 = vsel %vm606_vm6, %v2724_v34, -inf }
0x14fd   :  { %v2722_v16 = vsel %vm263_vm5, %v2642_v20, -1e+30 }
0x14fe   :  { %v2728_v19 = vsel %vm606_vm6, %v2722_v16, -inf  ;;  %v5213_v17 = vpop.f32.mrf.mxu0 }
0x14ff   :  { %2729 = vmax.xlane.f32.xlu1 %v2728_v19 }
0x1500   :  { %v2645_v24 = vpop.f32.mrf.mxu0 }
0x1501   :  { %v2723_v14 = vsel %vm263_vm5, %v2645_v24, -1e+30 }
0x1502   :  { %v2731_v3 = vsel %vm606_vm6, %v2723_v14, -inf }
0x1503   :  { %2732 = vmax.xlane.f32.xlu0 %v2731_v3 }
0x1506   :  { %v5220_v33 = vpop.f32.mrf.mxu1 }
0x1507   :  { %2735 = vmax.xlane.f32.xlu0 %v2734_v37  ;;  %v2727_v47 = vsel %vm263_vm5, %v5220_v33, -1e+30 }
0x1508   :  { %v2708_v39 = vpop.f32.mrf.mxu1  ;;  %v2743_v42 = vsel %vm606_vm6, %v2727_v47, -inf }
0x1509   :  { %v2725_v41 = vsel %vm263_vm5, %v2708_v39, -1e+30 }
0x150a   :  { %v2737_v25 = vsel %vm606_vm6, %v2725_v41, -inf  ;;  %v5221_v45 = vpop.f32.mrf.mxu1 }
0x150b   :  { %2738 = vmax.xlane.f32.xlu0 %v2737_v25 }
0x150c   :  { %v2711_v22 = vpop.f32.mrf.mxu1 }
0x150d   :  { %v2726_v28 = vsel %vm263_vm5, %v2711_v22, -1e+30 }
0x150e   :  { %v2740_v51 = vsel %vm606_vm6, %v2726_v28, -inf }
0x150f   :  { %2744 = vmax.xlane.f32.xlu0 %v2743_v42 }
0x1510   :  { %2800 = vrot.lane.b32.xlu1 %v6878_v10, %s5875_s20 }
0x1514   :  { %2928 = vrot.lane.b32.xlu1 %v6878_v10, %s5876_s27 }
0x1518   :  { %2862 = vrot.lane.b32.xlu1 %v6886_v12, %s5875_s20 }
0x1525   :  { %2798 = vrot.lane.b32.xlu0 %v6872_v5, %s5875_s20 }
0x153c   :  { %2741 = vmax.xlane.f32.xlu1 %v2740_v51 }
0x154d   :  { %2860 = vrot.lane.b32.xlu1 %v6882_v55, %s5875_s20  ;;  %s7491_s20 = smov 40  }
0x1588   :  { %v2730_v40 = vpop.xlane.xlu1 %2729 }
0x1589   :  { %v2746_v23 = vsub.f32 %v2722_v16, %v2730_v40 }
0x158b   :  { %v2752_v21 = vmul.f32 1.442695, %v2746_v23 }
0x158c   :  { %v2801_v52 = vpop.permute.xlu1 %2800  ;;  %v2733_v49 = vpop.xlane.xlu0 %2732 }
0x158d   :  { %v2747_v50 = vsub.f32 %v2723_v14, %v2733_v49  ;;  %5422 = vmatprep.subr.msk.bf16.mxu0 %vm688_vm7, %v2801_v52  ;;  %v2810_v53 = vsel %vm688_vm7, %v2801_v52, 0 }
0x158e   :  { %5223 = vmatpush3.bf16.msra.mxu0 %v2810_v53 }
0x158f   :  { %v2754_v44 = vmul.f32 1.442695, %v2747_v50 }
0x1590   :  { %v6934_v4 = vpop.permute.xlu1 %2928  ;;  %v2736_v30 = vpop.xlane.xlu0 %2735 }
0x1591   :  { %5733 = vpow2.f32 %v2754_v44  ;;  %v2748_v54 = vsub.f32 %v2724_v34, %v2736_v30  ;;  %v2940_v52 = vsel %vm471_vm4, %v6934_v4, 0 }
0x1593   :  { %v2756_v7 = vmul.f32 1.442695, %v2748_v54 }
0x1594   :  { %v2863_v0 = vpop.permute.xlu1 %2862  ;;  %v2739_v31 = vpop.xlane.xlu0 %2738 }
0x1595   :  { %5735 = vpow2.f32 %v2756_v7  ;;  %5423 = vmatprep.subr.msk.bf16.mxu1 %vm688_vm7, %v2863_v0  ;;  %v2872_v9 = vsel %vm688_vm7, %v2863_v0, 0  ;;  %v2749_v13 = vsub.f32 %v2725_v41, %v2739_v31 }
0x1596   :  { %5231 = vmatpush3.bf16.msra.mxu1 %v2872_v9  ;;  %5737 = vpow2.f32 %v2752_v21 }
0x1597   :  { %v2758_v35 = vmul.f32 1.442695, %v2749_v13 }
0x1598   :  { %v2745_v48 = vpop.xlane.xlu0 %2744 }
0x1599   :  { %v2751_v32 = vsub.f32 %v2727_v47, %v2745_v48 }
0x159b   :  { %v2762_v1 = vmul.f32 1.442695, %v2751_v32 }
0x159c   :  { %v2799_v6 = vpop.permute.xlu0 %2798 }
0x159d   :  { %5739 = vpow2.f32 %v2762_v1  ;;  %5224 = vmatprep.subr.bf16.mxu0 %v2799_v6 }
0x159e   :  { %v5734_v56 = vpop.eup %5733  ;;  %5225 = vmatpush3.bf16.msra.mxu0 %v2799_v6  ;;  %5741 = vpow2.f32 %v2758_v35 }
0x159f   :  { %5424 = vmatprep.subr.msk.bf16.mxu0 %vm471_vm4, %v6934_v4  ;;  %v2767_v2 = vsel %vm606_vm6, %v5734_v56, 0.0 }
0x15a0   :  { %2768 = vadd.xlane.f32.xlu0 %v2767_v2 }
0x15a2   :  { %v5736_v18 = vpop.eup %5735 }
0x15a3   :  { %v2770_v58 = vsel %vm606_vm6, %v5736_v18, 0.0  ;;  %v5738_v59 = vpop.eup %5737 }
0x15a4   :  { %2771 = vadd.xlane.f32.xlu1 %v2770_v58  ;;  %v2764_v60 = vsel %vm606_vm6, %v5738_v59, 0.0 }
0x15a8   :  { %2765 = vadd.xlane.f32.xlu1 %v2764_v60 }
0x15aa   :  { %v5740_v62 = vpop.eup %5739 }
0x15ab   :  { %v2779_v63 = vsel %vm606_vm6, %v5740_v62, 0.0  ;;  %v5742_v57 = vpop.eup %5741 }
0x15ac   :  { %2780 = vadd.xlane.f32.xlu0 %v2779_v63  ;;  %v2773_v8 = vsel %vm606_vm6, %v5742_v57, 0.0 }
0x15b0   :  { %2774 = vadd.xlane.f32.xlu0 %v2773_v8 }
0x15b9   :  { %2996 = vrot.lane.b32.xlu1 %v6886_v12, %s5876_s27 }
0x15c5   :  { %v2742_v61 = vpop.xlane.xlu1 %2741 }
0x15c6   :  { %v2750_v11 = vsub.f32 %v2726_v28, %v2742_v61  ;;  %2926 = vrot.lane.b32.xlu0 %v6872_v5, %s5876_s27 }
0x15c8   :  { %v2760_v20 = vmul.f32 1.442695, %v2750_v11 }
0x15c9   :  { %v2861_v16 = vpop.permute.xlu1 %2860 }
0x15ca   :  { %2922 = vrot.lane.b32.xlu0 %v6872_v5, %s5877_s28  ;;  %5232 = vmatprep.subr.bf16.mxu1 %v2861_v16  ;;  %5743 = vpow2.f32 %v2760_v20 }
0x15cb   :  { %5233 = vmatpush3.bf16.msra.mxu1 %v2861_v16 }
0x15ce   :  { %2994 = vrot.lane.b32.xlu0 %v6882_v55, %s5876_s27  ;;  %s7492_s27 = smov 16  }
0x15d2   :  { %2992 = vrot.lane.b32.xlu0 %v6886_v12, %s5877_s28 }
0x15d7   :  { %v5744_v19 = vpop.eup %5743 }
0x15d8   :  { %v2776_v17 = vsel %vm606_vm6, %v5744_v19, 0.0 }
0x15dd   :  { %2777 = vadd.xlane.f32.xlu1 %v2776_v17 }
0x15ee   :  { %2924 = vrot.lane.b32.xlu1 %v6878_v10, %s5877_s28 }
0x15f2   :  { %2990 = vrot.lane.b32.xlu1 %v6882_v55, %s5877_s28  ;;  %s7493_s28 = smov 8  }
0x1629   :  { %v2769_v24 = vpop.xlane.xlu0 %2768 }
0x162d   :  { %v2772_v14 = vpop.xlane.xlu1 %2771 }
0x162e   :  { %5745 = vrcp.f32 %v2772_v14 }
0x162f   :  { %5747 = vrcp.f32 %v2769_v24 }
0x1631   :  { %v2766_v3 = vpop.xlane.xlu1 %2765 }
0x1632   :  { %5749 = vrcp.f32 %v2766_v3 }
0x1635   :  { %v2781_v34 = vpop.xlane.xlu0 %2780  ;;  %v2997_v37 = vpop.permute.xlu1 %2996 }
0x1636   :  { %5426 = vmatprep.subr.msk.bf16.mxu1 %vm471_vm4, %v2997_v37  ;;  %5751 = vrcp.f32 %v2781_v34  ;;  %v3008_v9 = vsel %vm471_vm4, %v2997_v37, 0 }
0x1639   :  { %v2775_v33 = vpop.xlane.xlu0 %2774 }
0x163a   :  { %5753 = vrcp.f32 %v2775_v33 }
0x163b   :  { %v5746_v39 = vpop.eup %5745 }
0x163c   :  { %v5748_v41 = vpop.eup %5747  ;;  %v2790_v47 = vmul.f32 %v5746_v39, %v5736_v18 }
0x163d   :  { %v2927_v45 = vpop.permute.xlu0 %2926  ;;  %v2789_v22 = vmul.f32 %v5748_v41, %v5734_v56 }
0x163e   :  { %v2795_v51 = vpack.c.bf16 %v2790_v47, %v2790_v47  ;;  %v2937_v49 = vsel %vm471_vm4, %v2927_v45, 0 }
0x163f   :  { %v5750_v25 = vpop.eup %5749 }
0x1640   :  { %v2788_v42 = vmul.f32 %v5750_v25, %v5738_v59 }
0x1641   :  { %v2923_v40 = vpop.permute.xlu0 %2922 }
0x1642   :  { %v2794_v28 = vpack.c.bf16 %v2789_v22, %v2788_v42 }
0x1643   :  { %v5752_v23 = vpop.eup %5751 }
0x1644   :  { %5226 = vmatprep.mubr.msk.bf16.mxu0 %vm606_vm6, %v2794_v28  ;;  %v2793_v54 = vmul.f32 %v5752_v23, %v5740_v62 }
0x1645   :  { %5227 = vmatmul.mubr.msk.bf16.vlgmr.msra.gmra.mxu0 %vm606_vm6, %v2795_v51  ;;  %v2995_v13 = vpop.permute.xlu0 %2994 }
0x1646   :  { %5239 = vmatpush3.bf16.xpose.msra.mxu0 %v2940_v52  ;;  %5242 = vmatprep.mubr.msk.bf16.mxu0 %vm471_vm4, %v2923_v40  ;;  %v2797_v0 = vpack.c.bf16 %v2793_v54, %v2793_v54  ;;  %v3005_v48 = vsel %vm471_vm4, %v2995_v13, 0 }
0x1647   :  { %5425 = vmatprep.subr.msk.bf16.mxu0 %vm471_vm4, %v2927_v45  ;;  %v5754_v44 = vpop.eup %5753 }
0x1648   :  { %v2791_v4 = vmul.f32 %v5754_v44, %v5742_v57 }
0x1649   :  { %v2993_v32 = vpop.permute.xlu0 %2992 }
0x164e   :  { %5241 = vmatpush3.bf16.xpose.msra.mxu0 %v2937_v49 }
0x1666   :  { %v2778_v50 = vpop.xlane.xlu1 %2777 }
0x1667   :  { %5755 = vrcp.f32 %v2778_v50 }
0x166a   :  { %v2925_v53 = vpop.permute.xlu1 %2924 }
0x166b   :  { %5243 = vmatmul.mubr.msk.bf16.vlgmr.msra.gmra.mxu0 %vm471_vm4, %v2925_v53 }
0x166e   :  { %v2991_v31 = vpop.permute.xlu1 %2990 }
0x1674   :  { %v5756_v30 = vpop.eup %5755 }
0x1675   :  { %v2792_v21 = vmul.f32 %v5756_v30, %v5744_v19 }
0x1677   :  { %v2796_v7 = vpack.c.bf16 %v2792_v21, %v2791_v4 }
0x1679   :  { %5234 = vmatprep.mubr.msk.bf16.mxu1 %vm606_vm6, %v2796_v7 }
0x167a   :  { %5235 = vmatmul.mubr.msk.bf16.vlgmr.msra.gmra.mxu1 %vm606_vm6, %v2797_v0 }
0x167b   :  { %5247 = vmatpush3.bf16.xpose.msra.mxu1 %v3008_v9  ;;  %5250 = vmatprep.mubr.msk.bf16.mxu1 %vm471_vm4, %v2991_v31 }
0x167c   :  { %5427 = vmatprep.subr.msk.bf16.mxu1 %vm471_vm4, %v2995_v13 }
0x1683   :  { %5249 = vmatpush3.bf16.xpose.msra.mxu1 %v3005_v48 }
0x168a   :  { %5251 = vmatmul.mubr.msk.bf16.vlgmr.msra.gmra.mxu1 %vm471_vm4, %v2993_v32 }
0x1705   :  { %v6976_v35 = vpop.f32.mrf.mxu0 }
0x1707   :  { %v6978_v1 = vpop.f32.mrf.mxu0 }
0x1709   :  { %v5229_v6 = vpop.f32.mrf.mxu0 }
0x170b   :  { %v6980_v56 = vpop.f32.mrf.mxu0 }
0x172b   :  { %v5244_v2 = vpop.f32.mrf.mxu0 }
0x172c   :  { %v3060_v8 = vsel %vm263_vm5, %v5244_v2, -1e+30 }
0x172d   :  { %v2976_v18 = vpop.f32.mrf.mxu0  ;;  %v3070_v61 = vsel %vm606_vm6, %v3060_v8, -inf }
0x172e   :  { %v3058_v58 = vsel %vm263_vm5, %v2976_v18, -1e+30 }
0x172f   :  { %v3064_v59 = vsel %vm606_vm6, %v3058_v58, -inf  ;;  %v5245_v60 = vpop.f32.mrf.mxu0 }
0x1730   :  { %3065 = vmax.xlane.f32.xlu1 %v3064_v59 }
0x1731   :  { %v2979_v62 = vpop.f32.mrf.mxu0 }
0x1732   :  { %v3059_v63 = vsel %vm263_vm5, %v2979_v62, -1e+30 }
0x1733   :  { %v3067_v57 = vsel %vm606_vm6, %v3059_v63, -inf }
0x1734   :  { %3068 = vmax.xlane.f32.xlu0 %v3067_v57 }
0x1738   :  { %3071 = vmax.xlane.f32.xlu0 %v3070_v61 }
0x173a   :  { %v6991_v11 = vpop.f32.mrf.mxu1 }
0x173c   :  { %v6993_v20 = vpop.f32.mrf.mxu1 }
0x173e   :  { %v5237_v16 = vpop.f32.mrf.mxu1 }
0x1740   :  { %v6999_v19 = vpop.f32.mrf.mxu1 }
0x1741   :  { %3136 = vrot.lane.b32.xlu1 %v6878_v10, %s5878_s2 }
0x1745   :  { %3264 = vrot.lane.b32.xlu1 %v6878_v10, %s5879_s29 }
0x1749   :  { %3198 = vrot.lane.b32.xlu1 %v6886_v12, %s5878_s2 }
0x174a   :  { %v5252_v17 = vpop.f32.mrf.mxu1 }
0x174b   :  { %v3063_v37 = vsel %vm263_vm5, %v5252_v17, -1e+30 }
0x174c   :  { %v3044_v24 = vpop.f32.mrf.mxu1  ;;  %v3079_v33 = vsel %vm606_vm6, %v3063_v37, -inf }
0x174d   :  { %v3061_v14 = vsel %vm263_vm5, %v3044_v24, -1e+30 }
0x174e   :  { %v3073_v3 = vsel %vm606_vm6, %v3061_v14, -inf  ;;  %v5253_v34 = vpop.f32.mrf.mxu1 }
0x174f   :  { %3074 = vmax.xlane.f32.xlu0 %v3073_v3 }
0x1750   :  { %v3047_v39 = vpop.f32.mrf.mxu1 }
0x1751   :  { %v3062_v41 = vsel %vm263_vm5, %v3047_v39, -1e+30 }
0x1752   :  { %v3076_v25 = vsel %vm606_vm6, %v3062_v41, -inf }
0x1753   :  { %3080 = vmax.xlane.f32.xlu0 %v3079_v33 }
0x1769   :  { %3134 = vrot.lane.b32.xlu0 %v6872_v5, %s5878_s2 }
0x176d   :  { %3077 = vmax.xlane.f32.xlu1 %v3076_v25 }
0x177e   :  { %3196 = vrot.lane.b32.xlu1 %v6882_v55, %s5878_s2 }
0x17b9   :  { %v3066_v45 = vpop.xlane.xlu1 %3065 }
0x17ba   :  { %v3082_v51 = vsub.f32 %v3058_v58, %v3066_v45 }
0x17bc   :  { %v3088_v53 = vmul.f32 1.442695, %v3082_v51 }
0x17bd   :  { %v3069_v47 = vpop.xlane.xlu0 %3068  ;;  %v3137_v42 = vpop.permute.xlu1 %3136 }
0x17be   :  { %v3083_v22 = vsub.f32 %v3059_v63, %v3069_v47  ;;  %v3146_v28 = vsel %vm688_vm7, %v3137_v42, 0  ;;  %5428 = vmatprep.subr.msk.bf16.mxu0 %vm688_vm7, %v3137_v42 }
0x17bf   :  { %5255 = vmatpush3.bf16.msra.mxu0 %v3146_v28 }
0x17c0   :  { %v3090_v40 = vmul.f32 1.442695, %v3083_v22 }
0x17c1   :  { %v3072_v52 = vpop.xlane.xlu0 %3071  ;;  %v7018_v49 = vpop.permute.xlu1 %3264 }
0x17c2   :  { %5757 = vpow2.f32 %v3090_v40  ;;  %v3084_v50 = vsub.f32 %v3060_v8, %v3072_v52  ;;  %v3276_v22 = vsel %vm471_vm4, %v7018_v49, 0 }
0x17c4   :  { %v3092_v23 = vmul.f32 1.442695, %v3084_v50 }
0x17c5   :  { %v3199_v44 = vpop.permute.xlu1 %3198 }
0x17c6   :  { %5759 = vpow2.f32 %v3092_v23  ;;  %v3208_v30 = vsel %vm688_vm7, %v3199_v44, 0  ;;  %5429 = vmatprep.subr.msk.bf16.mxu1 %vm688_vm7, %v3199_v44 }
0x17c7   :  { %5263 = vmatpush3.bf16.msra.mxu1 %v3208_v30  ;;  %5761 = vpow2.f32 %v3088_v53 }
0x17cf   :  { %v5758_v54 = vpop.eup %5757 }
0x17d0   :  { %v3103_v4 = vsel %vm606_vm6, %v5758_v54, 0.0 }
0x17d1   :  { %3104 = vadd.xlane.f32.xlu0 %v3103_v4 }
0x17d3   :  { %v5760_v21 = vpop.eup %5759 }
0x17d4   :  { %v3106_v7 = vsel %vm606_vm6, %v5760_v21, 0.0  ;;  %v5762_v0 = vpop.eup %5761 }
0x17d5   :  { %3107 = vadd.xlane.f32.xlu1 %v3106_v7  ;;  %v3100_v9 = vsel %vm606_vm6, %v5762_v0, 0.0 }
0x17d8   :  { %v3075_v31 = vpop.xlane.xlu0 %3074 }
0x17d9   :  { %3101 = vadd.xlane.f32.xlu1 %v3100_v9  ;;  %v3085_v13 = vsub.f32 %v3061_v14, %v3075_v31 }
0x17db   :  { %v3094_v6 = vmul.f32 1.442695, %v3085_v13 }
0x17dc   :  { %v3081_v48 = vpop.xlane.xlu0 %3080 }
0x17dd   :  { %v3087_v32 = vsub.f32 %v3063_v37, %v3081_v48 }
0x17df   :  { %v3098_v2 = vmul.f32 1.442695, %v3087_v32 }
0x17e0   :  { %v3135_v18 = vpop.permute.xlu0 %3134 }
0x17e1   :  { %5763 = vpow2.f32 %v3098_v2  ;;  %5256 = vmatprep.subr.bf16.mxu0 %v3135_v18 }
0x17e2   :  { %5257 = vmatpush3.bf16.msra.mxu0 %v3135_v18  ;;  %5765 = vpow2.f32 %v3094_v6 }
0x17e3   :  { %5430 = vmatprep.subr.msk.bf16.mxu0 %vm471_vm4, %v7018_v49 }
0x17ea   :  { %3332 = vrot.lane.b32.xlu1 %v6886_v12, %s5879_s29 }
0x17ee   :  { %v5764_v58 = vpop.eup %5763 }
0x17ef   :  { %v3115_v59 = vsel %vm606_vm6, %v5764_v58, 0.0  ;;  %v5766_v60 = vpop.eup %5765 }
0x17f0   :  { %3116 = vadd.xlane.f32.xlu0 %v3115_v59  ;;  %v3109_v62 = vsel %vm606_vm6, %v5766_v60, 0.0 }
0x17f4   :  { %3110 = vadd.xlane.f32.xlu0 %v3109_v62 }
0x17f6   :  { %v3078_v63 = vpop.xlane.xlu1 %3077 }
0x17f7   :  { %v3086_v57 = vsub.f32 %v3062_v41, %v3078_v63 }
0x17f9   :  { %v3096_v8 = vmul.f32 1.442695, %v3086_v57 }
0x17fa   :  { %v3197_v61 = vpop.permute.xlu1 %3196 }
0x17fb   :  { %5264 = vmatprep.subr.bf16.mxu1 %v3197_v61  ;;  %5767 = vpow2.f32 %v3096_v8 }
0x17fc   :  { %5265 = vmatpush3.bf16.msra.mxu1 %v3197_v61 }
0x1808   :  { %v5768_v16 = vpop.eup %5767 }
0x1809   :  { %v3112_v17 = vsel %vm606_vm6, %v5768_v16, 0.0 }
0x180a   :  { %3262 = vrot.lane.b32.xlu0 %v6872_v5, %s5879_s29 }
0x180e   :  { %3258 = vrot.lane.b32.xlu0 %v6872_v5, %s5880_s1  ;;  %3113 = vadd.xlane.f32.xlu1 %v3112_v17 }
0x1812   :  { %3330 = vrot.lane.b32.xlu0 %v6882_v55, %s5879_s29 }
0x1816   :  { %3328 = vrot.lane.b32.xlu0 %v6886_v12, %s5880_s1 }
0x181f   :  { %3260 = vrot.lane.b32.xlu1 %v6878_v10, %s5880_s1 }
0x1823   :  { %3326 = vrot.lane.b32.xlu1 %v6882_v55, %s5880_s1 }
0x185a   :  { %v3105_v24 = vpop.xlane.xlu0 %3104 }
0x185e   :  { %v3108_v14 = vpop.xlane.xlu1 %3107 }
0x185f   :  { %5769 = vrcp.f32 %v3108_v14 }
0x1860   :  { %5771 = vrcp.f32 %v3105_v24 }
0x1862   :  { %v3102_v3 = vpop.xlane.xlu1 %3101 }
0x1863   :  { %5773 = vrcp.f32 %v3102_v3 }
0x1866   :  { %v3333_v34 = vpop.permute.xlu1 %3332 }
0x1867   :  { %5432 = vmatprep.subr.msk.bf16.mxu1 %vm471_vm4, %v3333_v34  ;;  %v3344_v31 = vsel %vm471_vm4, %v3333_v34, 0 }
0x186c   :  { %v5770_v37 = vpop.eup %5769 }
0x186d   :  { %v5772_v33 = vpop.eup %5771  ;;  %v3126_v41 = vmul.f32 %v5770_v37, %v5760_v21 }
0x186e   :  { %v3125_v45 = vmul.f32 %v5772_v33, %v5758_v54 }
0x186f   :  { %v3131_v42 = vpack.c.bf16 %v3126_v41, %v3126_v41 }
0x1870   :  { %v5774_v39 = vpop.eup %5773 }
0x1871   :  { %v3124_v25 = vmul.f32 %v5774_v39, %v5762_v0 }
0x1873   :  { %v3130_v47 = vpack.c.bf16 %v3125_v45, %v3124_v25 }
0x1875   :  { %5258 = vmatprep.mubr.msk.bf16.mxu0 %vm606_vm6, %v3130_v47 }
0x1876   :  { %5259 = vmatmul.mubr.msk.bf16.vlgmr.msra.gmra.mxu0 %vm606_vm6, %v3131_v42 }
0x1877   :  { %5271 = vmatpush3.bf16.xpose.msra.mxu0 %v3276_v22 }
0x1879   :  { %v3117_v28 = vpop.xlane.xlu0 %3116 }
0x187a   :  { %5775 = vrcp.f32 %v3117_v28 }
0x187d   :  { %v3111_v51 = vpop.xlane.xlu0 %3110 }
0x187e   :  { %5777 = vrcp.f32 %v3111_v51 }
0x1881   :  { %v3263_v40 = vpop.permute.xlu0 %3262 }
0x1882   :  { %v3273_v52 = vsel %vm471_vm4, %v3263_v40, 0  ;;  %5431 = vmatprep.subr.msk.bf16.mxu0 %vm471_vm4, %v3263_v40 }
0x1883   :  { %5273 = vmatpush3.bf16.xpose.msra.mxu0 %v3273_v52 }
0x1885   :  { %v3259_v50 = vpop.permute.xlu0 %3258 }
0x1886   :  { %5274 = vmatprep.mubr.msk.bf16.mxu0 %vm471_vm4, %v3259_v50 }
0x1887   :  { %v5776_v49 = vpop.eup %5775 }
0x1888   :  { %v3129_v54 = vmul.f32 %v5776_v49, %v5764_v58 }
0x1889   :  { %v3331_v13 = vpop.permute.xlu0 %3330 }
0x188a   :  { %v3133_v0 = vpack.c.bf16 %v3129_v54, %v3129_v54  ;;  %v3341_v48 = vsel %vm471_vm4, %v3331_v13, 0 }
0x188b   :  { %v5778_v44 = vpop.eup %5777 }
0x188c   :  { %v3127_v4 = vmul.f32 %v5778_v44, %v5766_v60 }
0x188d   :  { %v3329_v32 = vpop.permute.xlu0 %3328 }
0x1897   :  { %v3114_v53 = vpop.xlane.xlu1 %3113 }
0x1898   :  { %5779 = vrcp.f32 %v3114_v53 }
0x189b   :  { %v3261_v23 = vpop.permute.xlu1 %3260 }
0x189c   :  { %5275 = vmatmul.mubr.msk.bf16.vlgmr.msra.gmra.mxu0 %vm471_vm4, %v3261_v23 }
0x189f   :  { %v3327_v9 = vpop.permute.xlu1 %3326 }
0x18a5   :  { %v5780_v30 = vpop.eup %5779 }
0x18a6   :  { %v3128_v21 = vmul.f32 %v5780_v30, %v5768_v16 }
0x18a8   :  { %v3132_v7 = vpack.c.bf16 %v3128_v21, %v3127_v4 }
0x18aa   :  { %5266 = vmatprep.mubr.msk.bf16.mxu1 %vm606_vm6, %v3132_v7 }
0x18ab   :  { %5267 = vmatmul.mubr.msk.bf16.vlgmr.msra.gmra.mxu1 %vm606_vm6, %v3133_v0 }
0x18ac   :  { %5279 = vmatpush3.bf16.xpose.msra.mxu1 %v3344_v31  ;;  %5282 = vmatprep.mubr.msk.bf16.mxu1 %vm471_vm4, %v3327_v9 }
0x18ad   :  { %5433 = vmatprep.subr.msk.bf16.mxu1 %vm471_vm4, %v3331_v13 }
0x18b4   :  { %5281 = vmatpush3.bf16.xpose.msra.mxu1 %v3341_v48 }
0x18bb   :  { %5283 = vmatmul.mubr.msk.bf16.vlgmr.msra.gmra.mxu1 %vm471_vm4, %v3329_v32 }
0x1936   :  { %v7060_v6 = vpop.f32.mrf.mxu0 }
0x1938   :  { %v7062_v2 = vpop.f32.mrf.mxu0 }
0x193a   :  { %v5261_v18 = vpop.f32.mrf.mxu0 }
0x193c   :  { %v7064_v58 = vpop.f32.mrf.mxu0 }
0x193d   :  { %v5504_v59 = vpack.i.bf16 %v7064_v58, %v7062_v2 }
0x195c   :  { %v5276_v60 = vpop.f32.mrf.mxu0 }
0x195d   :  { %v3396_v24 = vsel %vm263_vm5, %v5276_v60, -1e+30 }
0x195e   :  { %v3312_v62 = vpop.f32.mrf.mxu0  ;;  %v3406_v14 = vsel %vm606_vm6, %v3396_v24, -inf }
0x195f   :  { %v3394_v63 = vsel %vm263_vm5, %v3312_v62, -1e+30 }
0x1960   :  { %v3400_v57 = vsel %vm606_vm6, %v3394_v63, -inf  ;;  %v5277_v8 = vpop.f32.mrf.mxu0 }
0x1961   :  { %3401 = vmax.xlane.f32.xlu1 %v3400_v57 }
0x1962   :  { %v3315_v61 = vpop.f32.mrf.mxu0 }
0x1963   :  { %v3395_v16 = vsel %vm263_vm5, %v3315_v61, -1e+30 }
0x1964   :  { %v3403_v17 = vsel %vm606_vm6, %v3395_v16, -inf }
0x1965   :  { %3404 = vmax.xlane.f32.xlu0 %v3403_v17 }
0x1969   :  { %3407 = vmax.xlane.f32.xlu0 %v3406_v14 }
0x196b   :  { %v7077_v3 = vpop.f32.mrf.mxu1 }
0x196d   :  { %v7079_v34 = vpop.f32.mrf.mxu1 }
0x196e   :  { %v5519_v37 = vpack.i.bf16 %v7079_v34, %v7060_v6 }
0x196f   :  { %v5269_v33 = vpop.f32.mrf.mxu1 }
0x1971   :  { %v7083_v39 = vpop.f32.mrf.mxu1 }
0x1972   :  { %v5534_v41 = vpack.i.bf16 %v7077_v3, %v7083_v39  ;;  %3472 = vrot.lane.b32.xlu1 %v6878_v10, %s5881_s4 }
0x1976   :  { %3600 = vrot.lane.b32.xlu1 %v6878_v10, %s7489_s8 }
0x197a   :  { %3534 = vrot.lane.b32.xlu1 %v6886_v12, %s5881_s4 }
0x197b   :  { %v5284_v25 = vpop.f32.mrf.mxu1 }
0x197c   :  { %v3399_v28 = vsel %vm263_vm5, %v5284_v25, -1e+30 }
0x197d   :  { %v3380_v45 = vpop.f32.mrf.mxu1  ;;  %v3415_v51 = vsel %vm606_vm6, %v3399_v28, -inf }
0x197e   :  { %v3397_v47 = vsel %vm263_vm5, %v3380_v45, -1e+30 }
0x197f   :  { %v3409_v42 = vsel %vm606_vm6, %v3397_v47, -inf  ;;  %v5285_v22 = vpop.f32.mrf.mxu1 }
0x1980   :  { %3410 = vmax.xlane.f32.xlu0 %v3409_v42 }
0x1981   :  { %v3383_v40 = vpop.f32.mrf.mxu1 }
0x1982   :  { %v3398_v52 = vsel %vm263_vm5, %v3383_v40, -1e+30 }
0x1983   :  { %v3412_v50 = vsel %vm606_vm6, %v3398_v52, -inf }
0x1984   :  { %3416 = vmax.xlane.f32.xlu0 %v3415_v51 }
0x199a   :  { %3470 = vrot.lane.b32.xlu0 %v6872_v5, %s5881_s4 }
0x199e   :  { %3413 = vmax.xlane.f32.xlu1 %v3412_v50 }
0x19af   :  { %3532 = vrot.lane.b32.xlu1 %v6882_v55, %s5881_s4 }
0x19ea   :  { %v3402_v53 = vpop.xlane.xlu1 %3401 }
0x19eb   :  { %v3418_v54 = vsub.f32 %v3394_v63, %v3402_v53 }
0x19ed   :  { %v3424_v31 = vmul.f32 1.442695, %v3418_v54 }
0x19ee   :  { %v3405_v23 = vpop.xlane.xlu0 %3404  ;;  %v3473_v49 = vpop.permute.xlu1 %3472 }
0x19ef   :  { %v3419_v44 = vsub.f32 %v3395_v16, %v3405_v23  ;;  %v3482_v30 = vsel %vm688_vm7, %v3473_v49, 0  ;;  %5434 = vmatprep.subr.msk.bf16.mxu0 %vm688_vm7, %v3473_v49 }
0x19f0   :  { %5287 = vmatpush3.bf16.msra.mxu0 %v3482_v30 }
0x19f1   :  { %v3426_v4 = vmul.f32 1.442695, %v3419_v44 }
0x19f2   :  { %v3408_v21 = vpop.xlane.xlu0 %3407  ;;  %v7108_v7 = vpop.permute.xlu1 %3600 }
0x19f3   :  { %5781 = vpow2.f32 %v3426_v4  ;;  %v3420_v0 = vsub.f32 %v3396_v24, %v3408_v21 }
0x19f5   :  { %v3428_v9 = vmul.f32 1.442695, %v3420_v0 }
0x19f6   :  { %v3535_v13 = vpop.permute.xlu1 %3534 }
0x19f7   :  { %5783 = vpow2.f32 %v3428_v9  ;;  %v3544_v48 = vsel %vm688_vm7, %v3535_v13, 0  ;;  %5435 = vmatprep.subr.msk.bf16.mxu1 %vm688_vm7, %v3535_v13 }
0x19f8   :  { %5295 = vmatpush3.bf16.msra.mxu1 %v3544_v48  ;;  %5785 = vpow2.f32 %v3424_v31  ;;  %v3612_v48 = vsel %vm471_vm4, %v7108_v7, 0 }
0x1a00   :  { %v5782_v32 = vpop.eup %5781 }
0x1a01   :  { %v3439_v18 = vsel %vm606_vm6, %v5782_v32, 0.0 }
0x1a02   :  { %3440 = vadd.xlane.f32.xlu0 %v3439_v18 }
0x1a04   :  { %v5784_v60 = vpop.eup %5783 }
0x1a05   :  { %v3442_v62 = vsel %vm606_vm6, %v5784_v60, 0.0  ;;  %v5786_v63 = vpop.eup %5785 }
0x1a06   :  { %3443 = vadd.xlane.f32.xlu1 %v3442_v62  ;;  %v3436_v8 = vsel %vm606_vm6, %v5786_v63, 0.0 }
0x1a09   :  { %v3411_v57 = vpop.xlane.xlu0 %3410 }
0x1a0a   :  { %3437 = vadd.xlane.f32.xlu1 %v3436_v8  ;;  %v3421_v61 = vsub.f32 %v3397_v47, %v3411_v57 }
0x1a0c   :  { %v3430_v24 = vmul.f32 1.442695, %v3421_v61 }
0x1a0d   :  { %v3417_v16 = vpop.xlane.xlu0 %3416 }
0x1a0e   :  { %v3423_v17 = vsub.f32 %v3399_v28, %v3417_v16 }
0x1a10   :  { %v3434_v14 = vmul.f32 1.442695, %v3423_v17 }
0x1a11   :  { %v3471_v33 = vpop.permute.xlu0 %3470 }
0x1a12   :  { %5787 = vpow2.f32 %v3434_v14  ;;  %5288 = vmatprep.subr.bf16.mxu0 %v3471_v33 }
0x1a13   :  { %5289 = vmatpush3.bf16.msra.mxu0 %v3471_v33  ;;  %5789 = vpow2.f32 %v3430_v24 }
0x1a14   :  { %5436 = vmatprep.subr.msk.bf16.mxu0 %vm471_vm4, %v7108_v7 }
0x1a1b   :  { %3668 = vrot.lane.b32.xlu1 %v6886_v12, %s7489_s8 }
0x1a1f   :  { %v5788_v25 = vpop.eup %5787 }
0x1a20   :  { %v3451_v45 = vsel %vm606_vm6, %v5788_v25, 0.0  ;;  %v5790_v42 = vpop.eup %5789 }
0x1a21   :  { %3452 = vadd.xlane.f32.xlu0 %v3451_v45  ;;  %v3445_v47 = vsel %vm606_vm6, %v5790_v42, 0.0 }
0x1a25   :  { %3446 = vadd.xlane.f32.xlu0 %v3445_v47 }
0x1a27   :  { %v3414_v22 = vpop.xlane.xlu1 %3413 }
0x1a28   :  { %v3422_v28 = vsub.f32 %v3398_v52, %v3414_v22 }
0x1a2a   :  { %v3432_v51 = vmul.f32 1.442695, %v3422_v28 }
0x1a2b   :  { %v3533_v40 = vpop.permute.xlu1 %3532 }
0x1a2c   :  { %5296 = vmatprep.subr.bf16.mxu1 %v3533_v40  ;;  %5791 = vpow2.f32 %v3432_v51 }
0x1a2d   :  { %5297 = vmatpush3.bf16.msra.mxu1 %v3533_v40 }
0x1a39   :  { %v5792_v50 = vpop.eup %5791 }
0x1a3a   :  { %v3448_v53 = vsel %vm606_vm6, %v5792_v50, 0.0 }
0x1a3b   :  { %3598 = vrot.lane.b32.xlu0 %v6872_v5, %s7489_s8 }
0x1a3f   :  { %3594 = vrot.lane.b32.xlu0 %v6872_v5, %s7490_s19  ;;  %3449 = vadd.xlane.f32.xlu1 %v3448_v53 }
0x1a43   :  { %3666 = vrot.lane.b32.xlu0 %v6882_v55, %s7489_s8 }
0x1a47   :  { %3664 = vrot.lane.b32.xlu0 %v6886_v12, %s7490_s19 }
0x1a50   :  { %3596 = vrot.lane.b32.xlu1 %v6878_v10, %s7490_s19 }
0x1a54   :  { %3662 = vrot.lane.b32.xlu1 %v6882_v55, %s7490_s19 }
0x1a8b   :  { %v3441_v52 = vpop.xlane.xlu0 %3440 }
0x1a8f   :  { %v3444_v23 = vpop.xlane.xlu1 %3443 }
0x1a90   :  { %5793 = vrcp.f32 %v3444_v23 }
0x1a91   :  { %5795 = vrcp.f32 %v3441_v52 }
0x1a93   :  { %v3438_v49 = vpop.xlane.xlu1 %3437 }
0x1a94   :  { %5797 = vrcp.f32 %v3438_v49 }
0x1a97   :  { %v3669_v44 = vpop.permute.xlu1 %3668 }
0x1a98   :  { %5438 = vmatprep.subr.msk.bf16.mxu1 %vm471_vm4, %v3669_v44  ;;  %v3680_v47 = vsel %vm471_vm4, %v3669_v44, 0 }
0x1a9d   :  { %v5794_v30 = vpop.eup %5793 }
0x1a9e   :  { %v5796_v54 = vpop.eup %5795  ;;  %v3462_v21 = vmul.f32 %v5794_v30, %v5784_v60 }
0x1a9f   :  { %v3461_v31 = vmul.f32 %v5796_v54, %v5782_v32 }
0x1aa0   :  { %v3467_v13 = vpack.c.bf16 %v3462_v21, %v3462_v21 }
0x1aa1   :  { %v5798_v4 = vpop.eup %5797 }
0x1aa2   :  { %v3460_v0 = vmul.f32 %v5798_v4, %v5786_v63 }
0x1aa4   :  { %v3466_v9 = vpack.c.bf16 %v3461_v31, %v3460_v0 }
0x1aa6   :  { %5290 = vmatprep.mubr.msk.bf16.mxu0 %vm606_vm6, %v3466_v9 }
0x1aa7   :  { %5291 = vmatmul.mubr.msk.bf16.vlgmr.msra.gmra.mxu0 %vm606_vm6, %v3467_v13 }
0x1aa8   :  { %5303 = vmatpush3.bf16.xpose.msra.mxu0 %v3612_v48 }
0x1aaa   :  { %v3453_v18 = vpop.xlane.xlu0 %3452 }
0x1aab   :  { %5799 = vrcp.f32 %v3453_v18 }
0x1aae   :  { %v3447_v62 = vpop.xlane.xlu0 %3446 }
0x1aaf   :  { %5801 = vrcp.f32 %v3447_v62 }
0x1ab2   :  { %v3599_v57 = vpop.permute.xlu0 %3598 }
0x1ab3   :  { %v3609_v8 = vsel %vm471_vm4, %v3599_v57, 0  ;;  %5437 = vmatprep.subr.msk.bf16.mxu0 %vm471_vm4, %v3599_v57 }
0x1ab4   :  { %5305 = vmatpush3.bf16.xpose.msra.mxu0 %v3609_v8 }
0x1ab6   :  { %v3595_v60 = vpop.permute.xlu0 %3594 }
0x1ab7   :  { %5306 = vmatprep.mubr.msk.bf16.mxu0 %vm471_vm4, %v3595_v60 }
0x1ab8   :  { %v5800_v7 = vpop.eup %5799 }
0x1ab9   :  { %v3465_v17 = vmul.f32 %v5800_v7, %v5788_v25 }
0x1aba   :  { %v3667_v28 = vpop.permute.xlu0 %3666 }
0x1abb   :  { %v3469_v45 = vpack.c.bf16 %v3465_v17, %v3465_v17  ;;  %v3677_v51 = vsel %vm471_vm4, %v3667_v28, 0 }
0x1abc   :  { %v5802_v61 = vpop.eup %5801 }
0x1abd   :  { %v3463_v24 = vmul.f32 %v5802_v61, %v5790_v42 }
0x1abe   :  { %v3665_v25 = vpop.permute.xlu0 %3664 }
0x1ac8   :  { %v3450_v32 = vpop.xlane.xlu1 %3449 }
0x1ac9   :  { %5803 = vrcp.f32 %v3450_v32 }
0x1acc   :  { %v3597_v63 = vpop.permute.xlu1 %3596 }
0x1acd   :  { %5307 = vmatmul.mubr.msk.bf16.vlgmr.msra.gmra.mxu0 %vm471_vm4, %v3597_v63 }
0x1ad0   :  { %v3663_v22 = vpop.permute.xlu1 %3662 }
0x1ad6   :  { %v5804_v16 = vpop.eup %5803 }
0x1ad7   :  { %v3464_v14 = vmul.f32 %v5804_v16, %v5792_v50 }
0x1ad9   :  { %v3468_v33 = vpack.c.bf16 %v3464_v14, %v3463_v24 }
0x1adb   :  { %5298 = vmatprep.mubr.msk.bf16.mxu1 %vm606_vm6, %v3468_v33 }
0x1adc   :  { %5299 = vmatmul.mubr.msk.bf16.vlgmr.msra.gmra.mxu1 %vm606_vm6, %v3469_v45 }
0x1add   :  { %5311 = vmatpush3.bf16.xpose.msra.mxu1 %v3680_v47  ;;  %5314 = vmatprep.mubr.msk.bf16.mxu1 %vm471_vm4, %v3663_v22 }
0x1ade   :  { %5439 = vmatprep.subr.msk.bf16.mxu1 %vm471_vm4, %v3667_v28 }
0x1ae5   :  { %5313 = vmatpush3.bf16.xpose.msra.mxu1 %v3677_v51 }
0x1aec   :  { %5315 = vmatmul.mubr.msk.bf16.vlgmr.msra.gmra.mxu1 %vm471_vm4, %v3665_v25 }
0x1b67   :  { %v7150_v42 = vpop.f32.mrf.mxu0 }
0x1b69   :  { %v7152_v40 = vpop.f32.mrf.mxu0 }
0x1b6b   :  { %v5293_v50 = vpop.f32.mrf.mxu0 }
0x1b6d   :  { %v7154_v53 = vpop.f32.mrf.mxu0 }
0x1b6e   :  { %v5509_v52 = vpack.i.bf16 %v7154_v53, %v7152_v40 }
0x1b8d   :  { %v5308_v23 = vpop.f32.mrf.mxu0 }
0x1b8e   :  { %v3732_v31 = vsel %vm263_vm5, %v5308_v23, -1e+30 }
0x1b8f   :  { %v3648_v49 = vpop.f32.mrf.mxu0  ;;  %v3742_v9 = vsel %vm606_vm6, %v3732_v31, -inf }
0x1b90   :  { %v3730_v44 = vsel %vm263_vm5, %v3648_v49, -1e+30 }
0x1b91   :  { %v3736_v30 = vsel %vm606_vm6, %v3730_v44, -inf  ;;  %v5309_v54 = vpop.f32.mrf.mxu0 }
0x1b92   :  { %3737 = vmax.xlane.f32.xlu1 %v3736_v30 }
0x1b93   :  { %v3651_v4 = vpop.f32.mrf.mxu0 }
0x1b94   :  { %v3731_v21 = vsel %vm263_vm5, %v3651_v4, -1e+30 }
0x1b95   :  { %v3739_v0 = vsel %vm606_vm6, %v3731_v21, -inf }
0x1b96   :  { %3740 = vmax.xlane.f32.xlu0 %v3739_v0 }
0x1b9a   :  { %3743 = vmax.xlane.f32.xlu0 %v3742_v9 }
0x1b9c   :  { %v7167_v13 = vpop.f32.mrf.mxu1 }
0x1b9e   :  { %v7169_v48 = vpop.f32.mrf.mxu1 }
0x1b9f   :  { %v5524_v18 = vpack.i.bf16 %v7169_v48, %v7150_v42 }
0x1ba0   :  { %v5301_v62 = vpop.f32.mrf.mxu1 }
0x1ba2   :  { %v7173_v57 = vpop.f32.mrf.mxu1 }
0x1ba3   :  { %v5539_v8 = vpack.i.bf16 %v7167_v13, %v7173_v57 }
0x1bac   :  { %v5316_v60 = vpop.f32.mrf.mxu1 }
0x1bad   :  { %v3735_v16 = vsel %vm263_vm5, %v5316_v60, -1e+30 }
0x1bae   :  { %v3716_v32 = vpop.f32.mrf.mxu1  ;;  %v3751_v14 = vsel %vm606_vm6, %v3735_v16, -inf }
0x1baf   :  { %v3733_v63 = vsel %vm263_vm5, %v3716_v32, -1e+30 }
0x1bb0   :  { %v3745_v7 = vsel %vm606_vm6, %v3733_v63, -inf  ;;  %v5317_v61 = vpop.f32.mrf.mxu1 }
0x1bb1   :  { %3746 = vmax.xlane.f32.xlu0 %v3745_v7 }
0x1bb2   :  { %v3719_v17 = vpop.f32.mrf.mxu1 }
0x1bb3   :  { %v3734_v24 = vsel %vm263_vm5, %v3719_v17, -1e+30 }
0x1bb4   :  { %v3748_v33 = vsel %vm606_vm6, %v3734_v24, -inf }
0x1bb5   :  { %3752 = vmax.xlane.f32.xlu0 %v3751_v14  ;;  %3749 = vmax.xlane.f32.xlu1 %v3748_v33 }
0x1bc6   :  { %3808 = vrot.lane.b32.xlu1 %v6878_v10, %s7491_s20 }
0x1c1b   :  { %v3738_v45 = vpop.xlane.xlu1 %3737 }
0x1c1c   :  { %v3754_v28 = vsub.f32 %v3730_v44, %v3738_v45 }
0x1c1e   :  { %v3760_v23 = vmul.f32 1.442695, %v3754_v28 }
0x1c1f   :  { %v3741_v47 = vpop.xlane.xlu0 %3740 }
0x1c20   :  { %v3755_v22 = vsub.f32 %v3731_v21, %v3741_v47 }
0x1c22   :  { %v3762_v51 = vmul.f32 1.442695, %v3755_v22 }
0x1c23   :  { %v3744_v25 = vpop.xlane.xlu0 %3743 }
0x1c24   :  { %5805 = vpow2.f32 %v3762_v51  ;;  %v3756_v50 = vsub.f32 %v3732_v31, %v3744_v25 }
0x1c26   :  { %v3764_v43 = vmul.f32 1.442695, %v3756_v50 }
0x1c28   :  { %5807 = vpow2.f32 %v3764_v43 }
0x1c29   :  { %5809 = vpow2.f32 %v3760_v23 }
0x1c31   :  { %v5806_v49 = vpop.eup %5805 }
0x1c32   :  { %v3775_v30 = vsel %vm606_vm6, %v5806_v49, 0.0 }
0x1c33   :  { %3776 = vadd.xlane.f32.xlu0 %v3775_v30 }
0x1c35   :  { %v5808_v54 = vpop.eup %5807 }
0x1c36   :  { %v3778_v4 = vsel %vm606_vm6, %v5808_v54, 0.0  ;;  %v5810_v10 = vpop.eup %5809 }
0x1c37   :  { %3779 = vadd.xlane.f32.xlu1 %v3778_v4  ;;  %v3772_v44 = vsel %vm606_vm6, %v5810_v10, 0.0 }
0x1c3a   :  { %v3747_v0 = vpop.xlane.xlu0 %3746 }
0x1c3b   :  { %3773 = vadd.xlane.f32.xlu1 %v3772_v44  ;;  %v3757_v21 = vsub.f32 %v3733_v63, %v3747_v0 }
0x1c3d   :  { %v3766_v60 = vmul.f32 1.442695, %v3757_v21  ;;  %v5577_v21 = vld [vmem:[%s7456_s9 + $0x18] sm:$0xff]  }
0x1c3e   :  { %v3753_v9 = vpop.xlane.xlu0 %3752  ;;  %v3750_v31 = vpop.xlane.xlu1 %3749 }
0x1c3f   :  { %v3759_v62 = vsub.f32 %v3735_v16, %v3753_v9  ;;  %v3758_v33 = vsub.f32 %v3734_v24, %v3750_v31  ;;  %v5578_v9 = vld [vmem:[%s7456_s9 + $0x10] sm:$0xff]  }
0x1c41   :  { %v3770_v32 = vmul.f32 1.442695, %v3759_v62  ;;  %v3768_v45 = vmul.f32 1.442695, %v3758_v33 }
0x1c42   :  { %v3809_v7 = vpop.permute.xlu1 %3808 }
0x1c43   :  { %5811 = vpow2.f32 %v3770_v32  ;;  %v3818_v61 = vsel %vm688_vm7, %v3809_v7, 0  ;;  %5440 = vmatprep.subr.msk.bf16.mxu0 %vm688_vm7, %v3809_v7 }
0x1c44   :  { %5319 = vmatpush3.bf16.msra.mxu0 %v3818_v61  ;;  %5813 = vpow2.f32 %v3766_v60 }
0x1c45   :  { %5815 = vpow2.f32 %v3768_v45 }
0x1c4c   :  { %3870 = vrot.lane.b32.xlu1 %v6886_v12, %s7491_s20 }
0x1c50   :  { %v5812_v17 = vpop.eup %5811 }
0x1c51   :  { %v3787_v14 = vsel %vm606_vm6, %v5812_v17, 0.0  ;;  %v5814_v63 = vpop.eup %5813 }
0x1c52   :  { %3788 = vadd.xlane.f32.xlu0 %v3787_v14  ;;  %v3781_v16 = vsel %vm606_vm6, %v5814_v63, 0.0  ;;  %v5816_v47 = vpop.eup %5815 }
0x1c53   :  { %v3784_v22 = vsel %vm606_vm6, %v5816_v47, 0.0 }
0x1c56   :  { %3782 = vadd.xlane.f32.xlu0 %v3781_v16 }
0x1c6c   :  { %3806 = vrot.lane.b32.xlu0 %v6872_v5, %s7491_s20 }
0x1c70   :  { %5510 = vrot.lane.b32.xlu0 %v5509_v52, %s7492_s27  ;;  %3785 = vadd.xlane.f32.xlu1 %v3784_v22 }
0x1c74   :  { %5520 = vrot.lane.b32.xlu0 %v5519_v37, %s7493_s28 }
0x1c81   :  { %3868 = vrot.lane.b32.xlu1 %v6882_v55, %s7491_s20 }
0x1c85   :  { %5505 = vrot.lane.b32.xlu1 %v5504_v59, %s7493_s28 }
0x1cbc   :  { %v3777_v5 = vpop.xlane.xlu0 %3776 }
0x1cbd   :  { %5817 = vrcp.f32 %v3777_v5 }
0x1cc0   :  { %v3780_v12 = vpop.xlane.xlu1 %3779 }
0x1cc4   :  { %v3774_v24 = vpop.xlane.xlu1 %3773 }
0x1cc5   :  { %5819 = vrcp.f32 %v3774_v24 }
0x1cc6   :  { %5821 = vrcp.f32 %v3780_v12 }
0x1cc8   :  { %v3871_v40 = vpop.permute.xlu1 %3870 }
0x1cc9   :  { %v3880_v53 = vsel %vm688_vm7, %v3871_v40, 0  ;;  %5441 = vmatprep.subr.msk.bf16.mxu1 %vm688_vm7, %v3871_v40 }
0x1cca   :  { %5327 = vmatpush3.bf16.msra.mxu1 %v3880_v53  ;;  %v5818_v6 = vpop.eup %5817 }
0x1ccb   :  { %v3797_v37 = vmul.f32 %v5818_v6, %v5806_v49 }
0x1cd2   :  { %v5820_v34 = vpop.eup %5819 }
0x1cd3   :  { %v3796_v55 = vmul.f32 %v5820_v34, %v5810_v10  ;;  %v5822_v58 = vpop.eup %5821 }
0x1cd4   :  { %v3798_v28 = vmul.f32 %v5822_v58, %v5808_v54 }
0x1cd5   :  { %v3802_v52 = vpack.c.bf16 %v3797_v37, %v3796_v55 }
0x1cd6   :  { %v3803_v25 = vpack.c.bf16 %v3798_v28, %v3798_v28 }
0x1cd7   :  { %5322 = vmatprep.mubr.msk.bf16.mxu0 %vm606_vm6, %v3802_v52 }
0x1cdb   :  { %v3789_v2 = vpop.xlane.xlu0 %3788 }
0x1cdc   :  { %5823 = vrcp.f32 %v3789_v2 }
0x1cdf   :  { %v3783_v59 = vpop.xlane.xlu0 %3782 }
0x1ce0   :  { %5825 = vrcp.f32 %v3783_v59 }
0x1ce3   :  { %v3807_v51 = vpop.permute.xlu0 %3806 }
0x1ce4   :  { %5320 = vmatprep.subr.bf16.mxu0 %v3807_v51 }
0x1ce5   :  { %5321 = vmatpush3.bf16.msra.mxu0 %v3807_v51 }
0x1ce6   :  { %5334 = vmatprep.subr.bf16.mxu0 %v5872_v26 }
0x1ce7   :  { %v5511_v3 = vpop.permute.xlu0 %5510 }
0x1ce8   :  { %5323 = vmatmul.mubr.msk.bf16.vlgmr.msra.gmra.mxu0 %vm606_vm6, %v3803_v25  ;;  %v5513_v45 = vunpack.i.h.bf16 %v5511_v3 }
0x1ce9   :  { %5338 = vmatprep.mubr.msk.bf16.mxu0 %vm5873_vm3, %v5872_v26  ;;  %v5824_v43 = vpop.eup %5823  ;;  %5335 = vmatpush3.bf16.msra.mxu0 %v5577_v21 }
0x1cea   :  { %v3801_v54 = vmul.f32 %v5824_v43, %v5812_v17  ;;  %5336 = vmatprep.subr.bf16.mxu0 %v5872_v26 }
0x1cec   :  { %v3805_v44 = vpack.c.bf16 %v3801_v54, %v3801_v54 }
0x1ced   :  { %v5826_v49 = vpop.eup %5825  ;;  %5337 = vmatpush3.bf16.msra.mxu0 %v5578_v9 }
0x1cee   :  { %v3799_v4 = vmul.f32 %v5826_v49, %v5814_v63  ;;  %5366 = vmatprep.subr.bf16.mxu0 %v5872_v26 }
0x1cf9   :  { %v3786_v50 = vpop.xlane.xlu1 %3785 }
0x1cfa   :  { %5827 = vrcp.f32 %v3786_v50 }
0x1cfd   :  { %v3869_v23 = vpop.permute.xlu1 %3868 }
0x1cfe   :  { %5328 = vmatprep.subr.bf16.mxu1 %v3869_v23 }
0x1cff   :  { %5329 = vmatpush3.bf16.msra.mxu1 %v3869_v23 }
0x1d00   :  { %5350 = vmatprep.subr.bf16.mxu1 %v5872_v26 }
0x1d01   :  { %v5506_v42 = vpop.permute.xlu1 %5505 }
0x1d02   :  { %v5508_v48 = vunpack.i.h.bf16 %v5506_v42 }
0x1d04   :  { %v4003_v39 = vsel %vm471_vm4, %v6980_v56, %v5508_v48  ;;  %v5521_v56 = vpop.permute.xlu0 %5520 }
0x1d05   :  { %v4009_v57 = vsel %vm1888_vm8, %v4003_v39, %v5513_v45  ;;  %v5523_v53 = vunpack.i.h.bf16 %v5521_v56  ;;  %v5522_v6 = vunpack.i.l.bf16 %v5521_v56 }
0x1d07   :  { %v5828_v30 = vpop.eup %5827  ;;  %v4005_v2 = vsel %vm471_vm4, %v6993_v20, %v5523_v53  ;;  %v4004_v58 = vsel %vm471_vm4, %v6976_v35, %v5522_v6 }
0x1d08   :  { %v3800_v10 = vmul.f32 %v5828_v30, %v5816_v47  ;;  %v5512_v47 = vunpack.i.l.bf16 %v5511_v3 }
0x1d0a   :  { %v3804_v0 = vpack.c.bf16 %v3800_v10, %v3799_v4 }
0x1d0c   :  { %5330 = vmatprep.mubr.msk.bf16.mxu1 %vm606_vm6, %v3804_v0 }
0x1d0d   :  { %5331 = vmatmul.mubr.msk.bf16.vlgmr.msra.gmra.mxu1 %vm606_vm6, %v3805_v44 }
0x1d0e   :  { %5354 = vmatprep.mubr.msk.bf16.mxu1 %vm5873_vm3, %v5872_v26 }
0x1da8   :  { %v5324_v31 = vpop.f32.mrf.mxu0 }
0x1daa   :  { %v3854_v62 = vpop.f32.mrf.mxu0 }
0x1dac   :  { %v5325_v60 = vpop.f32.mrf.mxu0 }
0x1dae   :  { %v3857_v32 = vpop.f32.mrf.mxu0 }
0x1daf   :  { %v5514_v7 = vpack.i.bf16 %v3857_v32, %v3854_v62 }
0x1db1   :  { %5515 = vrot.lane.b32.xlu1 %v5514_v7, %s7494_s24 }
0x1db5   :  { %5525 = vrot.lane.b32.xlu1 %v5524_v18, %s7492_s27  ;;  %v5507_v18 = vunpack.i.l.bf16 %v5506_v42 }
0x1db9   :  { %5535 = vrot.lane.b32.xlu1 %v5534_v41, %s7493_s28  ;;  %v4002_v41 = vsel %vm471_vm4, %v6978_v1, %v5507_v18 }
0x1dba   :  { %v4008_v13 = vsel %vm1888_vm8, %v4002_v41, %v5512_v47 }
0x1dcd   :  { %v5332_v61 = vpop.f32.mrf.mxu1 }
0x1dcf   :  { %v3916_v17 = vpop.f32.mrf.mxu1 }
0x1dd0   :  { %v5529_v14 = vpack.i.bf16 %v3916_v17, %v5324_v31 }
0x1dd1   :  { %v5333_v63 = vpop.f32.mrf.mxu1 }
0x1dd2   :  { %5530 = vrot.lane.b32.xlu0 %v5529_v14, %s7494_s24 }
0x1dd3   :  { %v3919_v16 = vpop.f32.mrf.mxu1 }
0x1dd4   :  { %v5544_v33 = vpack.i.bf16 %v5332_v61, %v3919_v16 }
0x1dd6   :  { %5540 = vrot.lane.b32.xlu0 %v5539_v8, %s7492_s27  ;;  %5545 = vrot.lane.b32.xlu1 %v5544_v33, %s7494_s24 }
0x1e23   :  { %v5516_v22 = vpop.permute.xlu1 %5515 }
0x1e24   :  { %v5518_v5 = vunpack.i.h.bf16 %v5516_v22  ;;  %v5517_v12 = vunpack.i.l.bf16 %v5516_v22 }
0x1e26   :  { %v4014_v8 = vsel %vm606_vm6, %v4008_v13, %v5517_v12  ;;  %v4015_v24 = vsel %vm606_vm6, %v4009_v57, %v5518_v5 }
0x1e27   :  { %v4020_v40 = vpack.c.bf16 %v4015_v24, %v4014_v8  ;;  %v5526_v1 = vpop.permute.xlu1 %5525 }
0x1e28   :  { %v5528_v34 = vunpack.i.h.bf16 %v5526_v1  ;;  %v5527_v55 = vunpack.i.l.bf16 %v5526_v1 }
0x1e29   :  { %5339 = vmatmul.mubr.msk.bf16.vlgmr.msra.gmra.mxu0 %vm234_vm1, %v4020_v40 }
0x1e2a   :  { %5342 = vmatprep.mubr.msk.bf16.mxu0 %vm5873_vm3, %v5872_v26  ;;  %v4011_v51 = vsel %vm1888_vm8, %v4005_v2, %v5528_v34  ;;  %v4010_v25 = vsel %vm1888_vm8, %v4004_v58, %v5527_v55 }
0x1e2b   :  { %v5536_v37 = vpop.permute.xlu1 %5535 }
0x1e2c   :  { %v5538_v50 = vunpack.i.h.bf16 %v5536_v37  ;;  %v5537_v23 = vunpack.i.l.bf16 %v5536_v37 }
0x1e2e   :  { %v4007_v35 = vsel %vm471_vm4, %v6991_v11, %v5538_v50  ;;  %v4006_v21 = vsel %vm471_vm4, %v6999_v19, %v5537_v23  ;;  %v4757_v11 = vld [vmem:[%s7457_s10 + $0x1] ss:$0 sm:$0xff] }
0x1e44   :  { %v5531_v52 = vpop.permute.xlu0 %5530 }
0x1e45   :  { %v5533_v59 = vunpack.i.h.bf16 %v5531_v52  ;;  %v5532_v28 = vunpack.i.l.bf16 %v5531_v52 }
0x1e47   :  { %v4016_v43 = vsel %vm606_vm6, %v4010_v25, %v5532_v28  ;;  %v4017_v49 = vsel %vm606_vm6, %v4011_v51, %v5533_v59 }
0x1e48   :  { %v4021_v30 = vpack.c.bf16 %v4017_v49, %v4016_v43  ;;  %v5541_v54 = vpop.permute.xlu0 %5540  ;;  %v5546_v4 = vpop.permute.xlu1 %5545 }
0x1e49   :  { %v5543_v10 = vunpack.i.h.bf16 %v5541_v54  ;;  %v5542_v20 = vunpack.i.l.bf16 %v5541_v54  ;;  %v5548_v0 = vunpack.i.h.bf16 %v5546_v4  ;;  %v5547_v44 = vunpack.i.l.bf16 %v5546_v4 }
0x1e4a   :  { %5343 = vmatmul.mubr.msk.bf16.gmra.mxu0 %vm234_vm1, %v4021_v30  ;;  %v5579_v30 = vld [vmem:[%s7458_s13 + $0x18] sm:$0xff]  }
0x1e4b   :  { %v4012_v9 = vsel %vm1888_vm8, %v4006_v21, %v5542_v20  ;;  %v4013_v31 = vsel %vm1888_vm8, %v4007_v35, %v5543_v10  ;;  %5346 = vmatprep.mubr.msk.bf16.mxu0 %vm5873_vm3, %v5872_v26  ;;  %5351 = vmatpush3.bf16.msra.mxu1 %v5579_v30  ;;  %v5580_v20 = vld [vmem:[%s7458_s13 + $0x10] sm:$0xff]  }
0x1e4c   :  { %v4018_v62 = vsel %vm606_vm6, %v4012_v9, %v5547_v44  ;;  %v4019_v60 = vsel %vm606_vm6, %v4013_v31, %v5548_v0  ;;  %5352 = vmatprep.subr.bf16.mxu1 %v5872_v26 }
0x1e4d   :  { %v4022_v32 = vpack.c.bf16 %v4019_v60, %v4018_v62 }
0x1e4f   :  { %5353 = vmatpush3.bf16.msra.mxu1 %v5580_v20 }
0x1e52   :  { %5347 = vmatmul.mubr.msk.bf16.gmra.mxu0 %vm234_vm1, %v4022_v32 }
0x1e53   :  { %5382 = vmatprep.mubr.msk.bf16.mxu0 %vm5873_vm3, %v5872_v26 }
0x1ee9   :  { %v4091_v19 = vpop.f32.mrf.mxu0 }
0x1eea   :  { %v4092_v7 = vadd.f32 %v4757_v11, %v4091_v19 }
0x1eeb   :  { %v5340_v61 = vpop.f32.mrf.mxu0 }
0x1eec   :  { %v7286_v17 = vadd.f32 %v4092_v7, %v6788_v15 }
0x1eed   :  { %v4094_v14 = vpop.f32.mrf.mxu0 }
0x1eee   :  { %v4095_v63 = vadd.f32 %v4757_v11, %v4094_v14  ;;  %v4124_v16 = vsel %vm234_vm1, %v7286_v17, 0.0 }
0x1eef   :  { %4125 = vadd.xlane.f32.xlu0 %v4124_v16  ;;  %v5341_v33 = vpop.f32.mrf.mxu0 }
0x1ef0   :  { %v7291_v42 = vadd.f32 %v4095_v63, %v6793_v36 }
0x1ef2   :  { %v4127_v48 = vsel %vm234_vm1, %v7291_v42, 0.0 }
0x1ef3   :  { %4128 = vadd.xlane.f32.xlu1 %v4127_v48  ;;  %v4765_v48 = vld [vmem:[%s7459_s11 + $0x1] ss:$0 sm:$0xff] }
0x1f0a   :  { %v4099_v18 = vpop.f32.mrf.mxu0 }
0x1f0b   :  { %v4100_v3 = vadd.f32 %v4757_v11, %v4099_v18 }
0x1f0c   :  { %v5344_v39 = vpop.f32.mrf.mxu0 }
0x1f0d   :  { %v7296_v15 = vadd.f32 %v4100_v3, %v6798_v38 }
0x1f0e   :  { %v4102_v41 = vpop.f32.mrf.mxu0 }
0x1f0f   :  { %v4103_v45 = vadd.f32 %v4757_v11, %v4102_v41  ;;  %v4130_v47 = vsel %vm234_vm1, %v7296_v15, 0.0  ;;  %v4766_v41 = vld [vmem:[%s7460_s12 + $0x1] ss:$0 sm:$0xff] }
0x1f10   :  { %4131 = vadd.xlane.f32.xlu0 %v4130_v47  ;;  %v5345_v22 = vpop.f32.mrf.mxu0 }
0x1f11   :  { %v7301_v36 = vadd.f32 %v4103_v45, %v6803_v46 }
0x1f12   :  { %v4107_v5 = vpop.f32.mrf.mxu0 }
0x1f13   :  { %v4108_v12 = vadd.f32 %v4757_v11, %v4107_v5  ;;  %v4133_v13 = vsel %vm234_vm1, %v7301_v36, 0.0 }
0x1f14   :  { %4134 = vadd.xlane.f32.xlu0 %v4133_v13  ;;  %v5348_v57 = vpop.f32.mrf.mxu0 }
0x1f15   :  { %v7306_v38 = vadd.f32 %v4108_v12, %v6808_v27 }
0x1f16   :  { %v4110_v8 = vpop.f32.mrf.mxu0 }
0x1f17   :  { %v4111_v24 = vadd.f32 %v4757_v11, %v4110_v8  ;;  %v4136_v40 = vsel %vm234_vm1, %v7306_v38, 0.0 }
0x1f18   :  { %4137 = vadd.xlane.f32.xlu0 %v4136_v40  ;;  %v5349_v1 = vpop.f32.mrf.mxu0 }
0x1f19   :  { %v7311_v46 = vadd.f32 %v4111_v24, %v6813_v29 }
0x1f1b   :  { %v4139_v56 = vsel %vm234_vm1, %v7311_v46, 0.0 }
0x1f1c   :  { %4140 = vadd.xlane.f32.xlu1 %v4139_v56 }
0x1f78   :  { %v4126_v53 = vpop.xlane.xlu0 %4125 }
0x1f79   :  { %v4142_v6 = vmul.f32 0.03125, %v4126_v53 }
0x1f7b   :  { %v4148_v34 = vsub.f32 %v7286_v17, %v4142_v6 }
0x1f7c   :  { %v4129_v27 = vpop.xlane.xlu1 %4128 }
0x1f7d   :  { %v4143_v55 = vmul.f32 0.03125, %v4129_v27  ;;  %v4154_v37 = vmul.f32 %v4148_v34, %v4148_v34 }
0x1f7f   :  { %v4149_v52 = vsub.f32 %v7291_v42, %v4143_v55  ;;  %v4160_v2 = vsel %vm234_vm1, %v4154_v37, 0.0 }
0x1f80   :  { %4161 = vadd.xlane.f32.xlu0 %v4160_v2 }
0x1f81   :  { %v4155_v58 = vmul.f32 %v4149_v52, %v4149_v52 }
0x1f83   :  { %v4163_v29 = vsel %vm234_vm1, %v4155_v58, 0.0 }
0x1f84   :  { %4164 = vadd.xlane.f32.xlu1 %v4163_v29 }
0x1f99   :  { %v4132_v59 = vpop.xlane.xlu0 %4131 }
0x1f9a   :  { %v4144_v28 = vmul.f32 0.03125, %v4132_v59 }
0x1f9c   :  { %v7320_v51 = vsub.f32 %v7296_v15, %v4144_v28 }
0x1f9d   :  { %v4135_v25 = vpop.xlane.xlu0 %4134 }
0x1f9e   :  { %v4145_v50 = vmul.f32 0.03125, %v4135_v25  ;;  %v4156_v23 = vmul.f32 %v7320_v51, %v7320_v51 }
0x1fa0   :  { %v7325_v43 = vsub.f32 %v7301_v36, %v4145_v50  ;;  %v4166_v49 = vsel %vm234_vm1, %v4156_v23, 0.0 }
0x1fa1   :  { %4167 = vadd.xlane.f32.xlu0 %v4166_v49  ;;  %v4138_v54 = vpop.xlane.xlu0 %4137 }
0x1fa2   :  { %v4146_v4 = vmul.f32 0.03125, %v4138_v54  ;;  %v4157_v10 = vmul.f32 %v7325_v43, %v7325_v43 }
0x1fa4   :  { %v4152_v0 = vsub.f32 %v7306_v38, %v4146_v4  ;;  %v4169_v44 = vsel %vm234_vm1, %v4157_v10, 0.0 }
0x1fa5   :  { %4170 = vadd.xlane.f32.xlu1 %v4169_v44  ;;  %v4141_v35 = vpop.xlane.xlu1 %4140  ;;  %v5583_v44 = vld [vmem:[%s7461_s15 + $0x68] sm:$0xff]  }
0x1fa6   :  { %v4147_v21 = vmul.f32 0.03125, %v4141_v35  ;;  %v4158_v9 = vmul.f32 %v4152_v0, %v4152_v0  ;;  %v5584_v35 = vld [vmem:[%s7461_s15 + $0x60] sm:$0xff]  }
0x1fa8   :  { %v4153_v31 = vsub.f32 %v7311_v46, %v4147_v21  ;;  %v4172_v62 = vsel %vm234_vm1, %v4158_v9, 0.0  ;;  %v5585_v21 = vld [vmem:[%s7461_s15 + $0x58] sm:$0xff]   ;;  %v5586_v9 = vld [vmem:[%s7461_s15 + $0x50] sm:$0xff]  }
0x1fa9   :  { %4173 = vadd.xlane.f32.xlu0 %v4172_v62  ;;  %v5588_v62 = vld [vmem:[%s7461_s15 + $0x40] sm:$0xff]  }
0x1faa   :  { %v4159_v60 = vmul.f32 %v4153_v31, %v4153_v31 }
0x1fac   :  { %v4175_v32 = vsel %vm234_vm1, %v4159_v60, 0.0  ;;  %v4772_v60 = vld [vmem:[%s7462_s14 + $0x1] ss:$0 sm:$0xff] }
0x1fad   :  { %4176 = vadd.xlane.f32.xlu1 %v4175_v32 }
0x2009   :  { %v4162_v11 = vpop.xlane.xlu0 %4161 }
0x200a   :  { %v4178_v19 = vmul.f32 0.03125, %v4162_v11 }
0x200c   :  { %v4184_v7 = vadd.f32 1e-06, %v4178_v19 }
0x200d   :  { %v4165_v61 = vpop.xlane.xlu1 %4164 }
0x200e   :  { %5829 = vrsqrt.f32 %v4184_v7  ;;  %v4179_v14 = vmul.f32 0.03125, %v4165_v61 }
0x2010   :  { %v4185_v63 = vadd.f32 1e-06, %v4179_v14 }
0x2012   :  { %5831 = vrsqrt.f32 %v4185_v63 }
0x201b   :  { %v5830_v16 = vpop.eup %5829 }
0x201c   :  { %v4196_v33 = vmul.f32 %v5830_v16, %v4148_v34 }
0x201e   :  { %v4208_v39 = vmul.f32 %v4765_v48, %v4196_v33 }
0x201f   :  { %v5832_v18 = vpop.eup %5831 }
0x2020   :  { %v4197_v3 = vmul.f32 %v5832_v18, %v4149_v52  ;;  %v4220_v47 = vadd.f32 %v4766_v41, %v4208_v39 }
0x2022   :  { %v4209_v45 = vmul.f32 %v4765_v48, %v4197_v3 }
0x2024   :  { %v4221_v22 = vadd.f32 %v4766_v41, %v4209_v45 }
0x2026   :  { %v4226_v5 = vpack.c.bf16 %v4221_v22, %v4220_v47 }
0x2028   :  { %5355 = vmatmul.mubr.msk.bf16.vlgmr.msra.gmra.mxu1 %vm234_vm1, %v4226_v5 }
0x2029   :  { %5358 = vmatprep.mubr.msk.bf16.mxu1 %vm5873_vm3, %v5872_v26 }
0x202a   :  { %v4168_v12 = vpop.xlane.xlu0 %4167 }
0x202b   :  { %v4180_v13 = vmul.f32 0.03125, %v4168_v12 }
0x202d   :  { %v4186_v57 = vadd.f32 1e-06, %v4180_v13 }
0x202e   :  { %v4171_v8 = vpop.xlane.xlu1 %4170 }
0x202f   :  { %5833 = vrsqrt.f32 %v4186_v57  ;;  %v4181_v24 = vmul.f32 0.03125, %v4171_v8 }
0x2031   :  { %v4187_v40 = vadd.f32 1e-06, %v4181_v24 }
0x2032   :  { %v4174_v1 = vpop.xlane.xlu0 %4173 }
0x2033   :  { %5835 = vrsqrt.f32 %v4187_v40  ;;  %v4182_v56 = vmul.f32 0.03125, %v4174_v1 }
0x2035   :  { %v4188_v53 = vadd.f32 1e-06, %v4182_v56 }
0x2036   :  { %v4177_v6 = vpop.xlane.xlu1 %4176 }
0x2037   :  { %5837 = vrsqrt.f32 %v4188_v53  ;;  %v4183_v34 = vmul.f32 0.03125, %v4177_v6 }
0x2039   :  { %v4189_v27 = vadd.f32 1e-06, %v4183_v34 }
0x203b   :  { %5839 = vrsqrt.f32 %v4189_v27 }
0x203c   :  { %v5834_v55 = vpop.eup %5833 }
0x203d   :  { %v4198_v37 = vmul.f32 %v5834_v55, %v7320_v51 }
0x203f   :  { %v4210_v58 = vmul.f32 %v4765_v48, %v4198_v37 }
0x2040   :  { %v5836_v52 = vpop.eup %5835 }
0x2041   :  { %v4199_v2 = vmul.f32 %v5836_v52, %v7325_v43  ;;  %v4222_v25 = vadd.f32 %v4766_v41, %v4210_v58  ;;  %v5581_v43 = vld [vmem:[%s7461_s15 + $0x78] sm:$0xff]  }
0x2042   :  { %5367 = vmatpush3.bf16.msra.mxu0 %v5581_v43 }
0x2043   :  { %v4211_v29 = vmul.f32 %v4765_v48, %v4199_v2  ;;  %5368 = vmatprep.subr.bf16.mxu0 %v5872_v26 }
0x2044   :  { %v5838_v59 = vpop.eup %5837 }
0x2045   :  { %v4200_v28 = vmul.f32 %v5838_v59, %v4152_v0  ;;  %v4223_v50 = vadd.f32 %v4766_v41, %v4211_v29  ;;  %v5582_v0 = vld [vmem:[%s7461_s15 + $0x70] sm:$0xff]  }
0x2046   :  { %5369 = vmatpush3.bf16.msra.mxu0 %v5582_v0 }
0x2047   :  { %v4227_v23 = vpack.c.bf16 %v4223_v50, %v4222_v25  ;;  %v4212_v54 = vmul.f32 %v4765_v48, %v4200_v28  ;;  %5370 = vmatprep.subr.bf16.mxu0 %v5872_v26 }
0x2048   :  { %v5840_v49 = vpop.eup %5839 }
0x2049   :  { %v4201_v30 = vmul.f32 %v5840_v49, %v4153_v31  ;;  %5359 = vmatmul.mubr.msk.bf16.gmra.mxu1 %vm234_vm1, %v4227_v23  ;;  %v4224_v51 = vadd.f32 %v4766_v41, %v4212_v54  ;;  %v5587_v31 = vld [vmem:[%s7461_s15 + $0x48] sm:$0xff]  }
0x204a   :  { %5362 = vmatprep.mubr.msk.bf16.mxu1 %vm5873_vm3, %v5872_v26  ;;  %5371 = vmatpush3.bf16.msra.mxu0 %v5583_v44 }
0x204b   :  { %v4213_v4 = vmul.f32 %v4765_v48, %v4201_v30  ;;  %5372 = vmatprep.subr.bf16.mxu0 %v5872_v26 }
0x204d   :  { %v4225_v10 = vadd.f32 %v4766_v41, %v4213_v4 }
0x204e   :  { %5373 = vmatpush3.bf16.msra.mxu0 %v5584_v35 }
0x204f   :  { %v4228_v20 = vpack.c.bf16 %v4225_v10, %v4224_v51  ;;  %5374 = vmatprep.subr.bf16.mxu0 %v5872_v26 }
0x2051   :  { %5363 = vmatmul.mubr.msk.bf16.gmra.mxu1 %vm234_vm1, %v4228_v20 }
0x2052   :  { %5375 = vmatpush3.bf16.msra.mxu0 %v5585_v21 }
0x2053   :  { %5376 = vmatprep.subr.bf16.mxu0 %v5872_v26 }
0x2056   :  { %5377 = vmatpush3.bf16.msra.mxu0 %v5586_v9 }
0x2057   :  { %5378 = vmatprep.subr.bf16.mxu0 %v5872_v26 }
0x205a   :  { %5379 = vmatpush3.bf16.msra.mxu0 %v5587_v31 }
0x205b   :  { %5380 = vmatprep.subr.bf16.mxu0 %v5872_v26 }
0x205e   :  { %5381 = vmatpush3.bf16.msra.mxu0 %v5588_v62 }
0x20e8   :  { %v4297_v32 = vpop.f32.mrf.mxu1 }
0x20e9   :  { %v4298_v11 = vadd.f32 %v4772_v60, %v4297_v32 }
0x20ea   :  { %v5356_v19 = vpop.f32.mrf.mxu1 }
0x20eb   :  { %v4326_v7 = vmul.f32 0.044715, %v4298_v11  ;;  %v4320_v13 = vmul.f32 0.5, %v4298_v11 }
0x20ec   :  { %v4300_v61 = vpop.f32.mrf.mxu1 }
0x20ed   :  { %v4332_v14 = vmul.f32 %v4326_v7, %v4298_v11  ;;  %v4301_v63 = vadd.f32 %v4772_v60, %v4300_v61 }
0x20ee   :  { %v5357_v16 = vpop.f32.mrf.mxu1 }
0x20ef   :  { %v4338_v33 = vmul.f32 %v4332_v14, %v4298_v11  ;;  %v4327_v48 = vmul.f32 0.044715, %v4301_v63  ;;  %v4321_v57 = vmul.f32 0.5, %v4301_v63 }
0x20f1   :  { %v4344_v18 = vadd.f32 %v4338_v33, %v4298_v11  ;;  %v4333_v3 = vmul.f32 %v4327_v48, %v4301_v63 }
0x20f3   :  { %v4350_v39 = vmul.f32 0.7978846, %v4344_v18  ;;  %v4339_v41 = vmul.f32 %v4333_v3, %v4301_v63 }
0x20f5   :  { %5841 = vtanh.f32 %v4350_v39  ;;  %v4345_v45 = vadd.f32 %v4339_v41, %v4301_v63 }
0x20f7   :  { %v4351_v47 = vmul.f32 0.7978846, %v4345_v45 }
0x20f9   :  { %5843 = vtanh.f32 %v4351_v47 }
0x2102   :  { %v5842_v22 = vpop.eup %5841 }
0x2103   :  { %v4362_v5 = vadd.f32 1.0, %v5842_v22 }
0x2105   :  { %v4368_v40 = vmul.f32 %v4362_v5, %v4320_v13 }
0x2106   :  { %v5844_v12 = vpop.eup %5843 }
0x2107   :  { %v4363_v8 = vadd.f32 1.0, %v5844_v12  ;;  %v4795_v12 = vld [vmem:[%s7463_s16 + $0x1] ss:$0 sm:$0xff] }
0x2109   :  { %v4305_v24 = vpop.f32.mrf.mxu1  ;;  %v4369_v1 = vmul.f32 %v4363_v8, %v4321_v57 }
0x210a   :  { %v4306_v56 = vadd.f32 %v4772_v60, %v4305_v24 }
0x210b   :  { %v5360_v53 = vpop.f32.mrf.mxu1  ;;  %v4374_v6 = vpack.c.bf16 %v4369_v1, %v4368_v40 }
0x210c   :  { %v4328_v34 = vmul.f32 0.044715, %v4306_v56  ;;  %v4322_v61 = vmul.f32 0.5, %v4306_v56 }
0x210d   :  { %5383 = vmatmul.mubr.bf16.vlgmr.msra.gmra.mxu0 %v4374_v6  ;;  %v4308_v27 = vpop.f32.mrf.mxu1 }
0x210e   :  { %v4334_v55 = vmul.f32 %v4328_v34, %v4306_v56  ;;  %v4309_v37 = vadd.f32 %v4772_v60, %v4308_v27  ;;  %5386 = vmatprep.mubr.msk.bf16.mxu0 %vm5873_vm3, %v5872_v26 }
0x210f   :  { %v5361_v52 = vpop.f32.mrf.mxu1 }
0x2110   :  { %v4340_v2 = vmul.f32 %v4334_v55, %v4306_v56  ;;  %v4329_v58 = vmul.f32 0.044715, %v4309_v37 }
0x2111   :  { %v4313_v29 = vpop.f32.mrf.mxu1 }
0x2112   :  { %v4335_v59 = vmul.f32 %v4329_v58, %v4309_v37  ;;  %v4314_v28 = vadd.f32 %v4772_v60, %v4313_v29  ;;  %v4346_v25 = vadd.f32 %v4340_v2, %v4306_v56 }
0x2113   :  { %v5364_v50 = vpop.f32.mrf.mxu1 }
0x2114   :  { %v4341_v23 = vmul.f32 %v4335_v59, %v4309_v37  ;;  %v4330_v49 = vmul.f32 0.044715, %v4314_v28  ;;  %v4352_v30 = vmul.f32 0.7978846, %v4346_v25  ;;  %v4324_v39 = vmul.f32 0.5, %v4314_v28 }
0x2115   :  { %v4316_v54 = vpop.f32.mrf.mxu1 }
0x2116   :  { %v4336_v4 = vmul.f32 %v4330_v49, %v4314_v28  ;;  %v4317_v51 = vadd.f32 %v4772_v60, %v4316_v54  ;;  %v4347_v10 = vadd.f32 %v4341_v23, %v4309_v37  ;;  %5845 = vtanh.f32 %v4352_v30 }
0x2117   :  { %v5365_v20 = vpop.f32.mrf.mxu1  ;;  %v4323_v60 = vmul.f32 0.5, %v4309_v37 }
0x2118   :  { %v4342_v43 = vmul.f32 %v4336_v4, %v4314_v28  ;;  %v4331_v0 = vmul.f32 0.044715, %v4317_v51  ;;  %v4353_v44 = vmul.f32 0.7978846, %v4347_v10  ;;  %v4325_v41 = vmul.f32 0.5, %v4317_v51 }
0x211a   :  { %v4337_v35 = vmul.f32 %v4331_v0, %v4317_v51  ;;  %5847 = vtanh.f32 %v4353_v44  ;;  %v4348_v21 = vadd.f32 %v4342_v43, %v4314_v28 }
0x211c   :  { %v4343_v9 = vmul.f32 %v4337_v35, %v4317_v51  ;;  %v4354_v31 = vmul.f32 0.7978846, %v4348_v21 }
0x211e   :  { %v4349_v62 = vadd.f32 %v4343_v9, %v4317_v51  ;;  %5849 = vtanh.f32 %v4354_v31 }
0x2120   :  { %v4355_v32 = vmul.f32 0.7978846, %v4349_v62 }
0x2122   :  { %5851 = vtanh.f32 %v4355_v32 }
0x2123   :  { %v5846_v11 = vpop.eup %5845 }
0x2124   :  { %v4364_v19 = vadd.f32 1.0, %v5846_v11 }
0x2126   :  { %v4370_v63 = vmul.f32 %v4364_v19, %v4322_v61 }
0x2127   :  { %v5848_v7 = vpop.eup %5847 }
0x2128   :  { %v4365_v14 = vadd.f32 1.0, %v5848_v7 }
0x212a   :  { %v4371_v16 = vmul.f32 %v4365_v14, %v4323_v60 }
0x212b   :  { %v5850_v33 = vpop.eup %5849 }
0x212c   :  { %v4375_v48 = vpack.c.bf16 %v4371_v16, %v4370_v63  ;;  %v4366_v18 = vadd.f32 1.0, %v5850_v33 }
0x212e   :  { %5387 = vmatmul.mubr.bf16.gmra.mxu0 %v4375_v48  ;;  %v4372_v47 = vmul.f32 %v4366_v18, %v4324_v39 }
0x212f   :  { %v5852_v3 = vpop.eup %5851  ;;  %5390 = vmatprep.mubr.msk.bf16.mxu0 %vm5873_vm3, %v5872_v26 }
0x2130   :  { %v4367_v45 = vadd.f32 1.0, %v5852_v3 }
0x2132   :  { %v4373_v22 = vmul.f32 %v4367_v45, %v4325_v41 }
0x2134   :  { %v4376_v5 = vpack.c.bf16 %v4373_v22, %v4372_v47 }
0x2136   :  { %5391 = vmatmul.mubr.bf16.gmra.mxu0 %v4376_v5 }
0x21cd   :  { %v4484_v13 = vpop.f32.mrf.mxu0 }
0x21ce   :  { %v4485_v57 = vadd.f32 %v4795_v12, %v4484_v13 }
0x21cf   :  { %v5384_v8 = vpop.f32.mrf.mxu0 }
0x21d0   :  { %v4507_v24 = vadd.f32 %v4485_v57, %v7286_v17 }
0x21d1   :  { %v4487_v40 = vpop.f32.mrf.mxu0 }
0x21d2   :  { %v4488_v1 = vadd.f32 %v4795_v12, %v4487_v40  ;;  %v4515_v26 = vsel %vm234_vm1, %v4507_v24, 0.0 }
0x21d3   :  { %4516 = vadd.xlane.f32.xlu0 %v4515_v26  ;;  %v5385_v56 = vpop.f32.mrf.mxu0 }
0x21d4   :  { %v4508_v53 = vadd.f32 %v4488_v1, %v7291_v42  ;;  %v4805_v1 = vld [vmem:[%s7465_s18] ss:$0 sm:$0xff] }
0x21d6   :  { %v4518_v6 = vsel %vm234_vm1, %v4508_v53, 0.0 }
0x21d7   :  { %4519 = vadd.xlane.f32.xlu1 %v4518_v6 }
0x21ee   :  { %v4492_v34 = vpop.f32.mrf.mxu0 }
0x21ef   :  { %v4493_v27 = vadd.f32 %v4795_v12, %v4492_v34 }
0x21f0   :  { %v5388_v55 = vpop.f32.mrf.mxu0 }
0x21f1   :  { %v4509_v37 = vadd.f32 %v4493_v27, %v7296_v15 }
0x21f2   :  { %v4495_v52 = vpop.f32.mrf.mxu0 }
0x21f3   :  { %v4496_v2 = vadd.f32 %v4795_v12, %v4495_v52  ;;  %v4521_v17 = vsel %vm234_vm1, %v4509_v37, 0.0 }
0x21f4   :  { %4522 = vadd.xlane.f32.xlu0 %v4521_v17  ;;  %v5389_v58 = vpop.f32.mrf.mxu0 }
0x21f5   :  { %v4510_v29 = vadd.f32 %v4496_v2, %v7301_v36 }
0x21f6   :  { %v4500_v59 = vpop.f32.mrf.mxu0 }
0x21f7   :  { %v4501_v28 = vadd.f32 %v4795_v12, %v4500_v59  ;;  %v4524_v42 = vsel %vm234_vm1, %v4510_v29, 0.0 }
0x21f8   :  { %4525 = vadd.xlane.f32.xlu1 %v4524_v42  ;;  %v5392_v25 = vpop.f32.mrf.mxu0 }
0x21f9   :  { %v4511_v50 = vadd.f32 %v4501_v28, %v7306_v38 }
0x21fa   :  { %v4503_v23 = vpop.f32.mrf.mxu0 }
0x21fb   :  { %v4504_v49 = vadd.f32 %v4795_v12, %v4503_v23  ;;  %v4527_v15 = vsel %vm234_vm1, %v4511_v50, 0.0 }
0x21fc   :  { %4528 = vadd.xlane.f32.xlu0 %v4527_v15  ;;  %v5393_v30 = vpop.f32.mrf.mxu0 }
0x21fd   :  { %v4512_v54 = vadd.f32 %v4504_v49, %v7311_v46 }
0x21ff   :  { %v4530_v4 = vsel %vm234_vm1, %v4512_v54, 0.0 }
0x2200   :  { %4531 = vadd.xlane.f32.xlu1 %v4530_v4 }
0x225c   :  { %v4517_v36 = vpop.xlane.xlu0 %4516 }
0x225d   :  { %v4533_v51 = vmul.f32 0.03125, %v4517_v36 }
0x225f   :  { %v4539_v10 = vsub.f32 %v4507_v24, %v4533_v51  ;;  %v4804_v24 = vld [vmem:[%s7464_s17] ss:$0 sm:$0xff] }
0x2260   :  { %v4520_v20 = vpop.xlane.xlu1 %4519 }
0x2261   :  { %v4534_v43 = vmul.f32 0.03125, %v4520_v20  ;;  %v4545_v0 = vmul.f32 %v4539_v10, %v4539_v10 }
0x2263   :  { %v4540_v44 = vsub.f32 %v4508_v53, %v4534_v43  ;;  %v4551_v38 = vsel %vm234_vm1, %v4545_v0, 0.0 }
0x2264   :  { %4552 = vadd.xlane.f32.xlu0 %v4551_v38 }
0x2265   :  { %v4546_v35 = vmul.f32 %v4540_v44, %v4540_v44 }
0x2267   :  { %v4554_v21 = vsel %vm234_vm1, %v4546_v35, 0.0 }
0x2268   :  { %4555 = vadd.xlane.f32.xlu1 %v4554_v21 }
0x227d   :  { %v4523_v9 = vpop.xlane.xlu0 %4522 }
0x227e   :  { %v4535_v31 = vmul.f32 0.03125, %v4523_v9 }
0x2280   :  { %v4541_v46 = vsub.f32 %v4509_v37, %v4535_v31 }
0x2281   :  { %v4526_v62 = vpop.xlane.xlu1 %4525 }
0x2282   :  { %v4536_v32 = vmul.f32 0.03125, %v4526_v62  ;;  %v4547_v11 = vmul.f32 %v4541_v46, %v4541_v46 }
0x2284   :  { %v4542_v19 = vsub.f32 %v4510_v29, %v4536_v32  ;;  %v4557_v7 = vsel %vm234_vm1, %v4547_v11, 0.0 }
0x2285   :  { %4558 = vadd.xlane.f32.xlu0 %v4557_v7  ;;  %v4529_v61 = vpop.xlane.xlu0 %4528 }
0x2286   :  { %v4537_v60 = vmul.f32 0.03125, %v4529_v61  ;;  %v4548_v14 = vmul.f32 %v4542_v19, %v4542_v19 }
0x2288   :  { %v4543_v63 = vsub.f32 %v4511_v50, %v4537_v60  ;;  %v4560_v16 = vsel %vm234_vm1, %v4548_v14, 0.0 }
0x2289   :  { %4561 = vadd.xlane.f32.xlu1 %v4560_v16  ;;  %v4532_v33 = vpop.xlane.xlu1 %4531 }
0x228a   :  { %v4538_v48 = vmul.f32 0.03125, %v4532_v33  ;;  %v4549_v18 = vmul.f32 %v4543_v63, %v4543_v63 }
0x228c   :  { %v4544_v3 = vsub.f32 %v4512_v54, %v4538_v48  ;;  %v4563_v39 = vsel %vm234_vm1, %v4549_v18, 0.0 }
0x228d   :  { %4564 = vadd.xlane.f32.xlu0 %v4563_v39 }
0x228e   :  { %v4550_v41 = vmul.f32 %v4544_v3, %v4544_v3 }
0x2290   :  { %v4566_v45 = vsel %vm234_vm1, %v4550_v41, 0.0 }
0x2291   :  { %4567 = vadd.xlane.f32.xlu1 %v4566_v45 }
0x22ed   :  { %v4553_v47 = vpop.xlane.xlu0 %4552 }
0x22ee   :  { %v4569_v22 = vmul.f32 0.03125, %v4553_v47 }
0x22f0   :  { %v4575_v5 = vadd.f32 1e-06, %v4569_v22 }
0x22f1   :  { %v4556_v12 = vpop.xlane.xlu1 %4555 }
0x22f2   :  { %5853 = vrsqrt.f32 %v4575_v5  ;;  %v4570_v13 = vmul.f32 0.03125, %v4556_v12 }
0x22f4   :  { %v4576_v57 = vadd.f32 1e-06, %v4570_v13 }
0x22f6   :  { %5855 = vrsqrt.f32 %v4576_v57 }
0x22ff   :  { %v5854_v8 = vpop.eup %5853 }
0x2300   :  { %v4587_v40 = vmul.f32 %v5854_v8, %v4539_v10 }
0x2302   :  { %v4599_v26 = vmul.f32 %v4804_v24, %v4587_v40 }
0x2303   :  { %v5856_v56 = vpop.eup %5855 }
0x2304   :  { %v4611_v53 = vadd.f32 %v4805_v1, %v4599_v26  ;;  %v4588_v6 = vmul.f32 %v5856_v56, %v4540_v44 }
0x2306   :  { %4617 = vst.msk [vmem:[%s7488_s3] sm:$0xff] %vm234_vm1, %v4611_v53  ;;  %v4600_v34 = vmul.f32 %v4804_v24, %v4588_v6 }
0x2308   :  { %v4612_v27 = vadd.f32 %v4805_v1, %v4600_v34 }
0x230a   :  { %4618 = vst.msk [vmem:[%s7488_s3 + $0x8] sm:$0xff] %vm234_vm1, %v4612_v27 }
0x230e   :  { %v4559_v55 = vpop.xlane.xlu0 %4558 }
0x230f   :  { %v4571_v37 = vmul.f32 0.03125, %v4559_v55 }
0x2311   :  { %v4577_v52 = vadd.f32 1e-06, %v4571_v37 }
0x2312   :  { %v4562_v2 = vpop.xlane.xlu1 %4561 }
0x2313   :  { %5857 = vrsqrt.f32 %v4577_v52  ;;  %v4572_v17 = vmul.f32 0.03125, %v4562_v2 }
0x2315   :  { %v4578_v58 = vadd.f32 1e-06, %v4572_v17 }
0x2316   :  { %v4565_v29 = vpop.xlane.xlu0 %4564 }
0x2317   :  { %5859 = vrsqrt.f32 %v4578_v58  ;;  %v4573_v59 = vmul.f32 0.03125, %v4565_v29 }
0x2319   :  { %v4579_v28 = vadd.f32 1e-06, %v4573_v59 }
0x231a   :  { %v4568_v42 = vpop.xlane.xlu1 %4567 }
0x231b   :  { %5861 = vrsqrt.f32 %v4579_v28  ;;  %v4574_v25 = vmul.f32 0.03125, %v4568_v42 }
0x231d   :  { %v4580_v50 = vadd.f32 1e-06, %v4574_v25 }
0x231f   :  { %5863 = vrsqrt.f32 %v4580_v50 }
0x2320   :  { %v5858_v23 = vpop.eup %5857 }
0x2321   :  { %v4589_v49 = vmul.f32 %v5858_v23, %v4541_v46 }
0x2323   :  { %v4601_v15 = vmul.f32 %v4804_v24, %v4589_v49 }
0x2324   :  { %v5860_v30 = vpop.eup %5859 }
0x2325   :  { %v4613_v54 = vadd.f32 %v4805_v1, %v4601_v15  ;;  %v4590_v4 = vmul.f32 %v5860_v30, %v4542_v19 }
0x2327   :  { %4619 = vst.msk [vmem:[%s7488_s3 + $0x10] sm:$0xff] %vm234_vm1, %v4613_v54  ;;  %v4602_v36 = vmul.f32 %v4804_v24, %v4590_v4 }
0x2328   :  { %v5862_v51 = vpop.eup %5861 }
0x2329   :  { %v4614_v10 = vadd.f32 %v4805_v1, %v4602_v36  ;;  %v4591_v20 = vmul.f32 %v5862_v51, %v4543_v63 }
0x232b   :  { %4620 = vst.msk [vmem:[%s7488_s3 + $0x18] sm:$0xff] %vm234_vm1, %v4614_v10  ;;  %v4603_v43 = vmul.f32 %v4804_v24, %v4591_v20 }
0x232c   :  { %v5864_v0 = vpop.eup %5863 }
0x232d   :  { %v4615_v44 = vadd.f32 %v4805_v1, %v4603_v43  ;;  %v4592_v38 = vmul.f32 %v5864_v0, %v4544_v3 }
0x232f   :  { %4621 = vst.msk [vmem:[%s7488_s3 + $0x20] sm:$0xff] %vm234_vm1, %v4615_v44  ;;  %v4604_v35 = vmul.f32 %v4804_v24, %v4592_v38 }
0x2331   :  { %v4616_v21 = vadd.f32 %v4805_v1, %v4604_v35 }
0x2333   :  { %4622 = vst.msk [vmem:[%s7488_s3 + $0x28] sm:$0xff] %vm234_vm1, %v4616_v21 }

</bundles_post_ra>
